<compile_context>
chip_gen: v7x
topology: tpu7x:2x2x1
jax: 0.10.0
libtpu: 0.0.40
codegen_flags: <defaults>
</compile_context>

<pallas_src>
import jax
import jax.numpy as jnp
from jax.experimental import pallas as pl
from jax.experimental.pallas import tpu as pltpu

IN_FEATURES = 960     # mobilenet_v3_large classifier[0].in_features
HID1 = 256
HID2 = 128
N_CLS = 4
N_BB = 4
N_OUT = N_CLS + N_BB  # merged output lane width
BN_EPS = 1e-5
LEAKY_SLOPE = 0.01


def _heads_kernel(feat_ref,               # (TB, S, C) channels-last feature slab
                  w_big_ref, b_big_ref,   # (C, 256+4), (1, 256+4) = [w1 | BN-folded w_cls]
                  w2_ref, b2_ref,         # (256, 128), (1, 128)
                  w3_ref, b3_ref,         # (128, 4),   (1, 4)
                  out_ref):               # (TB, 8) = [cls | bb]
    # AdaptiveAvgPool2d((1,1)) + Flatten == mean over the spatial axis.
    # dtype=f32 keeps the accumulation in f32 for a bf16 feature map without
    # first materializing a full-slab f32 astype copy.
    pooled = jnp.mean(feat_ref[...], axis=1, dtype=jnp.float32)    # (TB, C)

    # One MXU push covers both bb_head.Linear(960,256) and the BN-folded
    # classifier Linear(960,4); split at the 256-lane (vreg-aligned) boundary.
    h_all = jnp.dot(pooled, w_big_ref[...],
                    preferred_element_type=jnp.float32) + b_big_ref[...]
    cls = h_all[:, HID1:]                                           # (TB, 4)

    # bb head: LeakyReLU -> (Dropout = id) -> Linear -> LeakyReLU -> Linear -> Sigmoid
    h = h_all[:, :HID1]
    h = jnp.where(h > 0, h, LEAKY_SLOPE * h)
    h = jnp.dot(h, w2_ref[...], preferred_element_type=jnp.float32) + b2_ref[...]
    h = jnp.where(h > 0, h, LEAKY_SLOPE * h)
    h = jnp.dot(h, w3_ref[...], preferred_element_type=jnp.float32) + b3_ref[...]
    bb = jax.nn.sigmoid(h)                                          # (TB, 4)

    # Single merged store: one output DMA / masked vst per grid step.
    out_ref[...] = jnp.concatenate([cls, bb], axis=1).astype(out_ref.dtype)


def _padded_elems(S, C, itemsize):
    """Elements of one (S, C) slice after TPU sublane/lane padding."""
    sublane = 8 * (4 // itemsize)            # f32: 8, bf16: 16, int8/fp8: 32
    return (-(-S // sublane) * sublane) * (-(-C // 128) * 128)


def _pick_batch_tile(B, S, C, itemsize, budget_bytes=20 << 20):
    """Pick a batch tile that
      (a) divides B and is 8-aligned (or equals B for tiny/awkward batches),
      (b) keeps the REAL VMEM footprint -- double-buffered, padding-aware
          feature block plus the f32 reduction temporary -- under budget,
      (c) caps at 256 rows (MXU height on v6e/v7x),
      (d) prefers an even grid count so v7x's two TensorCores both get work.
    """
    per_row = (2 * _padded_elems(S, C, itemsize) * itemsize   # double-buffered input
               + _padded_elems(S, C, 4) * 4)                  # f32 reduce/upcast temp
    cap = min(max(1, budget_bytes // per_row), 256)
    candidates = [d for d in range(8, min(B, cap) + 1, 8) if B % d == 0]
    if not candidates:
        # Tiny / awkward batch: single block (still small for any realistic
        # MobileNet feature-map size).
        return B
    even_grid = [d for d in candidates if (B // d) % 2 == 0]
    return max(even_grid) if even_grid else max(candidates)


def fuse_params(params):
    """One-time host-side prep: fold eval-mode BatchNorm1d into the classifier
    Linear and concatenate it with bb_head's first Linear into one weight."""
    scale = params["bn_gamma"] * jax.lax.rsqrt(params["bn_var"] + BN_EPS)  # (1, C)
    shift = params["bn_beta"] - params["bn_mean"] * scale                  # (1, C)
    w_cls_f = params["w_cls"] * scale.T                                    # (C, 4)
    b_cls_f = params["b_cls"] + shift @ params["w_cls"]                    # (1, 4)
    return {
        "w_big": jnp.concatenate([params["w1"], w_cls_f], axis=1),         # (C, 260)
        "b_big": jnp.concatenate([params["b1"], b_cls_f], axis=1),         # (1, 260)
        "w2": params["w2"], "b2": params["b2"],
        "w3": params["w3"], "b3": params["b3"],
    }


def basic_model_heads(features, fused, *, channels_last=True):
    """Run the BasicModel heads on the backbone feature map.

    features: (B, H, W, C) if channels_last (preferred; lane-dense on TPU) or
              (B, C, H, W) NCHW (transposed once on the host by XLA).
    Returns (cls_out, bb_out), both (B, 4) float32.
    """
    if not channels_last:
        features = jnp.transpose(features, (0, 2, 3, 1))   # one-time XLA op, not in-kernel
    B, H, W, C = features.shape
    assert C == IN_FEATURES
    S = H * W
    feat = features.reshape(B, S, C)          # free view, no HBM transpose
    itemsize = feat.dtype.itemsize

    tb = _pick_batch_tile(B, S, C, itemsize)
    grid = (B // tb,)
    n_big = HID1 + N_CLS

    weight_bytes = sum(int(v.size) * v.dtype.itemsize for v in fused.values())
    cost = pl.CostEstimate(
        flops=int(B * S * C                       # spatial mean
                  + 2 * B * C * n_big             # fused [w1 | w_cls] dot
                  + 2 * B * HID1 * HID2
                  + 2 * B * HID2 * N_BB),
        transcendentals=int(B * N_BB),            # sigmoid
        bytes_accessed=int(B * S * C * itemsize + weight_bytes + B * N_OUT * 4),
    )

    out = pl.pallas_call(
        _heads_kernel,
        out_shape=jax.ShapeDtypeStruct((B, N_OUT), jnp.float32),
        grid=grid,
        in_specs=[
            pl.BlockSpec((tb, S, C), lambda b: (b, 0, 0)),     # feature slab
            pl.BlockSpec((C, n_big), lambda b: (0, 0)),        # [w1 | BN-folded w_cls]
            pl.BlockSpec((1, n_big), lambda b: (0, 0)),
            pl.BlockSpec((HID1, HID2), lambda b: (0, 0)),
            pl.BlockSpec((1, HID2), lambda b: (0, 0)),
            pl.BlockSpec((HID2, N_BB), lambda b: (0, 0)),
            pl.BlockSpec((1, N_BB), lambda b: (0, 0)),
        ],
        out_specs=pl.BlockSpec((tb, N_OUT), lambda b: (b, 0)),
        compiler_params=pltpu.CompilerParams(
            dimension_semantics=("parallel",),
            vmem_limit_bytes=32 << 20),
        cost_estimate=cost,
    )(feat, fused["w_big"], fused["b_big"],
      fused["w2"], fused["b2"], fused["w3"], fused["b3"])
    return out[:, :N_CLS], out[:, N_CLS:]


def init_params(key):
    """Deterministic parameter init (shapes from the nn.Module __init__)."""
    ks = jax.random.split(key, 8)

    def lin(k, fan_in, fan_out):
        # PyTorch Linear stores (out, in); we keep W.T = (in, out) so the
        # kernel computes x @ W + b.
        bound = 1.0 / jnp.sqrt(fan_in)
        w = jax.random.uniform(k, (fan_in, fan_out), jnp.float32, -bound, bound)
        b = jax.random.uniform(jax.random.fold_in(k, 1), (1, fan_out),
                               jnp.float32, -bound, bound)
        return w, b

    w_cls, b_cls = lin(ks[0], IN_FEATURES, N_CLS)
    w1, b1 = lin(ks[1], IN_FEATURES, HID1)
    w2, b2 = lin(ks[2], HID1, HID2)
    w3, b3 = lin(ks[3], HID2, N_BB)

    return {
        # BatchNorm1d(960): affine params + running stats (eval mode).
        "bn_gamma": jnp.ones((1, IN_FEATURES), jnp.float32),
        "bn_beta": jnp.zeros((1, IN_FEATURES), jnp.float32),
        "bn_mean": 0.1 * jax.random.normal(ks[4], (1, IN_FEATURES), jnp.float32),
        "bn_var": jnp.ones((1, IN_FEATURES), jnp.float32)
                  + 0.05 * jax.random.uniform(ks[5], (1, IN_FEATURES)),
        "w_cls": w_cls, "b_cls": b_cls,
        "w1": w1, "b1": b1,
        "w2": w2, "b2": b2,
        "w3": w3, "b3": b3,
    }


def _reference(features_nhwc, params):
    """Pure-JAX reference of the same heads (unfused params), for sanity."""
    pooled = jnp.mean(features_nhwc, axis=(1, 2))                 # (B, C)
    normed = (pooled - params["bn_mean"]) * jax.lax.rsqrt(
        params["bn_var"] + BN_EPS) * params["bn_gamma"] + params["bn_beta"]
    cls = normed @ params["w_cls"] + params["b_cls"]
    h = pooled @ params["w1"] + params["b1"]
    h = jnp.where(h > 0, h, LEAKY_SLOPE * h)
    h = h @ params["w2"] + params["b2"]
    h = jnp.where(h > 0, h, LEAKY_SLOPE * h)
    bb = jax.nn.sigmoid(h @ params["w3"] + params["b3"])
    return cls, bb


if __name__ == "__main__":
    key = jax.random.PRNGKey(0)
    k_x, k_p = jax.random.split(key)

    # A 960-channel channels-last feature map (what mobilenet.features emits
    # for a 224x224 image): batch=16, spatial=7x7, bf16 to halve HBM traffic
    # on the only HBM-bound tensor.  Batch tile resolves to 8 -> grid=(2,)
    # with the batch axis parallel (both TensorCores on v7x).
    B, H, W = 16, 7, 7
    x = jax.random.normal(k_x, (B, H, W, IN_FEATURES), jnp.float32)
    x_bf16 = x.astype(jnp.bfloat16)

    params = init_params(k_p)
    fused = fuse_params(params)

    cls_out, bb_out = basic_model_heads(x_bf16, fused)
    jax.block_until_ready((cls_out, bb_out))

    # Reference consumes the same bf16-quantized features upcast to f32, so
    # the only differences are f32 reduction order / MXU rounding.
    cls_ref, bb_ref = _reference(x_bf16.astype(jnp.float32), params)
    assert cls_out.shape == (B, N_CLS) and bb_out.shape == (B, N_BB)
    assert jnp.allclose(cls_out, cls_ref, atol=2e-4, rtol=2e-4)
    assert jnp.allclose(bb_out, bb_ref, atol=2e-4, rtol=2e-4)

    print("KERNEL_OK")
</pallas_src>

<mosaic_0001>
module attributes {stable_mosaic.version = 11 : i64} {
  func.func @_heads_kernel(%arg0: i32, %arg1: memref<8x49x960xbf16, #tpu.memory_space<vmem>>, %arg2: memref<960x260xf32, #tpu.memory_space<vmem>>, %arg3: memref<1x260xf32, #tpu.memory_space<vmem>>, %arg4: memref<256x128xf32, #tpu.memory_space<vmem>>, %arg5: memref<1x128xf32, #tpu.memory_space<vmem>>, %arg6: memref<128x4xf32, #tpu.memory_space<vmem>>, %arg7: memref<1x4xf32, #tpu.memory_space<vmem>>, %arg8: memref<8x8xf32, #tpu.memory_space<vmem>>) attributes {dimension_semantics = [#tpu.dimension_semantics<parallel>], iteration_bounds = array<i64: 2>, scalar_prefetch = 0 : i64, scratch_operands = 0 : i64, tpu.core_type = #tpu.core_type<tc>, window_params = [{transform_indices = @transform_0, window_bounds = array<i64: 8, 49, 960>}, {pipeline_mode = #tpu.pipeline_mode<synchronous>, transform_indices = @transform_1, window_bounds = array<i64: 960, 260>}, {pipeline_mode = #tpu.pipeline_mode<synchronous>, transform_indices = @transform_2, window_bounds = array<i64: 1, 260>}, {pipeline_mode = #tpu.pipeline_mode<synchronous>, transform_indices = @transform_3, window_bounds = array<i64: 256, 128>}, {pipeline_mode = #tpu.pipeline_mode<synchronous>, transform_indices = @transform_4, window_bounds = array<i64: 1, 128>}, {pipeline_mode = #tpu.pipeline_mode<synchronous>, transform_indices = @transform_5, window_bounds = array<i64: 128, 4>}, {pipeline_mode = #tpu.pipeline_mode<synchronous>, transform_indices = @transform_6, window_bounds = array<i64: 1, 4>}, {transform_indices = @transform_7, window_bounds = array<i64: 8, 8>}]} {
    %c0 = arith.constant 0 : index
    %c0_0 = arith.constant 0 : index
    %c0_1 = arith.constant 0 : index
    %0 = vector.load %arg1[%c0, %c0_0, %c0_1] : memref<8x49x960xbf16, #tpu.memory_space<vmem>>, vector<8x49x960xbf16>
    %1 = arith.extf %0 : vector<8x49x960xbf16> to vector<8x49x960xf32>
    %cst = arith.constant dense<0.000000e+00> : vector<8x960xf32>
    %2 = vector.multi_reduction <add>, %1, %cst [1] : vector<8x49x960xf32> to vector<8x960xf32>
    %cst_2 = arith.constant 4.900000e+01 : f32
    %3 = vector.broadcast %cst_2 : f32 to vector<8x960xf32>
    %4 = arith.divf %2, %3 : vector<8x960xf32>
    %c0_3 = arith.constant 0 : index
    %c0_4 = arith.constant 0 : index
    %5 = vector.load %arg2[%c0_3, %c0_4] : memref<960x260xf32, #tpu.memory_space<vmem>>, vector<960x260xf32>
    %cst_5 = arith.constant dense<0.000000e+00> : vector<8x260xf32>
    %6 = tpu.matmul %4, %5, %cst_5 {dimension_numbers = #tpu.dot_dimension_numbers<[1], [0], [0], [1], [0, 0, 1, 1], [], []>} : vector<8x960xf32>, vector<960x260xf32>, vector<8x260xf32> -> vector<8x260xf32>
    %c0_6 = arith.constant 0 : index
    %c0_7 = arith.constant 0 : index
    %7 = vector.load %arg3[%c0_6, %c0_7] : memref<1x260xf32, #tpu.memory_space<vmem>>, vector<1x260xf32>
    %8 = vector.broadcast %7 : vector<1x260xf32> to vector<8x260xf32>
    %9 = arith.addf %6, %8 : vector<8x260xf32>
    %10 = vector.extract_strided_slice %9 {offsets = [0, 256], sizes = [8, 4], strides = [1, 1]} : vector<8x260xf32> to vector<8x4xf32>
    %11 = vector.extract_strided_slice %9 {offsets = [0, 0], sizes = [8, 256], strides = [1, 1]} : vector<8x260xf32> to vector<8x256xf32>
    %cst_8 = arith.constant 0.000000e+00 : f32
    %12 = vector.broadcast %cst_8 : f32 to vector<8x256xf32>
    %13 = arith.cmpf ogt, %11, %12 : vector<8x256xf32>
    %cst_9 = arith.constant 0.00999999977 : f32
    %14 = vector.broadcast %cst_9 : f32 to vector<8x256xf32>
    %15 = arith.mulf %14, %11 : vector<8x256xf32>
    %16 = arith.select %13, %11, %15 : vector<8x256xi1>, vector<8x256xf32>
    %c0_10 = arith.constant 0 : index
    %c0_11 = arith.constant 0 : index
    %17 = vector.load %arg4[%c0_10, %c0_11] : memref<256x128xf32, #tpu.memory_space<vmem>>, vector<256x128xf32>
    %cst_12 = arith.constant dense<0.000000e+00> : vector<8x128xf32>
    %18 = tpu.matmul %16, %17, %cst_12 {dimension_numbers = #tpu.dot_dimension_numbers<[1], [0], [0], [1], [0, 0, 1, 1], [], []>} : vector<8x256xf32>, vector<256x128xf32>, vector<8x128xf32> -> vector<8x128xf32>
    %c0_13 = arith.constant 0 : index
    %c0_14 = arith.constant 0 : index
    %19 = vector.load %arg5[%c0_13, %c0_14] : memref<1x128xf32, #tpu.memory_space<vmem>>, vector<1x128xf32>
    %20 = vector.broadcast %19 : vector<1x128xf32> to vector<8x128xf32>
    %21 = arith.addf %18, %20 : vector<8x128xf32>
    %cst_15 = arith.constant 0.000000e+00 : f32
    %22 = vector.broadcast %cst_15 : f32 to vector<8x128xf32>
    %23 = arith.cmpf ogt, %21, %22 : vector<8x128xf32>
    %cst_16 = arith.constant 0.00999999977 : f32
    %24 = vector.broadcast %cst_16 : f32 to vector<8x128xf32>
    %25 = arith.mulf %24, %21 : vector<8x128xf32>
    %26 = arith.select %23, %21, %25 : vector<8x128xi1>, vector<8x128xf32>
    %c0_17 = arith.constant 0 : index
    %c0_18 = arith.constant 0 : index
    %27 = vector.load %arg6[%c0_17, %c0_18] : memref<128x4xf32, #tpu.memory_space<vmem>>, vector<128x4xf32>
    %cst_19 = arith.constant dense<0.000000e+00> : vector<8x4xf32>
    %28 = tpu.matmul %26, %27, %cst_19 {dimension_numbers = #tpu.dot_dimension_numbers<[1], [0], [0], [1], [0, 0, 1, 1], [], []>} : vector<8x128xf32>, vector<128x4xf32>, vector<8x4xf32> -> vector<8x4xf32>
    %c0_20 = arith.constant 0 : index
    %c0_21 = arith.constant 0 : index
    %29 = vector.load %arg7[%c0_20, %c0_21] : memref<1x4xf32, #tpu.memory_space<vmem>>, vector<1x4xf32>
    %30 = vector.broadcast %29 : vector<1x4xf32> to vector<8x4xf32>
    %31 = arith.addf %28, %30 : vector<8x4xf32>
    %32 = arith.negf %31 : vector<8x4xf32>
    %33 = math.exp %32 : vector<8x4xf32>
    %cst_22 = arith.constant 1.000000e+00 : f32
    %34 = vector.broadcast %cst_22 : f32 to vector<8x4xf32>
    %35 = arith.addf %34, %33 : vector<8x4xf32>
    %36 = arith.divf %34, %35 : vector<8x4xf32>
    %37 = tpu.concatenate %10, %36 in 1 : vector<8x4xf32>, vector<8x4xf32> -> vector<8x8xf32>
    %c0_23 = arith.constant 0 : index
    %c0_24 = arith.constant 0 : index
    %38 = vector.load %arg8[%c0_23, %c0_24] : memref<8x8xf32, #tpu.memory_space<vmem>>, vector<8x8xf32>
    tpu.vector_store %arg8[%c0_23, %c0_24], %37 {strides = array<i32>} : memref<8x8xf32, #tpu.memory_space<vmem>>, vector<8x8xf32>,
    return
  }
  func.func @transform_0(%arg0: i32) -> (i32, i32, i32) {
    %c0_i32 = arith.constant 0 : i32
    %c0_i32_0 = arith.constant 0 : i32
    %c0_i32_1 = arith.constant 0 : i32
    return %arg0, %c0_i32, %c0_i32_0 : i32, i32, i32
  }
  func.func @transform_1(%arg0: i32) -> (i32, i32) {
    %c0_i32 = arith.constant 0 : i32
    %c0_i32_0 = arith.constant 0 : i32
    %c0_i32_1 = arith.constant 0 : i32
    return %c0_i32, %c0_i32_0 : i32, i32
  }
  func.func @transform_2(%arg0: i32) -> (i32, i32) {
    %c0_i32 = arith.constant 0 : i32
    %c0_i32_0 = arith.constant 0 : i32
    %c0_i32_1 = arith.constant 0 : i32
    return %c0_i32, %c0_i32_0 : i32, i32
  }
  func.func @transform_3(%arg0: i32) -> (i32, i32) {
    %c0_i32 = arith.constant 0 : i32
    %c0_i32_0 = arith.constant 0 : i32
    %c0_i32_1 = arith.constant 0 : i32
    return %c0_i32, %c0_i32_0 : i32, i32
  }
  func.func @transform_4(%arg0: i32) -> (i32, i32) {
    %c0_i32 = arith.constant 0 : i32
    %c0_i32_0 = arith.constant 0 : i32
    %c0_i32_1 = arith.constant 0 : i32
    return %c0_i32, %c0_i32_0 : i32, i32
  }
  func.func @transform_5(%arg0: i32) -> (i32, i32) {
    %c0_i32 = arith.constant 0 : i32
    %c0_i32_0 = arith.constant 0 : i32
    %c0_i32_1 = arith.constant 0 : i32
    return %c0_i32, %c0_i32_0 : i32, i32
  }
  func.func @transform_6(%arg0: i32) -> (i32, i32) {
    %c0_i32 = arith.constant 0 : i32
    %c0_i32_0 = arith.constant 0 : i32
    %c0_i32_1 = arith.constant 0 : i32
    return %c0_i32, %c0_i32_0 : i32, i32
  }
  func.func @transform_7(%arg0: i32) -> (i32, i32) {
    %c0_i32 = arith.constant 0 : i32
    %c0_i32_0 = arith.constant 0 : i32
    return %arg0, %c0_i32 : i32, i32
  }
}

</mosaic_0001>

<bundles_post_ra>
// kernel: tpu_custom_call.1
= control target key start
LH: loop header
LB: loop body
LE: loop exit
PB: predicated region body
PF: predicated region fallthrough
CT: control target
= control target key end

     0   :  { %s3969_s24 = smov 0   ;;  %s8278_s0 = inlined_call_operand.vmem [shape: bf16[16,49,960], index: 0, kind: input, shape index: {}]   ;;  %s8279_s1 = inlined_call_operand.vmem [shape: f32[960,260], index: 1, kind: input, shape index: {}]   ;;  %s8280_s2 = inlined_call_operand.vmem [shape: f32[1,260], index: 2, kind: input, shape index: {}]   ;;  %s8281_s3 = inlined_call_operand.vmem [shape: f32[256,128], index: 3, kind: input, shape index: {}]   ;;  %s8282_s4 = inlined_call_operand.vmem [shape: f32[1,128], index: 4, kind: input, shape index: {}]   ;;  %s8283_s5 = inlined_call_operand.vmem [shape: f32[128,4], index: 5, kind: input, shape index: {}]   ;;  %s8284_s6 = inlined_call_operand.vmem [shape: f32[1,4], index: 6, kind: input, shape index: {}]   ;;  %s8285_s7 = inlined_call_operand.vmem [shape: f32[16,8], index: 7, kind: output, shape index: {}]  }
   0x1 LB: > { %s3975_s25 = sadd.s32 4294967295, %s3923_s24   ;;  %p3261_p0 = scmp.ge.s32.totalorder %s3923_s24, 1  ;;  %s3923_s24 = sphi %s3969_s24, %s17_s24  }
   0x2   : > { %p239_p1 = scmp.lt.s32.totalorder %s3923_s24, 3 }
   0x4   : > { %p240_p2 = pnand %p3261_p0, %p239_p1 }
   0x6   : > { %243 = sbr.rel (%p240_p2) target bundleno = 1451 (0x5ab), region = 48 }
   0xd   : > { %v1903_v0 = vld [vmem:[%s8279_s1 + $0x8] sm:$0xff]  ;;  %v1906_v1 = vld [vmem:[%s8279_s1 + $0x20] sm:$0xff]  ;;  %v1905_v4 = vld [vmem:[%s8279_s1 + $0x18] sm:$0xff]  ;;  %s3262_s23 = sshll.u32 %s3975_s25, 3  ;;  %vm959_vm0 = vcmask 1040384   ;;  %vm2343_vm1 = vcmask 1041409  }
   0xe   : > { %v1902_v2 = vld [vmem:[%s8279_s1] sm:$0xff]  ;;  %v3464_v3 = vpack.c.bf16 %v1906_v1, %v1903_v0  ;;  %v1909_v5 = vld [vmem:[%s8279_s1 + $0x38] sm:$0xff]  ;;  %v1912_v6 = vld [vmem:[%s8279_s1 + $0x50] sm:$0xff]  ;;  %p272_p3 = scmp.lt.s32.totalorder %s3262_s23, 15  ;;  %vm2345_vm2 = vcmask 1042434   ;;  %vm2347_vm3 = vcmask 1043459  }
   0xf   : > { %v3466_v7 = vpack.c.bf16 %v1905_v4, %v1902_v2  ;;  %v3468_v8 = vpack.c.bf16 %v1912_v6, %v1909_v5  ;;  %v1908_v9 = vld [vmem:[%s8279_s1 + $0x30] sm:$0xff]  ;;  %v1911_v10 = vld [vmem:[%s8279_s1 + $0x48] sm:$0xff]  ;;  %v1918_v12 = vld [vmem:[%s8279_s1 + $0x80] sm:$0xff]  ;;  %vm2349_vm4 = vcmask 1044484   ;;  %vm2351_vm5 = vcmask 1045509   ;;  %s3928_s17 = smov 4  }
  0x10   : > { %v1915_v11 = vld [vmem:[%s8279_s1 + $0x68] sm:$0xff]  ;;  %3465 = vmatprep.subr.bf16.mxu0 %v3464_v3  ;;  %v3470_v13 = vpack.c.bf16 %v1911_v10, %v1908_v9  ;;  %v1914_v15 = vld [vmem:[%s8279_s1 + $0x60] sm:$0xff]  ;;  %v1917_v16 = vld [vmem:[%s8279_s1 + $0x78] sm:$0xff]  ;;  %s9636_s23 = smov (!%p272_p3, %s3262_s23), 15  ;;  %vm2353_vm6 = vcmask 1046534   ;;  %vm2355_vm7 = vcmask 1047559  }
  0x11   : > { %3467 = vmatpush1.bf16.msra.mxu0 %v3466_v7  ;;  %v3472_v14 = vpack.c.bf16 %v1918_v12, %v1915_v11  ;;  %v1921_v17 = vld [vmem:[%s8279_s1 + $0x98] sm:$0xff]  ;;  %v1924_v18 = vld [vmem:[%s8279_s1 + $0xb0] sm:$0xff]  ;;  %v3474_v19 = vpack.c.bf16 %v1917_v16, %v1914_v15  ;;  %v1923_v22 = vld [vmem:[%s8279_s1 + $0xa8] sm:$0xff]  ;;  %s3900_s13 = smul.u32 224, %s9636_s23  ;;  %vm1046_vm8 = vcmask 523264   ;;  %vm1058_vm9 = vcmask 516096  }
  0x12   : > { %3469 = vmatprep.subr.bf16.mxu0 %v3468_v8  ;;  %v3476_v20 = vpack.c.bf16 %v1924_v18, %v1921_v17  ;;  %v1920_v21 = vld [vmem:[%s8279_s1 + $0x90] sm:$0xff]  ;;  %v1927_v23 = vld [vmem:[%s8279_s1 + $0xc8] sm:$0xff]  ;;  %v1930_v24 = vld [vmem:[%s8279_s1 + $0xe0] sm:$0xff]  ;;  %vm3926_vm12 = vmmov 0   ;;  %p278_p4 = scmp.lt.s32.totalorder %s3975_s25, 1  ;;  %vm3200_vm14 = vcmask 31744  }
  0x13   : > { %v4039_v25 = vld [vmem:[%s8279_s1 + $0xc0] sm:$0xff]  ;;  %v4044_v26 = vld [vmem:[%s8279_s1 + $0xd8] sm:$0xff]  ;;  %v4054_v28 = vld [vmem:[%s8279_s1 + $0x110] sm:$0xff]  ;;  %v3478_v29 = vpack.c.bf16 %v1923_v22, %v1920_v21  ;;  %v3480_v38 = vpack.c.bf16 %v1930_v24, %v1927_v23  ;;  %s4255_s23 = scalar_lea.vmem %s8278_s0, %s3900_s13  ;;  %vm3202_vm15 = vcmask 64512  }
  0x14   : > { %v4049_v27 = vld [vmem:[%s8279_s1 + $0xf8] sm:$0xff]  ;;  %v4059_v30 = vld [vmem:[%s8279_s1 + $0xf0] sm:$0xff]  ;;  %v4064_v31 = vld [vmem:[%s8279_s1 + $0x108] sm:$0xff]  ;;  %v3482_v57 = vpack.c.bf16 %v4044_v26, %v4039_v25  ;;  %s9638_s25 = smov (!%p278_p4, %s3975_s25), 1 }
  0x15   : > { %3471 = vmatpush1.bf16.msra.mxu0 %v3470_v13  ;;  %v4069_v32 = vld [vmem:[%s8279_s1 + $0x128] sm:$0xff]  ;;  %v4074_v33 = vld [vmem:[%s8279_s1 + $0x140] sm:$0xff]  ;;  %v4084_v35 = vld [vmem:[%s8279_s1 + $0x138] sm:$0xff]  ;;  %v3484_v58 = vpack.c.bf16 %v4054_v28, %v4049_v27  ;;  %v3486_v62 = vpack.c.bf16 %v4064_v31, %v4059_v30  ;;  %s3264_s18 = sshll.u32 %s9638_s25, 3 }
  0x16   : > { %3473 = vmatprep.subr.bf16.mxu0 %v3472_v14  ;;  %v4079_v34 = vld [vmem:[%s8279_s1 + $0x120] sm:$0xff]  ;;  %v4089_v36 = vld [vmem:[%s8279_s1 + $0x158] sm:$0xff]  ;;  %v4094_v37 = vld [vmem:[%s8279_s1 + $0x170] sm:$0xff]  ;;  %v3488_v63 = vpack.c.bf16 %v4074_v33, %v4069_v32  ;;  %s281_s21 = scalar_lea.vmem %s8285_s7, %s3264_s18 }
  0x17   : > { %v4099_v39 = vld [vmem:[%s8279_s1 + $0x150] sm:$0xff]  ;;  %v4104_v40 = vld [vmem:[%s8279_s1 + $0x168] sm:$0xff]  ;;  %v4114_v42 = vld [vmem:[%s8279_s1 + $0x1a0] sm:$0xff] }
  0x18   : > { %v4109_v41 = vld [vmem:[%s8279_s1 + $0x188] sm:$0xff]  ;;  %v4119_v43 = vld [vmem:[%s8279_s1 + $0x180] sm:$0xff]  ;;  %v4124_v44 = vld [vmem:[%s8279_s1 + $0x198] sm:$0xff] }
  0x19   : > { %3475 = vmatpush1.bf16.msra.mxu0 %v3474_v19  ;;  %v4129_v45 = vld [vmem:[%s8279_s1 + $0x1b8] sm:$0xff]  ;;  %v4134_v46 = vld [vmem:[%s8279_s1 + $0x1d0] sm:$0xff]  ;;  %v4144_v48 = vld [vmem:[%s8279_s1 + $0x1c8] sm:$0xff] }
  0x1a   : > { %3477 = vmatprep.subr.bf16.mxu0 %v3476_v20  ;;  %v4139_v47 = vld [vmem:[%s8279_s1 + $0x1b0] sm:$0xff]  ;;  %v4149_v49 = vld [vmem:[%s8279_s1 + $0x1e8] sm:$0xff]  ;;  %v4154_v50 = vld [vmem:[%s8279_s1 + $0x200] sm:$0xff] }
  0x1b   : > { %v4159_v51 = vld [vmem:[%s8279_s1 + $0x1e0] sm:$0xff]  ;;  %v4164_v52 = vld [vmem:[%s8279_s1 + $0x1f8] sm:$0xff]  ;;  %v4175_v54 = vld [vmem:[%s8279_s1 + $0x230] sm:$0xff] }
  0x1c   : > { %v4169_v53 = vld [vmem:[%s8279_s1 + $0x218] sm:$0xff]  ;;  %v4180_v55 = vld [vmem:[%s8279_s1 + $0x210] sm:$0xff]  ;;  %v4185_v56 = vld [vmem:[%s8279_s1 + $0x228] sm:$0xff] }
  0x1d   : > { %3479 = vmatpush1.bf16.msra.mxu0 %v3478_v29  ;;  %v4194_v59 = vld [vmem:[%s8279_s1 + $0x248] sm:$0xff]  ;;  %v4199_v60 = vld [vmem:[%s8279_s1 + $0x260] sm:$0xff]  ;;  %v4217_v2 = vld [vmem:[%s8279_s1 + $0x258] sm:$0xff] }
  0x1e   : > { %v4204_v61 = vld [vmem:[%s8279_s1 + $0x240] sm:$0xff]  ;;  %3481 = vmatprep.subr.bf16.mxu0 %v3480_v38  ;;  %8649 = vst [vmem:[#allocation3_spill] sm:$0xff] %v4217_v2  ;;  %v4222_v3 = vld [vmem:[%s8279_s1 + $0x278] sm:$0xff]  ;;  %v4227_v4 = vld [vmem:[%s8279_s1 + $0x290] sm:$0xff] }
  0x1f   : > { %8648 = vst [vmem:[#allocation2_spill] sm:$0xff] %v4204_v61  ;;  %8650 = vst [vmem:[#allocation4_spill] sm:$0xff] %v4222_v3  ;;  %v4240_v9 = vld [vmem:[%s8279_s1 + $0x270] sm:$0xff]  ;;  %v4245_v10 = vld [vmem:[%s8279_s1 + $0x288] sm:$0xff] }
  0x20   : > { %8651 = vst [vmem:[#allocation5_spill] sm:$0xff] %v4227_v4  ;;  %8652 = vst [vmem:[#allocation6_spill] sm:$0xff] %v4240_v9  ;;  %v4250_v11 = vld [vmem:[%s8279_s1 + $0x2a8] sm:$0xff]  ;;  %v4268_v16 = vld [vmem:[%s8279_s1 + $0x2c0] sm:$0xff] }
  0x21   : > { %8653 = vst [vmem:[#allocation7_spill] sm:$0xff] %v4245_v10  ;;  %8654 = vst [vmem:[#allocation8_spill] sm:$0xff] %v4250_v11  ;;  %v4273_v17 = vld [vmem:[%s8279_s1 + $0x2a0] sm:$0xff]  ;;  %v4278_v18 = vld [vmem:[%s8279_s1 + $0x2b8] sm:$0xff]  ;;  %3483 = vmatpush1.bf16.msra.mxu0 %v3482_v57 }
  0x22   : > { %8655 = vst [vmem:[#allocation9_spill] sm:$0xff] %v4268_v16  ;;  %8656 = vst [vmem:[#allocation10_spill] sm:$0xff] %v4273_v17  ;;  %v4291_v23 = vld [vmem:[%s8279_s1 + $0x2d8] sm:$0xff]  ;;  %v4296_v24 = vld [vmem:[%s8279_s1 + $0x2f0] sm:$0xff]  ;;  %3485 = vmatprep.subr.bf16.mxu0 %v3484_v58 }
  0x23   : > { %8657 = vst [vmem:[#allocation11_spill] sm:$0xff] %v4278_v18  ;;  %8658 = vst [vmem:[#allocation12_spill] sm:$0xff] %v4291_v23  ;;  %v4301_v25 = vld [vmem:[%s8279_s1 + $0x2d0] sm:$0xff]  ;;  %v4314_v30 = vld [vmem:[%s8279_s1 + $0x2e8] sm:$0xff] }
  0x24   : > { %8659 = vst [vmem:[#allocation13_spill] sm:$0xff] %v4296_v24  ;;  %8660 = vst [vmem:[#allocation14_spill] sm:$0xff] %v4301_v25  ;;  %v4317_v31 = vld [vmem:[%s4255_s23] sm:$0xff] }
  0x25   : > { %8661 = vst [vmem:[#allocation15_spill] sm:$0xff] %v4314_v30  ;;  %8662 = vst [vmem:[#allocation16_spill] sm:$0xff] %v4317_v31  ;;  %v4320_v32 = vld [vmem:[%s4255_s23 + $0x20] sm:$0xff]  ;;  %v507_v29 = vunpack.c.h.bf16 %v4317_v31  ;;  %3487 = vmatpush1.bf16.msra.mxu0 %v3486_v62 }
  0x26   : > { %8663 = vst [vmem:[#allocation17_spill] sm:$0xff] %v4320_v32  ;;  %v4325_v38 = vld [vmem:[%s4255_s23 + $0x40] sm:$0xff]  ;;  %v515_v28 = vunpack.c.h.bf16 %v4320_v32  ;;  %3489 = vmatprep.subr.bf16.mxu0 %v3488_v63 }
  0x27   : > { %8664 = vst [vmem:[#allocation18_spill] sm:$0xff] %v4325_v38  ;;  %v4328_v57 = vld [vmem:[%s4255_s23 + $0x60] sm:$0xff]  ;;  %v523_v21 = vunpack.c.h.bf16 %v4325_v38 }
  0x28   : > { %8665 = vst [vmem:[#allocation19_spill] sm:$0xff] %v4328_v57  ;;  %v4331_v58 = vld [vmem:[%s4255_s23 + $0x80] sm:$0xff]  ;;  %v531_v20 = vunpack.c.h.bf16 %v4328_v57  ;;  %v968_v6 = vadd.f32 %v515_v28, %v507_v29 }
  0x29   : > { %8666 = vst [vmem:[#allocation20_spill] sm:$0xff] %v4331_v58  ;;  %v4337_v26 = vld [vmem:[%s4255_s23 + $0xa0] sm:$0xff]  ;;  %v539_v19 = vunpack.c.h.bf16 %v4331_v58 }
  0x2a   : > { %8667 = vst [vmem:[#allocation21_spill] sm:$0xff] %v4337_v26  ;;  %v4340_v22 = vld [vmem:[%s4255_s23 + $0xc0] sm:$0x11] }
  0x2b   : > { %8668 = vst [vmem:[#allocation22_spill] sm:$0xff] %v4340_v22  ;;  %v4343_v33 = vld [vmem:[%s4255_s23 + $0xe0] sm:$0xff]  ;;  %v555_v8 = vunpack.c.h.bf16 %v4340_v22 }
  0x2c   : > { %8669 = vst [vmem:[#allocation23_spill] sm:$0xff] %v4343_v33  ;;  %v4350_v27 = vld [vmem:[%s4255_s23 + $0x100] sm:$0xff]  ;;  %v563_v7 = vunpack.c.h.bf16 %v4343_v33 }
  0x2d   : > { %8670 = vst [vmem:[#allocation24_spill] sm:$0xff] %v4350_v27  ;;  %v4353_v14 = vld [vmem:[%s4255_s23 + $0x120] sm:$0xff]  ;;  %v571_v1 = vunpack.c.h.bf16 %v4350_v27  ;;  %v973_v25 = vsel %vm959_vm0, %v555_v8, 0.0 }
  0x2e   : > { %8671 = vst [vmem:[#allocation25_spill] sm:$0xff] %v4353_v14  ;;  %v4356_v13 = vld [vmem:[%s4255_s23 + $0x140] sm:$0xff]  ;;  %v579_v0 = vunpack.c.h.bf16 %v4353_v14  ;;  %v969_v14 = vadd.f32 %v968_v6, %v523_v21  ;;  %v8676_v6 = vpack.c.bf16 %v4084_v35, %v4079_v34  ;;  %v8679_v34 = vpack.c.bf16 %v4094_v37, %v4089_v36 }
  0x2f   : > { %8672 = vst [vmem:[#allocation26_spill] sm:$0xff] %v4356_v13  ;;  %v4362_v62 = vld [vmem:[%s4255_s23 + $0x160] sm:$0xff]  ;;  %v587_v12 = vunpack.c.h.bf16 %v4356_v13  ;;  %v8681_v13 = vpack.c.bf16 %v4104_v40, %v4099_v39  ;;  %v8685_v39 = vpack.c.bf16 %v4114_v42, %v4109_v41 }
  0x30   : > { %8673 = vst [vmem:[#allocation27_spill] sm:$0xff] %v4362_v62  ;;  %v4365_v15 = vld [vmem:[%s4255_s23 + $0x180] sm:$0xff]  ;;  %3491 = vmatpush1.bf16.msra.mxu0 %v8676_v6  ;;  %v970_v8 = vadd.f32 %v969_v14, %v531_v20  ;;  %v1080_v14 = vadd.f32 %v571_v1, %v563_v7 }
  0x31   : > { %8674 = vst [vmem:[#allocation28_spill] sm:$0xff] %v4365_v15  ;;  %v4368_v5 = vld [vmem:[%s4255_s23 + $0x1a0] sm:$0x11]  ;;  %3493 = vmatprep.subr.bf16.mxu0 %v8679_v34 }
  0x32   : > { %8675 = vst [vmem:[#allocation29_spill] sm:$0xff] %v4368_v5  ;;  %v4375_v28 = vld [vmem:[%s4255_s23 + $0x1c0] sm:$0xff]  ;;  %v971_v18 = vadd.f32 %v970_v8, %v539_v19  ;;  %v1081_v11 = vadd.f32 %v1080_v14, %v579_v0  ;;  %v8684_v0 = vunpack.c.h.bf16 %v4337_v26 }
  0x33   : > { %v4378_v63 = vld [vmem:[%s4255_s23 + $0x1e0] sm:$0xff] }
  0x34   : > { %v4381_v29 = vld [vmem:[%s4255_s23 + $0x200] sm:$0xff]  ;;  %3495 = vmatpush1.bf16.msra.mxu0 %v8681_v13  ;;  %v972_v14 = vadd.f32 %v971_v18, %v8684_v0  ;;  %v1082_v18 = vadd.f32 %v1081_v11, %v587_v12 }
  0x35   : > { %v4387_v27 = vld [vmem:[%s4255_s23 + $0x220] sm:$0xff]  ;;  %3497 = vmatprep.subr.bf16.mxu0 %v8685_v39 }
  0x36   : > { %v4390_v32 = vld [vmem:[%s4255_s23 + $0x240] sm:$0xff]  ;;  %v974_v58 = vadd.f32 %v973_v25, %v972_v14  ;;  %v8693_v25 = vpack.c.bf16 %v4124_v44, %v4119_v43  ;;  %v8697_v43 = vpack.c.bf16 %v4134_v46, %v4129_v45 }
  0x37   : > { %v4393_v38 = vld [vmem:[%s4255_s23 + $0x260] sm:$0xff] }
  0x38   : > { %v4403_v21 = vld [vmem:[%s4255_s23 + $0x280] sm:$0x11]  ;;  %3499 = vmatpush1.bf16.msra.mxu0 %v8693_v25 }
  0x39   : > { %v4406_v30 = vld [vmem:[%s4255_s23 + $0x2a0] sm:$0xff]  ;;  %3501 = vmatprep.subr.bf16.mxu0 %v8697_v43 }
  0x3a   : > { %8677 = vst [vmem:[#allocation30_spill] sm:$0xff] %v4406_v30  ;;  %v4409_v24 = vld [vmem:[%s4255_s23 + $0x2c0] sm:$0xff] }
  0x3b   : > { %8678 = vst [vmem:[#allocation31_spill] sm:$0xff] %v4409_v24  ;;  %v4418_v35 = vld [vmem:[%s4255_s23 + $0x2e0] sm:$0xff] }
  0x3c   : > { %v4421_v6 = vld [vmem:[%s4255_s23 + $0x300] sm:$0xff] }
  0x3d   : > { %v4424_v33 = vld [vmem:[%s4255_s23 + $0x320] sm:$0xff] }
  0x3e   : > { %v4430_v20 = vld [vmem:[%s4255_s23 + $0x340] sm:$0xff] }
  0x3f   : > { %8680 = vst [vmem:[#allocation32_spill] sm:$0xff] %v4430_v20  ;;  %v4433_v36 = vld [vmem:[%s4255_s23 + $0x360] sm:$0x11] }
  0x40   : > { %v4436_v37 = vld [vmem:[%s4255_s23 + $0x380] sm:$0xff] }
  0x41   : > { %v4442_v23 = vld [vmem:[%s4255_s23 + $0x3a0] sm:$0xff] }
  0x42   : > { %v4445_v1 = vld [vmem:[%s4255_s23 + $0x3c0] sm:$0xff] }
  0x43   : > { %v4448_v7 = vld [vmem:[%s4255_s23 + $0x3e0] sm:$0xff] }
  0x44   : > { %v4457_v19 = vld [vmem:[%s4255_s23 + $0x400] sm:$0xff] }
  0x45   : > { %v4460_v8 = vld [vmem:[%s4255_s23 + $0x420] sm:$0xff] }
  0x46   : > { %8682 = vst [vmem:[#allocation33_spill] sm:$0xff] %v4460_v8  ;;  %v4463_v17 = vld [vmem:[%s4255_s23 + $0x440] sm:$0x11] }
  0x47   : > { %8683 = vst [vmem:[#allocation34_spill] sm:$0xff] %v4463_v17  ;;  %v4474_v40 = vld [vmem:[%s4255_s23 + $0x460] sm:$0xff]  ;;  %v779_v31 = vunpack.c.h.bf16 %v4463_v17 }
  0x48   : > { %8686 = vst [vmem:[#allocation35_spill] sm:$0xff] %v4474_v40  ;;  %v4477_v13 = vld [vmem:[%s4255_s23 + $0x480] sm:$0xff]  ;;  %v787_v39 = vunpack.c.h.bf16 %v4474_v40 }
  0x49   : > { %8687 = vst [vmem:[#allocation36_spill] sm:$0xff] %v4477_v13  ;;  %v4480_v16 = vld [vmem:[%s4255_s23 + $0x4a0] sm:$0xff]  ;;  %v795_v26 = vunpack.c.h.bf16 %v4477_v13  ;;  %v8692_v13 = vunpack.c.h.bf16 %v4362_v62  ;;  %v8701_v62 = vunpack.c.h.bf16 %v4365_v15 }
  0x4a   : > { %v4486_v0 = vld [vmem:[%s4255_s23 + $0x4c0] sm:$0xff] }
  0x4b   : > { %v4489_v41 = vld [vmem:[%s4255_s23 + $0x4e0] sm:$0xff]  ;;  %v1083_v10 = vadd.f32 %v1082_v18, %v8692_v13  ;;  %v975_v13 = vrot.slane %v974_v58, 4 }
  0x4c   : > { %v4492_v42 = vld [vmem:[%s4255_s23 + $0x500] sm:$0xff] }
  0x4d   : > { %8688 = vst [vmem:[#allocation37_spill] sm:$0xff] %v4492_v42  ;;  %v4498_v34 = vld [vmem:[%s4255_s23 + $0x520] sm:$0x11]  ;;  %v1084_v3 = vadd.f32 %v1083_v10, %v8701_v62 }
  0x4e   : > { %8689 = vst [vmem:[#allocation38_spill] sm:$0xff] %v4498_v34  ;;  %v4501_v11 = vld [vmem:[%s4255_s23 + $0x540] sm:$0xff]  ;;  %v835_v9 = vunpack.c.h.bf16 %v4498_v34 }
  0x4f   : > { %8690 = vst [vmem:[#allocation39_spill] sm:$0xff] %v4501_v11  ;;  %v4504_v12 = vld [vmem:[%s4255_s23 + $0x560] sm:$0xff]  ;;  %v843_v40 = vunpack.c.h.bf16 %v4501_v11 }
  0x50   : > { %8691 = vst [vmem:[#allocation40_spill] sm:$0xff] %v4504_v12  ;;  %v4515_v14 = vld [vmem:[%s4255_s23 + $0x580] sm:$0xff]  ;;  %v851_v17 = vunpack.c.h.bf16 %v4504_v12 }
  0x51   : > { %8694 = vst [vmem:[#allocation41_spill] sm:$0xff] %v4515_v14  ;;  %v4518_v22 = vld [vmem:[%s4255_s23 + $0x5a0] sm:$0xff]  ;;  %v859_v34 = vunpack.c.h.bf16 %v4515_v14  ;;  %v976_v14 = vadd.f32 %v975_v13, %v974_v58  ;;  %v8714_v13 = vunpack.c.h.bf16 %v4409_v24 }
  0x52   : > { %8695 = vst [vmem:[#allocation42_spill] sm:$0xff] %v4518_v22  ;;  %v4521_v57 = vld [vmem:[%s4255_s23 + $0x5c0] sm:$0xff]  ;;  %v867_v11 = vunpack.c.h.bf16 %v4518_v22 }
  0x53   : > { %8696 = vst [vmem:[#allocation43_spill] sm:$0xff] %v4521_v57  ;;  %v4530_v44 = vld [vmem:[%s4255_s23 + $0x5e0] sm:$0xff]  ;;  %v8707_v57 = vunpack.c.h.bf16 %v4368_v5 }
  0x54   : > { %8698 = vst [vmem:[#allocation44_spill] sm:$0xff] %v4530_v44  ;;  %v4533_v18 = vld [vmem:[%s4255_s23 + $0x600] sm:$0x11]  ;;  %v977_v44 = vrot.slane %v976_v14, 2 }
  0x55   : > { %8699 = vst [vmem:[#allocation45_spill] sm:$0xff] %v4533_v18  ;;  %v4536_v25 = vld [vmem:[%s4255_s23 + $0x620] sm:$0xff]  ;;  %v891_v61 = vunpack.c.h.bf16 %v4533_v18  ;;  %v1085_v4 = vsel %vm959_vm0, %v8707_v57, 0.0  ;;  %v8711_v57 = vunpack.c.h.bf16 %v4378_v63 }
  0x56   : > { %8700 = vst [vmem:[#allocation46_spill] sm:$0xff] %v4536_v25  ;;  %v4544_v45 = vld [vmem:[%s4255_s23 + $0x640] sm:$0xff]  ;;  %v899_v2 = vunpack.c.h.bf16 %v4536_v25  ;;  %v8708_v25 = vpack.c.bf16 %v4144_v48, %v4139_v47  ;;  %v8712_v47 = vunpack.c.h.bf16 %v4403_v21 }
  0x57   : > { %8702 = vst [vmem:[#allocation47_spill] sm:$0xff] %v4544_v45  ;;  %v4547_v46 = vld [vmem:[%s4255_s23 + $0x660] sm:$0xff]  ;;  %v907_v10 = vunpack.c.h.bf16 %v4544_v45  ;;  %v8710_v45 = vunpack.c.h.bf16 %v4375_v28 }
  0x58   : > { %8703 = vst [vmem:[#allocation48_spill] sm:$0xff] %v4547_v46  ;;  %v4550_v43 = vld [vmem:[%s4255_s23 + $0x680] sm:$0xff]  ;;  %v915_v62 = vunpack.c.h.bf16 %v4547_v46  ;;  %3503 = vmatpush1.bf16.msra.mxu0 %v8708_v25  ;;  %v8709_v46 = vpack.c.bf16 %v4154_v50, %v4149_v49  ;;  %v1195_v48 = vsel %vm959_vm0, %v8712_v47, 0.0  ;;  %v8713_v25 = vunpack.c.h.bf16 %v4406_v30 }
  0x59   : > { %8704 = vst [vmem:[#allocation49_spill] sm:$0xff] %v4550_v43  ;;  %v4556_v42 = vld [vmem:[%s4255_s23 + $0x6a0] sm:$0xff]  ;;  %v923_v15 = vunpack.c.h.bf16 %v4550_v43  ;;  %v1086_v43 = vadd.f32 %v1085_v4, %v1084_v3  ;;  %v1190_v5 = vadd.f32 %v8711_v57, %v8710_v45  ;;  %v8716_v50 = vunpack.c.h.bf16 %v4436_v37 }
  0x5a   : > { %v4559_v22 = vld [vmem:[%s4255_s23 + $0x6c0] sm:$0xff]  ;;  %3505 = vmatprep.subr.bf16.mxu0 %v8709_v46  ;;  %v1300_v58 = vadd.f32 %v8714_v13, %v8713_v25  ;;  %v8717_v3 = vunpack.c.h.bf16 %v4442_v23  ;;  %v1415_v45 = vsel %vm959_vm0, %v779_v31, 0.0  ;;  %v8718_v57 = vunpack.c.h.bf16 %v4381_v29 }
  0x5b   : > { %8705 = vst [vmem:[#allocation50_spill] sm:$0xff] %v4559_v22  ;;  %v4562_v12 = vld [vmem:[%s4255_s23 + $0x6e0] sm:$0x11]  ;;  %v8715_v22 = vunpack.c.h.bf16 %v4433_v36  ;;  %v1087_v46 = vrot.slane %v1086_v43, 4  ;;  %v8719_v30 = vunpack.c.h.bf16 %v4418_v35  ;;  %v1520_v13 = vadd.f32 %v795_v26, %v787_v39 }
  0x5c   : > { %8706 = vst [vmem:[#allocation51_spill] sm:$0xff] %v4562_v12  ;;  %v947_v18 = vunpack.c.h.bf16 %v4562_v12  ;;  %v978_v12 = vadd.f32 %v977_v44, %v976_v14  ;;  %v1410_v4 = vadd.f32 %v8717_v3, %v8716_v50  ;;  %v1191_v47 = vadd.f32 %v1190_v5, %v8718_v57 }
  0x5d   : > { %v1305_v49 = vsel %vm959_vm0, %v8715_v22, 0.0  ;;  %v1301_v24 = vadd.f32 %v1300_v58, %v8719_v30  ;;  %v8720_v14 = vpack.c.bf16 %v4164_v52, %v4159_v51  ;;  %v8721_v44 = vunpack.c.h.bf16 %v4445_v1 }
  0x5e   : > { %v979_v22 = vrot.slane %v978_v12, 1  ;;  %v1525_v50 = vsel %vm959_vm0, %v835_v9, 0.0  ;;  %v1630_v3 = vadd.f32 %v851_v17, %v843_v40  ;;  %v8722_v31 = vpack.c.bf16 %v4175_v54, %v4169_v53 }
  0x5f   : > { %3507 = vmatpush1.bf16.msra.mxu0 %v8720_v14  ;;  %v1411_v25 = vadd.f32 %v1410_v4, %v8721_v44  ;;  %v1088_v5 = vadd.f32 %v1087_v46, %v1086_v43  ;;  %v8723_v57 = vunpack.c.h.bf16 %v4387_v27  ;;  %v8724_v26 = vunpack.c.h.bf16 %v4421_v6 }
  0x60   : > { %3509 = vmatprep.subr.bf16.mxu0 %v8722_v31  ;;  %v8725_v51 = vunpack.c.h.bf16 %v4480_v16  ;;  %v980_v58 = vadd.f32 %v979_v22, %v978_v12  ;;  %v8726_v4 = vunpack.c.h.bf16 %v4448_v7  ;;  %v1631_v9 = vadd.f32 %v1630_v3, %v859_v34 }
  0x61   : > { %v1192_v30 = vadd.f32 %v1191_v47, %v8723_v57  ;;  %v1302_v39 = vadd.f32 %v1301_v24, %v8724_v26  ;;  %v1635_v17 = vsel %vm959_vm0, %v891_v61, 0.0  ;;  %v1089_v53 = vrot.slane %v1088_v5, 2 }
  0x62   : > { %v1521_v52 = vadd.f32 %v1520_v13, %v8725_v51  ;;  %v1412_v14 = vadd.f32 %v1411_v25, %v8726_v4  ;;  %v8727_v54 = vunpack.c.h.bf16 %v4390_v32  ;;  %v8728_v43 = vunpack.c.h.bf16 %v4424_v33 }
  0x63   : > { %v8729_v24 = vunpack.c.h.bf16 %v4486_v0  ;;  %v8730_v12 = vpack.c.bf16 %v4185_v56, %v4180_v55  ;;  %v8731_v13 = vunpack.c.h.bf16 %v4457_v19  ;;  %v1632_v22 = vadd.f32 %v1631_v9, %v867_v11  ;;  %v8739_v9 = vld [vmem:[#allocation37_spill] sm:$0xff] }
  0x64   : > { %v1193_v40 = vadd.f32 %v1192_v30, %v8727_v54  ;;  %v1303_v46 = vadd.f32 %v1302_v39, %v8728_v43  ;;  %v1740_v61 = vadd.f32 %v907_v10, %v899_v2  ;;  %v1745_v44 = vsel %vm959_vm0, %v947_v18, 0.0  ;;  %v4644_v2 = vld [vmem:[%s8279_s1 + $0x308] sm:$0xff]  ;;  %v8742_v43 = vld [vmem:[#allocation2_spill] sm:$0xff] }
  0x65   : > { %v1522_v47 = vadd.f32 %v1521_v52, %v8729_v24  ;;  %3511 = vmatpush1.bf16.msra.mxu0 %v8730_v12  ;;  %v1413_v34 = vadd.f32 %v1412_v14, %v8731_v13  ;;  %v8732_v25 = vpack.c.bf16 %v4199_v60, %v4194_v59  ;;  %v1090_v3 = vadd.f32 %v1089_v53, %v1088_v5  ;;  %v4649_v59 = vld [vmem:[%s8279_s1 + $0x320] sm:$0xff]  ;;  %v8737_v18 = vld [vmem:[#allocation43_spill] sm:$0xff] }
  0x66   : > { %v8733_v31 = vunpack.c.h.bf16 %v4393_v38  ;;  %v8734_v30 = vunpack.c.h.bf16 %v4430_v20  ;;  %v8735_v55 = vunpack.c.h.bf16 %v4489_v41  ;;  %v8736_v60 = vunpack.c.h.bf16 %v4460_v8  ;;  %v8797_v8 = vld [vmem:[#allocation17_spill] sm:$0xff] }
  0x67   : > { %3513 = vmatprep.subr.bf16.mxu0 %v8732_v25  ;;  %v8738_v10 = vunpack.c.h.bf16 %v8737_v18  ;;  %v1741_v39 = vadd.f32 %v1740_v61, %v915_v62  ;;  %v1839_v51 = vmul.f32 0.020408163, %v980_v58  ;;  %v1091_v52 = vrot.slane %v1090_v3, 1  ;;  %v8746_v62 = vld [vmem:[#allocation5_spill] sm:$0xff]  ;;  %v8747_v58 = vld [vmem:[#allocation4_spill] sm:$0xff] }
  0x68   : > { %v1194_v57 = vadd.f32 %v1193_v40, %v8733_v31  ;;  %v1304_v26 = vadd.f32 %v1303_v46, %v8734_v30  ;;  %v1523_v56 = vadd.f32 %v1522_v47, %v8735_v55  ;;  %v1414_v11 = vadd.f32 %v1413_v34, %v8736_v60  ;;  %v8741_v40 = vld [vmem:[#allocation3_spill] sm:$0xff]  ;;  %v8744_v47 = vld [vmem:[#allocation44_spill] sm:$0xff] }
  0x69   : > { %v1633_v5 = vadd.f32 %v1632_v22, %v8738_v10  ;;  %v8740_v53 = vunpack.c.h.bf16 %v8739_v9  ;;  %v8743_v46 = vpack.c.bf16 %v8741_v40, %v8742_v43  ;;  %v8745_v12 = vunpack.c.h.bf16 %v8744_v47  ;;  %v8750_v55 = vld [vmem:[#allocation19_spill] sm:$0xff] }
  0x6a   : > { %v1196_v4 = vadd.f32 %v1195_v48, %v1194_v57  ;;  %v1306_v14 = vadd.f32 %v1305_v49, %v1304_v26  ;;  %v1416_v24 = vadd.f32 %v1415_v45, %v1414_v11  ;;  %v1742_v34 = vadd.f32 %v1741_v39, %v923_v15  ;;  %v8752_v39 = vld [vmem:[#allocation6_spill] sm:$0xff] }
  0x6b   : > { %v1524_v54 = vadd.f32 %v1523_v56, %v8740_v53  ;;  %3515 = vmatpush1.bf16.msra.mxu0 %v8743_v46  ;;  %v1634_v13 = vadd.f32 %v1633_v5, %v8745_v12  ;;  %v8748_v61 = vpack.c.bf16 %v8746_v62, %v8747_v58  ;;  %v1092_v48 = vadd.f32 %v1091_v52, %v1090_v3  ;;  %v8751_v5 = vld [vmem:[#allocation7_spill] sm:$0xff]  ;;  %v8754_v52 = vld [vmem:[#allocation50_spill] sm:$0xff]  ;;  %v8757_v46 = vld [vmem:[#allocation9_spill] sm:$0xff] }
  0x6c   : > { %v1197_v49 = vrot.slane %v1196_v4, 4  ;;  %v1307_v25 = vrot.slane %v1306_v14, 4  ;;  %v1417_v57 = vrot.slane %v1416_v24, 4  ;;  %v8749_v26 = vunpack.c.h.bf16 %v4556_v42  ;;  %v8758_v12 = vld [vmem:[#allocation8_spill] sm:$0xff]  ;;  %v8778_v56 = vld [vmem:[#allocation29_spill] sm:$0xff] }
  0x6d   : > { %3517 = vmatprep.subr.bf16.mxu0 %v8748_v61  ;;  %v1526_v31 = vadd.f32 %v1525_v50, %v1524_v54  ;;  %v1636_v30 = vadd.f32 %v1635_v17, %v1634_v13  ;;  %v1847_v10 = vmul.f32 0.020408163, %v1092_v48  ;;  %v8753_v53 = vpack.c.bf16 %v8751_v5, %v8752_v39  ;;  %v8756_v17 = vld [vmem:[#allocation20_spill] sm:$0xff]  ;;  %v8760_v48 = vld [vmem:[#allocation21_spill] sm:$0xff]  ;;  %v8762_v39 = vld [vmem:[#allocation11_spill] sm:$0xff] }
  0x6e   : > { %v1743_v45 = vadd.f32 %v1742_v34, %v8749_v26  ;;  %v1198_v60 = vadd.f32 %v1197_v49, %v1196_v4  ;;  %v1308_v15 = vadd.f32 %v1307_v25, %v1306_v14  ;;  %v1418_v40 = vadd.f32 %v1417_v57, %v1416_v24  ;;  %v8771_v54 = vld [vmem:[#allocation26_spill] sm:$0xff] }
  0x6f   : > { %v1527_v11 = vrot.slane %v1526_v31, 4  ;;  %3519 = vmatpush1.bf16.msra.mxu0 %v8753_v53  ;;  %v1637_v3 = vrot.slane %v1636_v30, 4  ;;  %v8755_v43 = vunpack.c.h.bf16 %v8754_v52  ;;  %v8759_v13 = vpack.c.bf16 %v8757_v46, %v8758_v12  ;;  %v8763_v53 = vld [vmem:[#allocation10_spill] sm:$0xff]  ;;  %v8769_v12 = vld [vmem:[#allocation24_spill] sm:$0xff] }
  0x70   : > { %v1199_v4 = vrot.slane %v1198_v60, 2  ;;  %v1309_v14 = vrot.slane %v1308_v15, 2  ;;  %v2357_v62 = vsel %vm2343_vm1, %v1847_v10, %v1839_v51  ;;  %v1419_v58 = vrot.slane %v1418_v40, 2  ;;  %v8765_v51 = vld [vmem:[#allocation23_spill] sm:$0xff]  ;;  %v8767_v10 = vld [vmem:[#allocation12_spill] sm:$0xff]  ;;  %v8773_v5 = vld [vmem:[#allocation14_spill] sm:$0xff] }
  0x71   : > { %v1744_v50 = vadd.f32 %v1743_v45, %v8755_v43  ;;  %3521 = vmatprep.subr.bf16.mxu0 %v8759_v13  ;;  %v1528_v34 = vadd.f32 %v1527_v11, %v1526_v31  ;;  %v1638_v61 = vadd.f32 %v1637_v3, %v1636_v30  ;;  %v8761_v45 = vld [vmem:[#allocation22_spill] sm:$0xff]  ;;  %v8764_v43 = vpack.c.bf16 %v8762_v39, %v8763_v53  ;;  %v8770_v39 = vld [vmem:[#allocation25_spill] sm:$0xff]  ;;  %v8772_v30 = vld [vmem:[#allocation15_spill] sm:$0xff] }
  0x72   : > { %v1200_v25 = vadd.f32 %v1199_v4, %v1198_v60  ;;  %v1310_v57 = vadd.f32 %v1309_v14, %v1308_v15  ;;  %v1420_v31 = vadd.f32 %v1419_v58, %v1418_v40  ;;  %v8793_v13 = vld [vmem:[#allocation49_spill] sm:$0xff]  ;;  %v8795_v53 = vld [vmem:[#allocation16_spill] sm:$0xff] }
  0x73   : > { %v1746_v24 = vadd.f32 %v1745_v44, %v1744_v50  ;;  %v1529_v26 = vrot.slane %v1528_v34, 2  ;;  %3523 = vmatpush1.bf16.msra.mxu0 %v8764_v43  ;;  %v1639_v11 = vrot.slane %v1638_v61, 2  ;;  %v8766_v44 = vld [vmem:[#allocation13_spill] sm:$0xff] }
  0x74   : > { %v8768_v3 = vpack.c.bf16 %v8766_v44, %v8767_v10  ;;  %v1201_v60 = vrot.slane %v1200_v25, 1  ;;  %v1311_v15 = vrot.slane %v1310_v57, 1  ;;  %v1421_v4 = vrot.slane %v1420_v31, 1 }
  0x75   : > { %v1747_v46 = vrot.slane %v1746_v24, 4  ;;  %v1530_v50 = vadd.f32 %v1529_v26, %v1528_v34  ;;  %v1640_v14 = vadd.f32 %v1639_v11, %v1638_v61  ;;  %v8774_v44 = vpack.c.bf16 %v8772_v30, %v8773_v5  ;;  %v8775_v26 = vld [vmem:[#allocation27_spill] sm:$0xff] }
  0x76   : > { %3525 = vmatprep.subr.bf16.mxu0 %v8768_v3  ;;  %v1202_v40 = vadd.f32 %v1201_v60, %v1200_v25  ;;  %v1312_v58 = vadd.f32 %v1311_v15, %v1310_v57  ;;  %v1422_v10 = vadd.f32 %v1421_v4, %v1420_v31  ;;  %v8776_v25 = vpack.c.bf16 %v4649_v59, %v4644_v2  ;;  %v8777_v57 = vld [vmem:[#allocation28_spill] sm:$0xff]  ;;  %v8791_v11 = vld [vmem:[#allocation47_spill] sm:$0xff] }
  0x77   : > { %v1748_v49 = vadd.f32 %v1747_v46, %v1746_v24  ;;  %v1531_v43 = vrot.slane %v1530_v50, 1  ;;  %3527 = vmatpush1.bf16.msra.mxu0 %v8774_v44  ;;  %v1641_v3 = vrot.slane %v1640_v14, 1  ;;  %v610_v5 = vunpack.c.l.bf16 %v8778_v56 }
  0x78   : > { %v1855_v61 = vmul.f32 0.020408163, %v1202_v40  ;;  %v1863_v24 = vmul.f32 0.020408163, %v1312_v58  ;;  %3529 = vmatprep.subr.bf16.mxu0 %v8776_v25  ;;  %v1871_v15 = vmul.f32 0.020408163, %v1422_v10  ;;  %v618_v4 = vunpack.c.l.bf16 %v4375_v28 }
  0x79   : > { %v1749_v34 = vrot.slane %v1748_v49, 2  ;;  %v1532_v22 = vadd.f32 %v1531_v43, %v1530_v50  ;;  %v1642_v46 = vadd.f32 %v1641_v3, %v1640_v14  ;;  %v626_v50 = vunpack.c.l.bf16 %v4378_v63  ;;  %v8779_v63 = vld [vmem:[#allocation30_spill] sm:$0xff]  ;;  %v8780_v3 = vld [vmem:[#allocation31_spill] sm:$0xff]  ;;  %v8792_v14 = vld [vmem:[#allocation48_spill] sm:$0xff] }
  0x7a   : > { %v2358_v31 = vsel %vm2345_vm2, %v1855_v61, %v2357_v62  ;;  %v634_v2 = vunpack.c.l.bf16 %v4381_v29  ;;  %v666_v28 = vunpack.c.l.bf16 %v4403_v21  ;;  %v674_v44 = vunpack.c.l.bf16 %v8779_v63  ;;  %v8785_v63 = vld [vmem:[#allocation39_spill] sm:$0xff] }
  0x7b   : > { %v1750_v60 = vadd.f32 %v1749_v34, %v1748_v49  ;;  %v1879_v30 = vmul.f32 0.020408163, %v1532_v22  ;;  %v1887_v58 = vmul.f32 0.020408163, %v1642_v46  ;;  %v2359_v43 = vsel %vm2347_vm3, %v1863_v24, %v2358_v31  ;;  %v8790_v22 = vld [vmem:[#allocation46_spill] sm:$0xff] }
  0x7c   : > { %v2360_v59 = vsel %vm2349_vm4, %v1871_v15, %v2359_v43  ;;  %v682_v34 = vunpack.c.l.bf16 %v8780_v3  ;;  %v690_v29 = vunpack.c.l.bf16 %v4418_v35  ;;  %v698_v61 = vunpack.c.l.bf16 %v4421_v6  ;;  %v8782_v43 = vld [vmem:[#allocation35_spill] sm:$0xff]  ;;  %v8786_v3 = vld [vmem:[#allocation40_spill] sm:$0xff]  ;;  %v8802_v49 = vld [vmem:[#allocation18_spill] sm:$0xff] }
  0x7d   : > { %v1751_v40 = vrot.slane %v1750_v60, 1  ;;  %v2361_v62 = vsel %vm2351_vm5, %v1879_v30, %v2360_v59  ;;  %v706_v25 = vunpack.c.l.bf16 %v4424_v33  ;;  %v730_v15 = vunpack.c.l.bf16 %v4436_v37 }
  0x7e   : > { %v2362_v10 = vsel %vm2353_vm6, %v1887_v58, %v2361_v62  ;;  %v738_v21 = vunpack.c.l.bf16 %v4442_v23  ;;  %v746_v30 = vunpack.c.l.bf16 %v4445_v1  ;;  %v754_v31 = vunpack.c.l.bf16 %v4448_v7  ;;  %v8781_v58 = vld [vmem:[#allocation34_spill] sm:$0xff] }
  0x7f   : > { %v1752_v56 = vadd.f32 %v1751_v40, %v1750_v60  ;;  %v722_v60 = vunpack.c.l.bf16 %v4433_v36  ;;  %v762_v35 = vunpack.c.l.bf16 %v4457_v19  ;;  %v778_v33 = vunpack.c.l.bf16 %v8781_v58  ;;  %v8783_v36 = vld [vmem:[#allocation36_spill] sm:$0xff]  ;;  %v8784_v62 = vld [vmem:[#allocation38_spill] sm:$0xff]  ;;  %v8787_v58 = vld [vmem:[#allocation41_spill] sm:$0xff] }
  0x80   : > { %v786_v59 = vunpack.c.l.bf16 %v8782_v43  ;;  %v802_v37 = vunpack.c.l.bf16 %v4480_v16  ;;  %v810_v23 = vunpack.c.l.bf16 %v4486_v0  ;;  %v818_v1 = vunpack.c.l.bf16 %v4489_v41  ;;  %v8788_v43 = vld [vmem:[#allocation42_spill] sm:$0xff]  ;;  %v8789_v0 = vld [vmem:[#allocation45_spill] sm:$0xff] }
  0x81   : > { %v1895_v24 = vmul.f32 0.020408163, %v1752_v56  ;;  %v794_v56 = vunpack.c.l.bf16 %v8783_v36  ;;  %v826_v7 = vunpack.c.l.bf16 %v8739_v9  ;;  %v834_v19 = vunpack.c.l.bf16 %v8784_v62 }
  0x82   : > { %v858_v6 = vunpack.c.l.bf16 %v8787_v58  ;;  %v866_v46 = vunpack.c.l.bf16 %v8788_v43  ;;  %v874_v36 = vunpack.c.l.bf16 %v8737_v18  ;;  %v898_v41 = vunpack.c.l.bf16 %v8790_v22 }
  0x83   : > { %v2363_v40 = vsel %vm2355_vm7, %v1895_v24, %v2362_v10  ;;  %v842_v10 = vunpack.c.l.bf16 %v8785_v63  ;;  %v850_v24 = vunpack.c.l.bf16 %v8786_v3  ;;  %v906_v9 = vunpack.c.l.bf16 %v8791_v11 }
  0x84   : > { %2479 = vmatprep.mubr.f32.mxu0 %v2363_v40  ;;  %2763 = vmatprep.mubr.f32.mxu1 %v2363_v40  ;;  %v890_v40 = vunpack.c.l.bf16 %v8789_v0  ;;  %v914_v62 = vunpack.c.l.bf16 %v8792_v14  ;;  %v922_v63 = vunpack.c.l.bf16 %v8793_v13  ;;  %v930_v3 = vunpack.c.l.bf16 %v4556_v42 }
  0x85   : > { %v8796_v18 = vunpack.c.l.bf16 %v8795_v53  ;;  %v8798_v16 = vunpack.c.l.bf16 %v8797_v8  ;;  %v8799_v0 = vunpack.c.l.bf16 %v8761_v45  ;;  %v8800_v11 = vunpack.c.l.bf16 %v8765_v51 }
  0x86   : > { %v8801_v14 = vunpack.c.l.bf16 %v8769_v12  ;;  %v1072_v42 = vsel %vm959_vm0, %v610_v5, 0.0  ;;  %v1177_v20 = vadd.f32 %v626_v50, %v618_v4  ;;  %v1182_v58 = vsel %vm959_vm0, %v666_v28, 0.0 }
  0x87   : > { %v954_v47 = vadd.f32 %v8798_v16, %v8796_v18  ;;  %v960_v22 = vsel %vm959_vm0, %v8799_v0, 0.0  ;;  %v1287_v43 = vadd.f32 %v682_v34, %v674_v44  ;;  %v8803_v53 = vunpack.c.l.bf16 %v8802_v49 }
  0x88   : > { %v1067_v13 = vadd.f32 %v8801_v14, %v8800_v11  ;;  %v8804_v8 = vunpack.c.l.bf16 %v8770_v39  ;;  %v1292_v45 = vsel %vm959_vm0, %v722_v60, 0.0  ;;  %v1397_v18 = vadd.f32 %v738_v21, %v730_v15 }
  0x89   : > { %v955_v52 = vadd.f32 %v954_v47, %v8803_v53  ;;  %v1178_v0 = vadd.f32 %v1177_v20, %v634_v2  ;;  %v1288_v51 = vadd.f32 %v1287_v43, %v690_v29  ;;  %v1402_v12 = vsel %vm959_vm0, %v778_v33, 0.0 }
  0x8a   : > { %v1068_v16 = vadd.f32 %v1067_v13, %v8804_v8  ;;  %v1507_v11 = vadd.f32 %v794_v56, %v786_v59  ;;  %v8805_v5 = vunpack.c.l.bf16 %v8750_v55  ;;  %v8806_v50 = vunpack.c.l.bf16 %v8771_v54 }
  0x8b   : > { %v1398_v44 = vadd.f32 %v1397_v18, %v746_v30  ;;  %v1512_v47 = vsel %vm959_vm0, %v834_v19, 0.0  ;;  %v8807_v39 = vunpack.c.l.bf16 %v4387_v27  ;;  %v1289_v34 = vadd.f32 %v1288_v51, %v698_v61 }
  0x8c   : > { %v956_v4 = vadd.f32 %v955_v52, %v8805_v5  ;;  %v1069_v28 = vadd.f32 %v1068_v16, %v8806_v50  ;;  %v1508_v60 = vadd.f32 %v1507_v11, %v802_v37  ;;  %v1617_v15 = vadd.f32 %v850_v24, %v842_v10  ;;  %v8818_v5 = vld [vmem:[#allocation44_spill] sm:$0xff] }
  0x8d   : > { %v1179_v49 = vadd.f32 %v1178_v0, %v8807_v39  ;;  %v8808_v20 = vunpack.c.l.bf16 %v8756_v17  ;;  %v8809_v29 = vunpack.c.l.bf16 %v8775_v26  ;;  %v1399_v55 = vadd.f32 %v1398_v44, %v754_v31  ;;  %v8814_v31 = vld [vmem:[#allocation32_spill] sm:$0xff]  ;;  %v8820_v39 = vld [vmem:[#allocation50_spill] sm:$0xff] }
  0x8e   : > { %v1622_v52 = vsel %vm959_vm0, %v890_v40, 0.0  ;;  %v8810_v54 = vunpack.c.l.bf16 %v4390_v32  ;;  %v1290_v33 = vadd.f32 %v1289_v34, %v706_v25  ;;  %v1509_v59 = vadd.f32 %v1508_v60, %v810_v23  ;;  %v8816_v23 = vld [vmem:[#allocation33_spill] sm:$0xff] }
  0x8f   : > { %v957_v2 = vadd.f32 %v956_v4, %v8808_v20  ;;  %v1070_v21 = vadd.f32 %v1069_v28, %v8809_v29  ;;  %v1618_v56 = vadd.f32 %v1617_v15, %v858_v6  ;;  %v8811_v27 = vunpack.c.l.bf16 %v8760_v48  ;;  %v8822_v29 = vld [vmem:[#allocation51_spill] sm:$0xff] }
  0x90   : > { %v1180_v30 = vadd.f32 %v1179_v49, %v8810_v54  ;;  %v8812_v37 = vunpack.c.l.bf16 %v8777_v57  ;;  %v1400_v17 = vadd.f32 %v1399_v55, %v762_v35  ;;  %v1727_v10 = vadd.f32 %v906_v9, %v898_v41 }
  0x91   : > { %v958_v61 = vadd.f32 %v957_v2, %v8811_v27  ;;  %v8813_v26 = vunpack.c.l.bf16 %v4393_v38  ;;  %v8815_v43 = vunpack.c.l.bf16 %v8814_v31  ;;  %v1510_v14 = vadd.f32 %v1509_v59, %v818_v1 }
  0x92   : > { %v1071_v19 = vadd.f32 %v1070_v21, %v8812_v37  ;;  %v1619_v32 = vadd.f32 %v1618_v56, %v866_v46  ;;  %v8817_v6 = vunpack.c.l.bf16 %v8816_v23  ;;  %v1728_v48 = vadd.f32 %v1727_v10, %v914_v62  ;;  %v4802_v10 = vld [vmem:[%s8279_s1 + $0x300] sm:$0xff] }
  0x93   : > { %v1181_v24 = vadd.f32 %v1180_v30, %v8813_v26  ;;  %v1291_v40 = vadd.f32 %v1290_v33, %v8815_v43  ;;  %v961_v13 = vadd.f32 %v960_v22, %v958_v61  ;;  %v1511_v57 = vadd.f32 %v1510_v14, %v826_v7  ;;  %v4812_v14 = vld [vmem:[%s8279_s1 + $0x338] sm:$0xff] }
  0x94   : > { %v1073_v25 = vadd.f32 %v1072_v42, %v1071_v19  ;;  %v1401_v53 = vadd.f32 %v1400_v17, %v8817_v6  ;;  %v1620_v18 = vadd.f32 %v1619_v32, %v874_v36  ;;  %v1729_v38 = vadd.f32 %v1728_v48, %v922_v63  ;;  %v4817_v32 = vld [vmem:[%s8279_s1 + $0x350] sm:$0xff]  ;;  %v4827_v48 = vld [vmem:[%s8279_s1 + $0x348] sm:$0xff] }
  0x95   : > { %v1183_v8 = vadd.f32 %v1182_v58, %v1181_v24  ;;  %v1293_v16 = vadd.f32 %v1292_v45, %v1291_v40  ;;  %v962_v35 = vrot.slane %v961_v13, 4  ;;  %v1513_v11 = vadd.f32 %v1512_v47, %v1511_v57  ;;  %v4807_v40 = vld [vmem:[%s8279_s1 + $0x318] sm:$0xff] }
  0x96   : > { %v1074_v41 = vrot.slane %v1073_v25, 4  ;;  %v1403_v9 = vadd.f32 %v1402_v12, %v1401_v53  ;;  %v8819_v1 = vunpack.c.l.bf16 %v8818_v5  ;;  %v1730_v50 = vadd.f32 %v1729_v38, %v930_v3  ;;  %v4822_v53 = vld [vmem:[%s8279_s1 + $0x330] sm:$0xff]  ;;  %v4847_v38 = vld [vmem:[%s8279_s1 + $0x378] sm:$0xff] }
  0x97   : > { %v1184_v0 = vrot.slane %v1183_v8, 4  ;;  %v1294_v51 = vrot.slane %v1293_v16, 4  ;;  %v963_v22 = vadd.f32 %v962_v35, %v961_v13  ;;  %v1514_v58 = vrot.slane %v1513_v11, 4 }
  0x98   : > { %v1621_v46 = vadd.f32 %v1620_v18, %v8819_v1  ;;  %v1075_v42 = vadd.f32 %v1074_v41, %v1073_v25  ;;  %v1404_v4 = vrot.slane %v1403_v9, 4  ;;  %v8821_v12 = vunpack.c.l.bf16 %v8820_v39  ;;  %v4900_v39 = vld [vmem:[%s8279_s1 + $0x410] sm:$0xff] }
  0x99   : > { %v1185_v28 = vadd.f32 %v1184_v0, %v1183_v8  ;;  %v1295_v62 = vadd.f32 %v1294_v51, %v1293_v16  ;;  %v964_v7 = vrot.slane %v963_v22, 2  ;;  %v1515_v47 = vadd.f32 %v1514_v58, %v1513_v11  ;;  %v4832_v8 = vld [vmem:[%s8279_s1 + $0x368] sm:$0xff]  ;;  %v4837_v16 = vld [vmem:[%s8279_s1 + $0x380] sm:$0xff]  ;;  %v4852_v0 = vld [vmem:[%s8279_s1 + $0x398] sm:$0xff] }
  0x9a   : > { %v1623_v45 = vadd.f32 %v1622_v52, %v1621_v46  ;;  %v1076_v36 = vrot.slane %v1075_v42, 2  ;;  %v1405_v44 = vadd.f32 %v1404_v4, %v1403_v9  ;;  %v1731_v63 = vadd.f32 %v1730_v50, %v8821_v12  ;;  %v4842_v9 = vld [vmem:[%s8279_s1 + $0x360] sm:$0xff]  ;;  %v4857_v51 = vld [vmem:[%s8279_s1 + $0x3b0] sm:$0xff]  ;;  %v4872_v4 = vld [vmem:[%s8279_s1 + $0x3c8] sm:$0xff] }
  0x9b   : > { %v1186_v49 = vrot.slane %v1185_v28, 2  ;;  %v1296_v34 = vrot.slane %v1295_v62, 2  ;;  %v965_v15 = vadd.f32 %v964_v7, %v963_v22  ;;  %v8823_v21 = vunpack.c.l.bf16 %v8822_v29  ;;  %v4862_v22 = vld [vmem:[%s8279_s1 + $0x390] sm:$0xff]  ;;  %v4877_v50 = vld [vmem:[%s8279_s1 + $0x3e0] sm:$0xff]  ;;  %v4933_v29 = vld [vmem:[%s8279_s1 + $0x438] sm:$0xff] }
  0x9c   : > { %v1624_v60 = vrot.slane %v1623_v45, 4  ;;  %v1077_v20 = vadd.f32 %v1076_v36, %v1075_v42  ;;  %v1406_v2 = vrot.slane %v1405_v44, 2  ;;  %v1516_v52 = vrot.slane %v1515_v47, 2  ;;  %v4867_v42 = vld [vmem:[%s8279_s1 + $0x3a8] sm:$0xff]  ;;  %v4885_v7 = vld [vmem:[%s8279_s1 + $0x3c0] sm:$0xff]  ;;  %v4890_v36 = vld [vmem:[%s8279_s1 + $0x3d8] sm:$0xff] }
  0x9d   : > { %v1732_v3 = vsel %vm959_vm0, %v8823_v21, 0.0  ;;  %v1187_v55 = vadd.f32 %v1186_v49, %v1185_v28  ;;  %v1297_v54 = vadd.f32 %v1296_v34, %v1295_v62  ;;  %v966_v33 = vrot.slane %v965_v15, 1  ;;  %v4905_v12 = vld [vmem:[%s8279_s1 + $0x3f0] sm:$0xff]  ;;  %8830 = vst [vmem:[#allocation19_spill] sm:$0xff] %v4933_v29  ;;  %v4938_v21 = vld [vmem:[%s8279_s1 + $0x458] sm:$0xff] }
  0x9e   : > { %v1625_v30 = vadd.f32 %v1624_v60, %v1623_v45  ;;  %v1078_v59 = vrot.slane %v1077_v20, 1  ;;  %v1407_v56 = vadd.f32 %v1406_v2, %v1405_v44  ;;  %v1733_v27 = vadd.f32 %v1732_v3, %v1731_v63  ;;  %v4895_v44 = vld [vmem:[%s8279_s1 + $0x3f8] sm:$0xff]  ;;  %8825 = vst [vmem:[#allocation37_spill] sm:$0xff] %v4905_v12  ;;  %v4910_v63 = vld [vmem:[%s8279_s1 + $0x408] sm:$0xff]  ;;  %v4928_v2 = vld [vmem:[%s8279_s1 + $0x420] sm:$0xff] }
  0x9f   : > { %v1188_v61 = vrot.slane %v1187_v55, 1  ;;  %v1298_v37 = vrot.slane %v1297_v54, 1  ;;  %v1517_v19 = vadd.f32 %v1516_v52, %v1515_v47  ;;  %v967_v26 = vadd.f32 %v966_v33, %v965_v15  ;;  %8824 = vst [vmem:[#allocation43_spill] sm:$0xff] %v4895_v44  ;;  %8826 = vst [vmem:[#allocation3_spill] sm:$0xff] %v4910_v63  ;;  %v4918_v15 = vld [vmem:[%s8279_s1 + $0x428] sm:$0xff]  ;;  %v4943_v3 = vld [vmem:[%s8279_s1 + $0x470] sm:$0xff] }
  0xa0   : > { %v1626_v17 = vrot.slane %v1625_v30, 2  ;;  %v1079_v24 = vadd.f32 %v1078_v59, %v1077_v20  ;;  %v1408_v31 = vrot.slane %v1407_v56, 1  ;;  %v1734_v43 = vrot.slane %v1733_v27, 4  ;;  %8827 = vst [vmem:[#allocation2_spill] sm:$0xff] %v4918_v15  ;;  %v4923_v20 = vld [vmem:[%s8279_s1 + $0x440] sm:$0xff]  ;;  %8829 = vst [vmem:[#allocation4_spill] sm:$0xff] %v4928_v2 }
  0xa1   : > { %v1189_v13 = vadd.f32 %v1188_v61, %v1187_v55  ;;  %v1299_v25 = vadd.f32 %v1298_v37, %v1297_v54  ;;  %v1518_v23 = vrot.slane %v1517_v19, 1  ;;  %v1838_v35 = vmul.f32 0.020408163, %v967_v26  ;;  %8828 = vst [vmem:[#allocation5_spill] sm:$0xff] %v4923_v20  ;;  %8831 = vst [vmem:[#allocation7_spill] sm:$0xff] %v4938_v21  ;;  %v4953_v33 = vld [vmem:[%s8279_s1 + $0x450] sm:$0xff] }
  0xa2   : > { %v1627_v6 = vadd.f32 %v1626_v17, %v1625_v30  ;;  %v1409_v57 = vadd.f32 %v1408_v31, %v1407_v56  ;;  %v1735_v18 = vadd.f32 %v1734_v43, %v1733_v27  ;;  %v1846_v41 = vmul.f32 0.020408163, %v1079_v24  ;;  %8832 = vst [vmem:[#allocation6_spill] sm:$0xff] %v4943_v3  ;;  %8833 = vst [vmem:[#allocation20_spill] sm:$0xff] %v4953_v33  ;;  %v4958_v59 = vld [vmem:[%s8279_s1 + $0x468] sm:$0xff]  ;;  %v4968_v27 = vld [vmem:[%s8279_s1 + $0x4a0] sm:$0xff] }
  0xa3   : > { %v1519_v11 = vadd.f32 %v1518_v23, %v1517_v19  ;;  %v1854_v1 = vmul.f32 0.020408163, %v1189_v13  ;;  %v1862_v46 = vmul.f32 0.020408163, %v1299_v25  ;;  %8834 = vst [vmem:[#allocation9_spill] sm:$0xff] %v4958_v59  ;;  %v4963_v56 = vld [vmem:[%s8279_s1 + $0x488] sm:$0xff]  ;;  %v8875_v2 = vpack.c.bf16 %v4807_v40, %v4802_v10 }
  0xa4   : > { %v1628_v5 = vrot.slane %v1627_v6, 1  ;;  %v1736_v28 = vrot.slane %v1735_v18, 2  ;;  %v1870_v62 = vmul.f32 0.020408163, %v1409_v57  ;;  %v2344_v58 = vsel %vm2343_vm1, %v1846_v41, %v1838_v35  ;;  %8835 = vst [vmem:[#allocation8_spill] sm:$0xff] %v4963_v56  ;;  %8836 = vst [vmem:[#allocation21_spill] sm:$0xff] %v4968_v27 }
  0xa5   : > { %v1878_v34 = vmul.f32 0.020408163, %v1519_v11  ;;  %v2346_v47 = vsel %vm2345_vm2, %v1854_v1, %v2344_v58  ;;  %v4973_v61 = vld [vmem:[%s8279_s1 + $0x480] sm:$0xff]  ;;  %v4978_v37 = vld [vmem:[%s8279_s1 + $0x498] sm:$0xff]  ;;  %v4988_v17 = vld [vmem:[%s8279_s1 + $0x4d0] sm:$0xff]  ;;  %v8878_v40 = vpack.c.bf16 %v4817_v32, %v4812_v14 }
  0xa6   : > { %v1629_v49 = vadd.f32 %v1628_v5, %v1627_v6  ;;  %v1737_v55 = vadd.f32 %v1736_v28, %v1735_v18  ;;  %v2348_v54 = vsel %vm2347_vm3, %v1862_v46, %v2346_v47  ;;  %8837 = vst [vmem:[#allocation22_spill] sm:$0xff] %v4973_v61  ;;  %8838 = vst [vmem:[#allocation11_spill] sm:$0xff] %v4978_v37  ;;  %v4983_v19 = vld [vmem:[%s8279_s1 + $0x4b8] sm:$0xff]  ;;  %v4998_v13 = vld [vmem:[%s8279_s1 + $0x4b0] sm:$0xff] }
  0xa7   : > { %8839 = vst [vmem:[#allocation10_spill] sm:$0xff] %v4983_v19  ;;  %8840 = vst [vmem:[#allocation23_spill] sm:$0xff] %v4988_v17  ;;  %v2350_v24 = vsel %vm2349_vm4, %v1870_v62, %v2348_v54  ;;  %v5003_v25 = vld [vmem:[%s8279_s1 + $0x4c8] sm:$0xff]  ;;  %v5013_v6 = vld [vmem:[%s8279_s1 + $0x500] sm:$0xff] }
  0xa8   : > { %v1886_v26 = vmul.f32 0.020408163, %v1629_v49  ;;  %8841 = vst [vmem:[#allocation13_spill] sm:$0xff] %v4998_v13  ;;  %8842 = vst [vmem:[#allocation12_spill] sm:$0xff] %v5003_v25  ;;  %v5008_v23 = vld [vmem:[%s8279_s1 + $0x4e8] sm:$0xff]  ;;  %v5018_v57 = vld [vmem:[%s8279_s1 + $0x4e0] sm:$0xff]  ;;  %v2352_v41 = vsel %vm2351_vm5, %v1878_v34, %v2350_v24 }
  0xa9   : > { %8843 = vst [vmem:[#allocation24_spill] sm:$0xff] %v5008_v23  ;;  %8844 = vst [vmem:[#allocation25_spill] sm:$0xff] %v5013_v6  ;;  %v5023_v18 = vld [vmem:[%s8279_s1 + $0x4f8] sm:$0xff]  ;;  %v1738_v35 = vrot.slane %v1737_v55, 1  ;;  %v5038_v46 = vld [vmem:[%s8279_s1 + $0x530] sm:$0xff] }
  0xaa   : > { %8845 = vst [vmem:[#allocation26_spill] sm:$0xff] %v5018_v57  ;;  %8846 = vst [vmem:[#allocation15_spill] sm:$0xff] %v5023_v18  ;;  %v5033_v1 = vld [vmem:[%s8279_s1 + $0x518] sm:$0xff]  ;;  %v5043_v28 = vld [vmem:[%s8279_s1 + $0x510] sm:$0xff]  ;;  %v2354_v54 = vsel %vm2353_vm6, %v1886_v26, %v2352_v41 }
  0xab   : > { %8847 = vst [vmem:[#allocation14_spill] sm:$0xff] %v5033_v1  ;;  %8848 = vst [vmem:[#allocation27_spill] sm:$0xff] %v5038_v46  ;;  %v5048_v62 = vld [vmem:[%s8279_s1 + $0x528] sm:$0xff]  ;;  %v5058_v49 = vld [vmem:[%s8279_s1 + $0x560] sm:$0xff]  ;;  %v1739_v24 = vadd.f32 %v1738_v35, %v1737_v55 }
  0xac   : > { %8849 = vst [vmem:[#allocation28_spill] sm:$0xff] %v5043_v28  ;;  %8850 = vst [vmem:[#allocation29_spill] sm:$0xff] %v5048_v62  ;;  %v5053_v58 = vld [vmem:[%s8279_s1 + $0x548] sm:$0xff]  ;;  %v5063_v34 = vld [vmem:[%s8279_s1 + $0x540] sm:$0xff] }
  0xad   : > { %8851 = vst [vmem:[#allocation30_spill] sm:$0xff] %v5053_v58  ;;  %8852 = vst [vmem:[#allocation31_spill] sm:$0xff] %v5058_v49  ;;  %v5068_v47 = vld [vmem:[%s8279_s1 + $0x558] sm:$0xff]  ;;  %v5085_v31 = vld [vmem:[%s8279_s1 + $0x590] sm:$0xff]  ;;  %v1894_v3 = vmul.f32 0.020408163, %v1739_v24 }
  0xae   : > { %8853 = vst [vmem:[#allocation34_spill] sm:$0xff] %v5063_v34  ;;  %8854 = vst [vmem:[#allocation35_spill] sm:$0xff] %v5068_v47  ;;  %v5080_v43 = vld [vmem:[%s8279_s1 + $0x578] sm:$0xff]  ;;  %v5090_v26 = vld [vmem:[%s8279_s1 + $0x570] sm:$0xff] }
  0xaf   : > { %8855 = vst [vmem:[#allocation36_spill] sm:$0xff] %v5080_v43  ;;  %8856 = vst [vmem:[#allocation38_spill] sm:$0xff] %v5085_v31  ;;  %v5095_v41 = vld [vmem:[%s8279_s1 + $0x588] sm:$0xff]  ;;  %v5105_v5 = vld [vmem:[%s8279_s1 + $0x5c0] sm:$0xff]  ;;  %v5205_v29 = vsel %vm2355_vm7, %v1894_v3, %v2354_v54  ;;  %v8888_v54 = vpack.c.bf16 %v4827_v48, %v4822_v53  ;;  %v8892_v53 = vpack.c.bf16 %v4837_v16, %v4832_v8 }
  0xb0   : > { %8857 = vst [vmem:[#allocation39_spill] sm:$0xff] %v5090_v26  ;;  %8858 = vst [vmem:[#allocation40_spill] sm:$0xff] %v5095_v41  ;;  %v5100_v11 = vld [vmem:[%s8279_s1 + $0x5a8] sm:$0xff]  ;;  %v5116_v45 = vld [vmem:[%s8279_s1 + $0x5a0] sm:$0xff]  ;;  %2480 = vmatmul.mubr.f32.vlgmr.msra.gmra.mrb[0].mxu0 %v5205_v29 }
  0xb1   : > { %8859 = vst [vmem:[#allocation41_spill] sm:$0xff] %v5100_v11  ;;  %8860 = vst [vmem:[#allocation42_spill] sm:$0xff] %v5105_v5  ;;  %v5121_v55 = vld [vmem:[%s8279_s1 + $0x5b8] sm:$0xff]  ;;  %v5131_v52 = vld [vmem:[%s8279_s1 + $0x5f0] sm:$0xff]  ;;  %3531 = vmatpush1.bf16.msra.mxu0 %v8875_v2 }
  0xb2   : > { %8861 = vst [vmem:[#allocation45_spill] sm:$0xff] %v5116_v45  ;;  %8862 = vst [vmem:[#allocation46_spill] sm:$0xff] %v5121_v55  ;;  %v5126_v35 = vld [vmem:[%s8279_s1 + $0x5d8] sm:$0xff]  ;;  %v5136_v60 = vld [vmem:[%s8279_s1 + $0x5d0] sm:$0xff]  ;;  %3533 = vmatprep.subr.bf16.mxu0 %v8878_v40 }
  0xb3   : > { %8863 = vst [vmem:[#allocation47_spill] sm:$0xff] %v5126_v35  ;;  %8864 = vst [vmem:[#allocation48_spill] sm:$0xff] %v5131_v52  ;;  %v5141_v30 = vld [vmem:[%s8279_s1 + $0x5e8] sm:$0xff] }
  0xb4   : > { %8865 = vst [vmem:[#allocation49_spill] sm:$0xff] %v5136_v60  ;;  %8866 = vst [vmem:[#allocation16_spill] sm:$0xff] %v5141_v30  ;;  %v5144_v21 = vld [vmem:[%s4255_s23 + $0x8] sm:$0xff] }
  0xb5   : > { %v5155_v20 = vld [vmem:[%s4255_s23 + $0x28] sm:$0xff]  ;;  %8871 = vst [vmem:[#allocation44_spill] sm:$0xff] %v5205_v29  ;;  %3535 = vmatpush1.bf16.msra.mxu0 %v8888_v54 }
  0xb6   : > { %v5158_v12 = vld [vmem:[%s4255_s23 + $0x48] sm:$0xff]  ;;  %3537 = vmatprep.subr.bf16.mxu0 %v8892_v53 }
  0xb7   : > { %v5161_v63 = vld [vmem:[%s4255_s23 + $0x68] sm:$0xff] }
  0xb8   : > { %v5164_v44 = vld [vmem:[%s4255_s23 + $0x88] sm:$0xff] }
  0xb9   : > { %v5173_v19 = vld [vmem:[%s4255_s23 + $0xa8] sm:$0xff] }
  0xba   : > { %v5176_v17 = vld [vmem:[%s4255_s23 + $0xc8] sm:$0x11] }
  0xbb   : > { %8867 = vst [vmem:[#allocation17_spill] sm:$0xff] %v5176_v17  ;;  %v5179_v61 = vld [vmem:[%s4255_s23 + $0xe8] sm:$0xff] }
  0xbc   : > { %8868 = vst [vmem:[#allocation18_spill] sm:$0xff] %v5179_v61  ;;  %v5182_v37 = vld [vmem:[%s4255_s23 + $0x108] sm:$0xff] }
  0xbd   : > { %8869 = vst [vmem:[#allocation32_spill] sm:$0xff] %v5182_v37  ;;  %v5193_v57 = vld [vmem:[%s4255_s23 + $0x128] sm:$0xff] }
  0xbe   : > { %v5196_v18 = vld [vmem:[%s4255_s23 + $0x148] sm:$0xff] }
  0xbf   : > { %v5199_v23 = vld [vmem:[%s4255_s23 + $0x168] sm:$0xff] }
  0xc0   : > { %v5202_v6 = vld [vmem:[%s4255_s23 + $0x188] sm:$0xff] }
  0xc1   : > { %8870 = vst [vmem:[#allocation33_spill] sm:$0xff] %v5202_v6  ;;  %v5214_v34 = vld [vmem:[%s4255_s23 + $0x1a8] sm:$0x11] }
  0xc2   : > { %v5217_v47 = vld [vmem:[%s4255_s23 + $0x1c8] sm:$0xff] }
  0xc3   : > { %v5220_v58 = vld [vmem:[%s4255_s23 + $0x1e8] sm:$0xff] }
  0xc4   : > { %8872 = vst [vmem:[#allocation50_spill] sm:$0xff] %v5220_v58  ;;  %v5223_v3 = vld [vmem:[%s4255_s23 + $0x208] sm:$0xff] }
  0xc5   : > { %v5233_v15 = vld [vmem:[%s4255_s23 + $0x228] sm:$0xff] }
  0xc6   : > { %v5236_v11 = vld [vmem:[%s4255_s23 + $0x248] sm:$0xff] }
  0xc7   : > { %v5239_v5 = vld [vmem:[%s4255_s23 + $0x268] sm:$0xff] }
  0xc8   : > { %8873 = vst [vmem:[#allocation51_spill] sm:$0xff] %v5239_v5  ;;  %v5242_v29 = vld [vmem:[%s4255_s23 + $0x288] sm:$0x11] }
  0xc9   : > { %8874 = vst [vmem:[#allocation52_spill] sm:$0xff] %v5242_v29  ;;  %v5249_v35 = vld [vmem:[%s4255_s23 + $0x2a8] sm:$0xff] }
  0xca   : > { %8876 = vst [vmem:[#allocation53_spill] sm:$0xff] %v5249_v35  ;;  %v5252_v24 = vld [vmem:[%s4255_s23 + $0x2c8] sm:$0xff]  ;;  %v677_v28 = vunpack.c.h.bf16 %v5249_v35 }
  0xcb   : > { %8877 = vst [vmem:[#allocation54_spill] sm:$0xff] %v5252_v24  ;;  %v5255_v60 = vld [vmem:[%s4255_s23 + $0x2e8] sm:$0xff]  ;;  %v685_v62 = vunpack.c.h.bf16 %v5252_v24 }
  0xcc   : > { %v5258_v30 = vld [vmem:[%s4255_s23 + $0x308] sm:$0xff] }
  0xcd   : > { %v5268_v2 = vld [vmem:[%s4255_s23 + $0x328] sm:$0xff] }
  0xce   : > { %8879 = vst [vmem:[#allocation55_spill] sm:$0xff] %v5268_v2  ;;  %v5271_v55 = vld [vmem:[%s4255_s23 + $0x348] sm:$0xff] }
  0xcf   : > { %8880 = vst [vmem:[#allocation56_spill] sm:$0xff] %v5271_v55  ;;  %v5274_v26 = vld [vmem:[%s4255_s23 + $0x368] sm:$0x11] }
  0xd0   : > { %8881 = vst [vmem:[#allocation57_spill] sm:$0xff] %v5274_v26  ;;  %v5277_v52 = vld [vmem:[%s4255_s23 + $0x388] sm:$0xff]  ;;  %v725_v35 = vunpack.c.h.bf16 %v5274_v26 }
  0xd1   : > { %8882 = vst [vmem:[#allocation58_spill] sm:$0xff] %v5277_v52  ;;  %v5284_v32 = vld [vmem:[%s4255_s23 + $0x3a8] sm:$0xff]  ;;  %v733_v24 = vunpack.c.h.bf16 %v5277_v52  ;;  %v8902_v52 = vpack.c.bf16 %v4847_v38, %v4842_v9  ;;  %v8905_v9 = vpack.c.bf16 %v4857_v51, %v4852_v0 }
  0xd2   : > { %8883 = vst [vmem:[#allocation59_spill] sm:$0xff] %v5284_v32  ;;  %v5287_v40 = vld [vmem:[%s4255_s23 + $0x3c8] sm:$0xff]  ;;  %v741_v33 = vunpack.c.h.bf16 %v5284_v32 }
  0xd3   : > { %8884 = vst [vmem:[#allocation60_spill] sm:$0xff] %v5287_v40  ;;  %v5290_v41 = vld [vmem:[%s4255_s23 + $0x3e8] sm:$0xff]  ;;  %v749_v59 = vunpack.c.h.bf16 %v5287_v40  ;;  %3539 = vmatpush1.bf16.msra.mxu0 %v8902_v52 }
  0xd4   : > { %v5297_v10 = vld [vmem:[%s4255_s23 + $0x408] sm:$0xff]  ;;  %3541 = vmatprep.subr.bf16.mxu0 %v8905_v9 }
  0xd5   : > { %8885 = vst [vmem:[#allocation61_spill] sm:$0xff] %v5297_v10  ;;  %v5300_v14 = vld [vmem:[%s4255_s23 + $0x428] sm:$0xff] }
  0xd6   : > { %8886 = vst [vmem:[#allocation62_spill] sm:$0xff] %v5300_v14  ;;  %v5303_v49 = vld [vmem:[%s4255_s23 + $0x448] sm:$0x11] }
  0xd7   : > { %8887 = vst [vmem:[#allocation63_spill] sm:$0xff] %v5303_v49  ;;  %v5313_v45 = vld [vmem:[%s4255_s23 + $0x468] sm:$0xff]  ;;  %v781_v40 = vunpack.c.h.bf16 %v5303_v49 }
  0xd8   : > { %8889 = vst [vmem:[#allocation64_spill] sm:$0xff] %v5313_v45  ;;  %v5316_v1 = vld [vmem:[%s4255_s23 + $0x488] sm:$0xff]  ;;  %v789_v25 = vunpack.c.h.bf16 %v5313_v45  ;;  %v8918_v45 = vunpack.c.h.bf16 %v5220_v58  ;;  %v8923_v58 = vunpack.c.h.bf16 %v5223_v3 }
  0xd9   : > { %8890 = vst [vmem:[#allocation65_spill] sm:$0xff] %v5316_v1  ;;  %v5319_v46 = vld [vmem:[%s4255_s23 + $0x4a8] sm:$0xff]  ;;  %v797_v56 = vunpack.c.h.bf16 %v5316_v1 }
  0xda   : > { %8891 = vst [vmem:[#allocation66_spill] sm:$0xff] %v5319_v46  ;;  %v5329_v48 = vld [vmem:[%s4255_s23 + $0x4c8] sm:$0xff]  ;;  %v805_v6 = vunpack.c.h.bf16 %v5319_v46 }
  0xdb   : > { %8893 = vst [vmem:[#allocation67_spill] sm:$0xff] %v5329_v48  ;;  %v5332_v54 = vld [vmem:[%s4255_s23 + $0x4e8] sm:$0xff]  ;;  %v813_v32 = vunpack.c.h.bf16 %v5329_v48 }
  0xdc   : > { %8894 = vst [vmem:[#allocation68_spill] sm:$0xff] %v5332_v54  ;;  %v5335_v13 = vld [vmem:[%s4255_s23 + $0x508] sm:$0xff]  ;;  %v8909_v54 = vpack.c.bf16 %v4867_v42, %v4862_v22  ;;  %v8911_v22 = vunpack.c.h.bf16 %v5144_v21  ;;  %v8912_v42 = vunpack.c.h.bf16 %v5155_v20 }
  0xdd   : > { %8895 = vst [vmem:[#allocation69_spill] sm:$0xff] %v5335_v13  ;;  %v5342_v8 = vld [vmem:[%s4255_s23 + $0x528] sm:$0x11] }
  0xde   : > { %8896 = vst [vmem:[#allocation70_spill] sm:$0xff] %v5342_v8  ;;  %v5345_v16 = vld [vmem:[%s4255_s23 + $0x548] sm:$0xff]  ;;  %v837_v51 = vunpack.c.h.bf16 %v5342_v8  ;;  %3543 = vmatpush1.bf16.msra.mxu0 %v8909_v54  ;;  %v994_v54 = vadd.f32 %v8912_v42, %v8911_v22  ;;  %v8919_v22 = vunpack.c.h.bf16 %v5158_v12 }
  0xdf   : > { %8897 = vst [vmem:[#allocation71_spill] sm:$0xff] %v5345_v16  ;;  %v5348_v53 = vld [vmem:[%s4255_s23 + $0x568] sm:$0xff]  ;;  %v845_v9 = vunpack.c.h.bf16 %v5345_v16 }
  0xe0   : > { %8898 = vst [vmem:[#allocation72_spill] sm:$0xff] %v5348_v53  ;;  %v5355_v43 = vld [vmem:[%s4255_s23 + $0x588] sm:$0xff]  ;;  %v853_v2 = vunpack.c.h.bf16 %v5348_v53  ;;  %v995_v42 = vadd.f32 %v994_v54, %v8919_v22  ;;  %v1441_v54 = vsel %vm959_vm0, %v781_v40, 0.0  ;;  %v8931_v40 = vunpack.c.h.bf16 %v5258_v30 }
  0xe1   : > { %8899 = vst [vmem:[#allocation73_spill] sm:$0xff] %v5355_v43  ;;  %v5358_v31 = vld [vmem:[%s4255_s23 + $0x5a8] sm:$0xff]  ;;  %v861_v46 = vunpack.c.h.bf16 %v5355_v43 }
  0xe2   : > { %8900 = vst [vmem:[#allocation74_spill] sm:$0xff] %v5358_v31  ;;  %v5361_v27 = vld [vmem:[%s4255_s23 + $0x5c8] sm:$0xff]  ;;  %v869_v48 = vunpack.c.h.bf16 %v5358_v31  ;;  %v8910_v31 = vpack.c.bf16 %v4877_v50, %v4872_v4  ;;  %v8915_v4 = vunpack.c.h.bf16 %v5182_v37  ;;  %v1331_v37 = vsel %vm959_vm0, %v725_v35, 0.0 }
  0xe3   : > { %8901 = vst [vmem:[#allocation75_spill] sm:$0xff] %v5361_v27  ;;  %v5371_v26 = vld [vmem:[%s4255_s23 + $0x5e8] sm:$0xff]  ;;  %v877_v49 = vunpack.c.h.bf16 %v5361_v27  ;;  %v8917_v27 = vunpack.c.h.bf16 %v5217_v47  ;;  %v1551_v35 = vsel %vm959_vm0, %v837_v51, 0.0 }
  0xe4   : > { %v5374_v55 = vld [vmem:[%s4255_s23 + $0x608] sm:$0x11]  ;;  %3545 = vmatprep.subr.bf16.mxu0 %v8910_v31  ;;  %v8916_v31 = vunpack.c.h.bf16 %v5214_v34 }
  0xe5   : > { %8903 = vst [vmem:[#allocation76_spill] sm:$0xff] %v5374_v55  ;;  %v5377_v5 = vld [vmem:[%s4255_s23 + $0x628] sm:$0xff]  ;;  %v893_v13 = vunpack.c.h.bf16 %v5374_v55 }
  0xe6   : > { %8904 = vst [vmem:[#allocation77_spill] sm:$0xff] %v5377_v5  ;;  %v5387_v38 = vld [vmem:[%s4255_s23 + $0x648] sm:$0xff]  ;;  %v901_v8 = vunpack.c.h.bf16 %v5377_v5  ;;  %v1111_v55 = vsel %vm959_vm0, %v8916_v31, 0.0  ;;  %v1216_v5 = vadd.f32 %v8918_v45, %v8917_v27  ;;  %v1436_v27 = vadd.f32 %v741_v33, %v733_v24 }
  0xe7   : > { %8906 = vst [vmem:[#allocation78_spill] sm:$0xff] %v5387_v38  ;;  %v5390_v52 = vld [vmem:[%s4255_s23 + $0x668] sm:$0xff]  ;;  %v909_v16 = vunpack.c.h.bf16 %v5387_v38  ;;  %v8913_v38 = vunpack.c.h.bf16 %v5176_v17  ;;  %v8920_v17 = vunpack.c.h.bf16 %v5242_v29  ;;  %v8929_v33 = vunpack.c.h.bf16 %v5233_v15 }
  0xe8   : > { %8907 = vst [vmem:[#allocation79_spill] sm:$0xff] %v5390_v52  ;;  %v5393_v10 = vld [vmem:[%s4255_s23 + $0x688] sm:$0xff]  ;;  %v917_v53 = vunpack.c.h.bf16 %v5390_v52  ;;  %v1217_v45 = vadd.f32 %v1216_v5, %v8923_v58  ;;  %v1437_v58 = vadd.f32 %v1436_v27, %v749_v59  ;;  %v1656_v24 = vadd.f32 %v853_v2, %v845_v9 }
  0xe9   : > { %8908 = vst [vmem:[#allocation80_spill] sm:$0xff] %v5393_v10  ;;  %v5400_v14 = vld [vmem:[%s4255_s23 + $0x6a8] sm:$0xff]  ;;  %v925_v43 = vunpack.c.h.bf16 %v5393_v10  ;;  %v999_v52 = vsel %vm959_vm0, %v8913_v38, 0.0  ;;  %v8914_v10 = vunpack.c.h.bf16 %v5179_v61  ;;  %v1221_v38 = vsel %vm959_vm0, %v8920_v17, 0.0 }
  0xea   : > { %v5403_v1 = vld [vmem:[%s4255_s23 + $0x6c8] sm:$0xff]  ;;  %v1326_v61 = vadd.f32 %v685_v62, %v677_v28  ;;  %v8926_v17 = vunpack.c.h.bf16 %v5161_v63  ;;  %v8927_v62 = vunpack.c.h.bf16 %v5255_v60  ;;  %v1218_v5 = vadd.f32 %v1217_v45, %v8929_v33 }
  0xeb   : > { %v5406_v0 = vld [vmem:[%s4255_s23 + $0x6e8] sm:$0x11]  ;;  %v1106_v50 = vadd.f32 %v8915_v4, %v8914_v10  ;;  %v8921_v10 = vpack.c.bf16 %v4890_v36, %v4885_v7  ;;  %v8922_v4 = vunpack.c.h.bf16 %v5193_v57  ;;  %v1546_v36 = vadd.f32 %v797_v56, %v789_v25  ;;  %v8933_v25 = vld [vmem:[#allocation37_spill] sm:$0xff] }
  0xec   : > { %v8924_v22 = vld [vmem:[#allocation43_spill] sm:$0xff]  ;;  %v996_v28 = vadd.f32 %v995_v42, %v8926_v17  ;;  %v1327_v7 = vadd.f32 %v1326_v61, %v8927_v62  ;;  %v1661_v61 = vsel %vm959_vm0, %v893_v13, 0.0  ;;  %v8936_v45 = vunpack.c.h.bf16 %v5236_v11  ;;  %v8938_v17 = vld [vmem:[#allocation5_spill] sm:$0xff] }
  0xed   : > { %3547 = vmatpush1.bf16.msra.mxu0 %v8921_v10  ;;  %v1107_v31 = vadd.f32 %v1106_v50, %v8922_v4  ;;  %v8925_v29 = vpack.c.bf16 %v4900_v39, %v8924_v22  ;;  %v8928_v50 = vunpack.c.h.bf16 %v5196_v18  ;;  %v8930_v39 = vunpack.c.h.bf16 %v5164_v44  ;;  %v8932_v56 = vld [vmem:[#allocation3_spill] sm:$0xff] }
  0xee   : > { %v1328_v42 = vadd.f32 %v1327_v7, %v8931_v40  ;;  %v1547_v4 = vadd.f32 %v1546_v36, %v805_v6  ;;  %v8934_v51 = vpack.c.bf16 %v8932_v56, %v8933_v25  ;;  %v1219_v59 = vadd.f32 %v1218_v5, %v8936_v45  ;;  %v8942_v7 = vld [vmem:[#allocation55_spill] sm:$0xff] }
  0xef   : > { %3549 = vmatprep.subr.bf16.mxu0 %v8925_v29  ;;  %v1108_v10 = vadd.f32 %v1107_v31, %v8928_v50  ;;  %v997_v29 = vadd.f32 %v996_v28, %v8930_v39  ;;  %v8935_v31 = vunpack.c.h.bf16 %v5199_v23  ;;  %v8937_v2 = vunpack.c.h.bf16 %v5290_v41  ;;  %v8939_v28 = vld [vmem:[#allocation2_spill] sm:$0xff]  ;;  %v8946_v5 = vld [vmem:[#allocation51_spill] sm:$0xff] }
  0xf0   : > { %v1657_v27 = vadd.f32 %v1656_v24, %v861_v46  ;;  %v8940_v62 = vpack.c.bf16 %v8938_v17, %v8939_v28  ;;  %v8941_v13 = vunpack.c.h.bf16 %v5173_v19  ;;  %v8943_v36 = vunpack.c.h.bf16 %v8942_v7 }
  0xf1   : > { %3551 = vmatpush1.bf16.msra.mxu0 %v8934_v51  ;;  %v1109_v22 = vadd.f32 %v1108_v10, %v8935_v31  ;;  %v1438_v9 = vadd.f32 %v1437_v58, %v8937_v2  ;;  %v1548_v33 = vadd.f32 %v1547_v4, %v813_v32  ;;  %v1766_v39 = vadd.f32 %v909_v16, %v901_v8  ;;  %v8944_v10 = vld [vmem:[#allocation33_spill] sm:$0xff]  ;;  %v8950_v2 = vld [vmem:[#allocation56_spill] sm:$0xff]  ;;  %v8954_v32 = vld [vmem:[#allocation19_spill] sm:$0xff] }
  0xf2   : > { %3553 = vmatprep.subr.bf16.mxu0 %v8940_v62  ;;  %v998_v6 = vadd.f32 %v997_v29, %v8941_v13  ;;  %v1329_v50 = vadd.f32 %v1328_v42, %v8943_v36  ;;  %v8945_v40 = vunpack.c.h.bf16 %v8944_v10  ;;  %v8947_v25 = vunpack.c.h.bf16 %v8946_v5  ;;  %v8948_v58 = vld [vmem:[#allocation61_spill] sm:$0xff]  ;;  %v8952_v29 = vld [vmem:[#allocation68_spill] sm:$0xff]  ;;  %v8957_v36 = vld [vmem:[#allocation62_spill] sm:$0xff] }
  0xf3   : > { %v8949_v46 = vunpack.c.h.bf16 %v8948_v58  ;;  %v1658_v31 = vadd.f32 %v1657_v27, %v869_v48  ;;  %v8951_v17 = vunpack.c.h.bf16 %v8950_v2  ;;  %v8953_v62 = vunpack.c.h.bf16 %v8952_v29  ;;  %v8955_v8 = vld [vmem:[#allocation4_spill] sm:$0xff]  ;;  %v8960_v48 = vld [vmem:[#allocation7_spill] sm:$0xff] }
  0xf4   : > { %v1110_v56 = vadd.f32 %v1109_v22, %v8945_v40  ;;  %v1220_v51 = vadd.f32 %v1219_v59, %v8947_v25  ;;  %v1000_v45 = vadd.f32 %v999_v52, %v998_v6  ;;  %v1767_v42 = vadd.f32 %v1766_v39, %v917_v53  ;;  %v9039_v58 = vld [vmem:[#allocation79_spill] sm:$0xff]  ;;  %v9040_v5 = vld [vmem:[#allocation80_spill] sm:$0xff] }
  0xf5   : > { %v1439_v24 = vadd.f32 %v1438_v9, %v8949_v46  ;;  %v1330_v28 = vadd.f32 %v1329_v50, %v8951_v17  ;;  %v1549_v13 = vadd.f32 %v1548_v33, %v8953_v62  ;;  %v8956_v16 = vpack.c.bf16 %v8954_v32, %v8955_v8  ;;  %v8959_v9 = vld [vmem:[#allocation6_spill] sm:$0xff]  ;;  %v8962_v50 = vld [vmem:[#allocation69_spill] sm:$0xff]  ;;  %v8967_v8 = vld [vmem:[#allocation20_spill] sm:$0xff] }
  0xf6   : > { %v1112_v4 = vadd.f32 %v1111_v55, %v1110_v56  ;;  %v1222_v22 = vadd.f32 %v1221_v38, %v1220_v51  ;;  %v8958_v59 = vunpack.c.h.bf16 %v8957_v36  ;;  %v1659_v25 = vadd.f32 %v1658_v31, %v877_v49  ;;  %v8966_v32 = vld [vmem:[#allocation9_spill] sm:$0xff]  ;;  %v9034_v36 = vld [vmem:[#allocation46_spill] sm:$0xff]  ;;  %v9041_v10 = vld [vmem:[#allocation48_spill] sm:$0xff] }
  0xf7   : > { %3555 = vmatpush1.bf16.msra.mxu0 %v8956_v16  ;;  %v8961_v52 = vpack.c.bf16 %v8959_v9, %v8960_v48  ;;  %v1001_v27 = vrot.slane %v1000_v45, 4  ;;  %v1332_v6 = vadd.f32 %v1331_v37, %v1330_v28  ;;  %v8963_v46 = vunpack.c.h.bf16 %v8962_v50  ;;  %v9038_v50 = vld [vmem:[#allocation78_spill] sm:$0xff] }
  0xf8   : > { %v1440_v40 = vadd.f32 %v1439_v24, %v8958_v59  ;;  %v1768_v53 = vadd.f32 %v1767_v42, %v925_v43  ;;  %v1113_v39 = vrot.slane %v1112_v4, 4  ;;  %v1223_v17 = vrot.slane %v1222_v22, 4  ;;  %v8969_v42 = vld [vmem:[#allocation21_spill] sm:$0xff]  ;;  %v8970_v59 = vld [vmem:[#allocation8_spill] sm:$0xff] }
  0xf9   : > { %3557 = vmatprep.subr.bf16.mxu0 %v8961_v52  ;;  %v1550_v33 = vadd.f32 %v1549_v13, %v8963_v46  ;;  %v8964_v55 = vunpack.c.h.bf16 %v5371_v26  ;;  %v1002_v56 = vadd.f32 %v1001_v27, %v1000_v45  ;;  %v1333_v51 = vrot.slane %v1332_v6, 4 }
  0xfa   : > { %v1442_v62 = vadd.f32 %v1441_v54, %v1440_v40  ;;  %v8965_v49 = vunpack.c.h.bf16 %v5400_v14  ;;  %v8968_v16 = vpack.c.bf16 %v8966_v32, %v8967_v8  ;;  %v1114_v37 = vadd.f32 %v1113_v39, %v1112_v4  ;;  %v8974_v39 = vld [vmem:[#allocation11_spill] sm:$0xff]  ;;  %v8978_v32 = vld [vmem:[#allocation10_spill] sm:$0xff] }
  0xfb   : > { %v1660_v38 = vadd.f32 %v1659_v25, %v8964_v55  ;;  %v1552_v24 = vadd.f32 %v1551_v35, %v1550_v33  ;;  %v1224_v28 = vadd.f32 %v1223_v17, %v1222_v22  ;;  %v8971_v54 = vpack.c.bf16 %v8969_v42, %v8970_v59  ;;  %v8975_v17 = vld [vmem:[#allocation22_spill] sm:$0xff] }
  0xfc   : > { %v1769_v31 = vadd.f32 %v1768_v53, %v8965_v49  ;;  %3559 = vmatpush1.bf16.msra.mxu0 %v8968_v16  ;;  %v1443_v13 = vrot.slane %v1442_v62, 4  ;;  %v1003_v40 = vrot.slane %v1002_v56, 2  ;;  %v1334_v25 = vadd.f32 %v1333_v51, %v1332_v6 }
  0xfd   : > { %v1662_v43 = vadd.f32 %v1661_v61, %v1660_v38  ;;  %3561 = vmatprep.subr.bf16.mxu0 %v8971_v54  ;;  %v1553_v45 = vrot.slane %v1552_v24, 4  ;;  %v8972_v35 = vunpack.c.h.bf16 %v5403_v1  ;;  %v1115_v48 = vrot.slane %v1114_v37, 2 }
  0xfe   : > { %v1225_v52 = vrot.slane %v1224_v28, 2  ;;  %v1444_v27 = vadd.f32 %v1443_v13, %v1442_v62  ;;  %v1004_v33 = vadd.f32 %v1003_v40, %v1002_v56  ;;  %v1335_v53 = vrot.slane %v1334_v25, 2 }
  0xff   : > { %v1770_v9 = vadd.f32 %v1769_v31, %v8972_v35  ;;  %v1663_v46 = vrot.slane %v1662_v43, 4  ;;  %v1554_v4 = vadd.f32 %v1553_v45, %v1552_v24  ;;  %v8973_v22 = vunpack.c.h.bf16 %v5406_v0  ;;  %v8977_v31 = vld [vmem:[#allocation23_spill] sm:$0xff] }
 0x100   : > { %v8976_v55 = vpack.c.bf16 %v8974_v39, %v8975_v17  ;;  %v1116_v6 = vadd.f32 %v1115_v48, %v1114_v37  ;;  %v1226_v38 = vadd.f32 %v1225_v52, %v1224_v28  ;;  %v1445_v51 = vrot.slane %v1444_v27, 2  ;;  %v8980_v37 = vld [vmem:[#allocation12_spill] sm:$0xff]  ;;  %v8981_v28 = vld [vmem:[#allocation13_spill] sm:$0xff] }
 0x101   : > { %v1771_v61 = vsel %vm959_vm0, %v8973_v22, 0.0  ;;  %v1664_v49 = vadd.f32 %v1663_v46, %v1662_v43  ;;  %v8979_v8 = vpack.c.bf16 %v8977_v31, %v8978_v32  ;;  %v1005_v62 = vrot.slane %v1004_v33, 1 }
 0x102   : > { %3563 = vmatpush1.bf16.msra.mxu0 %v8976_v55  ;;  %v1336_v56 = vadd.f32 %v1335_v53, %v1334_v25  ;;  %v1555_v16 = vrot.slane %v1554_v4, 2  ;;  %v1772_v24 = vadd.f32 %v1771_v61, %v1770_v9  ;;  %v1117_v13 = vrot.slane %v1116_v6, 1  ;;  %v5541_v25 = vld [vmem:[%s8279_s1 + $0x608] sm:$0xff]  ;;  %v5546_v9 = vld [vmem:[%s8279_s1 + $0x620] sm:$0xff] }
 0x103   : > { %3565 = vmatprep.subr.bf16.mxu0 %v8979_v8  ;;  %v1227_v42 = vrot.slane %v1226_v38, 1  ;;  %v1446_v59 = vadd.f32 %v1445_v51, %v1444_v27  ;;  %v1665_v54 = vrot.slane %v1664_v49, 2  ;;  %v1006_v40 = vadd.f32 %v1005_v62, %v1004_v33  ;;  %v8983_v27 = vld [vmem:[#allocation25_spill] sm:$0xff]  ;;  %v8984_v33 = vld [vmem:[#allocation24_spill] sm:$0xff]  ;;  %v9022_v62 = vld [vmem:[#allocation42_spill] sm:$0xff] }
 0x104   : > { %v1337_v45 = vrot.slane %v1336_v56, 1  ;;  %v1556_v35 = vadd.f32 %v1555_v16, %v1554_v4  ;;  %v1773_v22 = vrot.slane %v1772_v24, 4  ;;  %v8982_v48 = vpack.c.bf16 %v8980_v37, %v8981_v28  ;;  %v8986_v16 = vld [vmem:[#allocation15_spill] sm:$0xff] }
 0x105   : > { %v1118_v43 = vadd.f32 %v1117_v13, %v1116_v6  ;;  %v1228_v52 = vadd.f32 %v1227_v42, %v1226_v38  ;;  %v1447_v46 = vrot.slane %v1446_v59, 1  ;;  %v1666_v39 = vadd.f32 %v1665_v54, %v1664_v49  ;;  %v8987_v13 = vld [vmem:[#allocation26_spill] sm:$0xff] }
 0x106   : > { %3567 = vmatpush1.bf16.msra.mxu0 %v8982_v48  ;;  %v8985_v53 = vpack.c.bf16 %v8983_v27, %v8984_v33  ;;  %v1338_v4 = vadd.f32 %v1337_v45, %v1336_v56  ;;  %v1557_v61 = vrot.slane %v1556_v35, 1  ;;  %v1774_v17 = vadd.f32 %v1773_v22, %v1772_v24  ;;  %v9030_v48 = vld [vmem:[#allocation73_spill] sm:$0xff]  ;;  %v9031_v24 = vld [vmem:[#allocation74_spill] sm:$0xff] }
 0x107   : > { %v1841_v55 = vmul.f32 0.020408163, %v1006_v40  ;;  %v1448_v6 = vadd.f32 %v1447_v46, %v1446_v59  ;;  %v1667_v38 = vrot.slane %v1666_v39, 1  ;;  %v1849_v51 = vmul.f32 0.020408163, %v1118_v43  ;;  %v8989_v59 = vld [vmem:[#allocation27_spill] sm:$0xff] }
 0x108   : > { %3569 = vmatprep.subr.bf16.mxu0 %v8985_v53  ;;  %v1857_v49 = vmul.f32 0.020408163, %v1228_v52  ;;  %v1558_v31 = vadd.f32 %v1557_v61, %v1556_v35  ;;  %v1775_v32 = vrot.slane %v1774_v17, 2  ;;  %v1865_v8 = vmul.f32 0.020408163, %v1338_v4  ;;  %v8990_v40 = vld [vmem:[#allocation14_spill] sm:$0xff] }
 0x109   : > { %v8988_v42 = vpack.c.bf16 %v8986_v16, %v8987_v13  ;;  %v1668_v54 = vadd.f32 %v1667_v38, %v1666_v39  ;;  %v1873_v37 = vmul.f32 0.020408163, %v1448_v6  ;;  %v2371_v56 = vsel %vm2343_vm1, %v1849_v51, %v1841_v55  ;;  %v8992_v61 = vld [vmem:[#allocation29_spill] sm:$0xff]  ;;  %v8998_v16 = vld [vmem:[#allocation31_spill] sm:$0xff]  ;;  %v8999_v13 = vld [vmem:[#allocation30_spill] sm:$0xff] }
 0x10a   : > { %v8991_v45 = vpack.c.bf16 %v8989_v59, %v8990_v40  ;;  %v1776_v35 = vadd.f32 %v1775_v32, %v1774_v17  ;;  %v1881_v22 = vmul.f32 0.020408163, %v1558_v31  ;;  %v2372_v28 = vsel %vm2345_vm2, %v1857_v49, %v2371_v56  ;;  %v8993_v17 = vld [vmem:[#allocation28_spill] sm:$0xff]  ;;  %v8995_v38 = vld [vmem:[#allocation17_spill] sm:$0xff]  ;;  %v8996_v49 = vld [vmem:[#allocation18_spill] sm:$0xff] }
 0x10b   : > { %3571 = vmatpush1.bf16.msra.mxu0 %v8988_v42  ;;  %v1889_v43 = vmul.f32 0.020408163, %v1668_v54  ;;  %v2373_v52 = vsel %vm2347_vm3, %v1865_v8, %v2372_v28  ;;  %v8994_v55 = vpack.c.bf16 %v8992_v61, %v8993_v17  ;;  %v8997_v32 = vld [vmem:[#allocation32_spill] sm:$0xff]  ;;  %v9000_v42 = vpack.c.bf16 %v8998_v16, %v8999_v13  ;;  %v9021_v39 = vld [vmem:[#allocation65_spill] sm:$0xff]  ;;  %v9026_v46 = vld [vmem:[#allocation67_spill] sm:$0xff] }
 0x10c   : > { %3573 = vmatprep.subr.bf16.mxu0 %v8991_v45  ;;  %v1777_v27 = vrot.slane %v1776_v35, 1  ;;  %v2374_v33 = vsel %vm2349_vm4, %v1873_v37, %v2373_v52  ;;  %v572_v8 = vunpack.c.l.bf16 %v8997_v32  ;;  %v620_v28 = vunpack.c.l.bf16 %v5217_v47  ;;  %v9005_v16 = vld [vmem:[#allocation52_spill] sm:$0xff]  ;;  %v9007_v47 = vld [vmem:[#allocation38_spill] sm:$0xff] }
 0x10d   : > { %v2375_v6 = vsel %vm2351_vm5, %v1881_v22, %v2374_v33  ;;  %v612_v22 = vunpack.c.l.bf16 %v5214_v34  ;;  %v9001_v33 = vld [vmem:[#allocation50_spill] sm:$0xff]  ;;  %v636_v17 = vunpack.c.l.bf16 %v5223_v3  ;;  %v668_v13 = vunpack.c.l.bf16 %v9005_v16  ;;  %v9006_v34 = vld [vmem:[#allocation53_spill] sm:$0xff]  ;;  %v9016_v40 = vld [vmem:[#allocation40_spill] sm:$0xff] }
 0x10e   : > { %v1778_v54 = vadd.f32 %v1777_v27, %v1776_v35  ;;  %v2376_v37 = vsel %vm2353_vm6, %v1889_v43, %v2375_v6  ;;  %v628_v61 = vunpack.c.l.bf16 %v9001_v33  ;;  %v9002_v43 = vld [vmem:[#allocation35_spill] sm:$0xff]  ;;  %v9003_v27 = vld [vmem:[#allocation34_spill] sm:$0xff]  ;;  %v9020_v59 = vld [vmem:[#allocation64_spill] sm:$0xff]  ;;  %v820_v31 = vunpack.c.l.bf16 %v8952_v29 }
 0x10f   : > { %3575 = vmatpush1.bf16.msra.mxu0 %v8994_v55  ;;  %v9004_v55 = vpack.c.bf16 %v9002_v43, %v9003_v27  ;;  %v9011_v33 = vld [vmem:[#allocation54_spill] sm:$0xff]  ;;  %v692_v43 = vunpack.c.l.bf16 %v5255_v60  ;;  %v700_v27 = vunpack.c.l.bf16 %v5258_v30  ;;  %v9017_v30 = vld [vmem:[#allocation39_spill] sm:$0xff]  ;;  %v812_v60 = vunpack.c.l.bf16 %v9026_v46  ;;  %v9029_v51 = vld [vmem:[#allocation72_spill] sm:$0xff] }
 0x110   : > { %3577 = vmatprep.subr.bf16.mxu0 %v9000_v42  ;;  %v1897_v52 = vmul.f32 0.020408163, %v1778_v54  ;;  %v676_v42 = vunpack.c.l.bf16 %v9006_v34  ;;  %v9008_v54 = vld [vmem:[#allocation36_spill] sm:$0xff]  ;;  %v684_v4 = vunpack.c.l.bf16 %v9011_v33  ;;  %v9012_v34 = vld [vmem:[#allocation57_spill] sm:$0xff]  ;;  %v9013_v6 = vld [vmem:[#allocation58_spill] sm:$0xff]  ;;  %v756_v33 = vunpack.c.l.bf16 %v5290_v41 }
 0x111   : > { %v9009_v45 = vpack.c.bf16 %v9007_v47, %v9008_v54  ;;  %v724_v32 = vunpack.c.l.bf16 %v9012_v34  ;;  %v732_v47 = vunpack.c.l.bf16 %v9013_v6  ;;  %v9018_v53 = vpack.c.bf16 %v9016_v40, %v9017_v30  ;;  %v9019_v35 = vld [vmem:[#allocation63_spill] sm:$0xff]  ;;  %v9027_v40 = vld [vmem:[#allocation70_spill] sm:$0xff]  ;;  %v9035_v29 = vld [vmem:[#allocation45_spill] sm:$0xff] }
 0x112   : > { %v5600_v3 = vsel %vm2355_vm7, %v1897_v52, %v2376_v37  ;;  %v9015_v37 = vld [vmem:[#allocation60_spill] sm:$0xff]  ;;  %v780_v16 = vunpack.c.l.bf16 %v9019_v35  ;;  %v788_v34 = vunpack.c.l.bf16 %v9020_v59  ;;  %v796_v6 = vunpack.c.l.bf16 %v9021_v39 }
 0x113   : > { %3579 = vmatpush1.bf16.msra.mxu0 %v9004_v55  ;;  %9010 = vst [vmem:[#allocation43_spill] sm:$0xff] %v5600_v3  ;;  %2550 = vmatprep.mubr.f32.mxu0 %v5600_v3  ;;  %v748_v52 = vunpack.c.l.bf16 %v9015_v37  ;;  %v9025_v37 = vld [vmem:[#allocation66_spill] sm:$0xff]  ;;  %v836_v30 = vunpack.c.l.bf16 %v9027_v40  ;;  %v9028_v55 = vld [vmem:[#allocation71_spill] sm:$0xff]  ;;  %v852_v59 = vunpack.c.l.bf16 %v9029_v51  ;;  %v860_v39 = vunpack.c.l.bf16 %v9030_v48 }
 0x114   : > { %3581 = vmatprep.subr.bf16.mxu0 %v9009_v45  ;;  %v9014_v45 = vld [vmem:[#allocation59_spill] sm:$0xff]  ;;  %v804_v41 = vunpack.c.l.bf16 %v9025_v37  ;;  %v844_v35 = vunpack.c.l.bf16 %v9028_v55  ;;  %v868_v3 = vunpack.c.l.bf16 %v9031_v24  ;;  %v9033_v37 = vld [vmem:[#allocation76_spill] sm:$0xff]  ;;  %v9036_v2 = vpack.c.bf16 %v9034_v36, %v9035_v29 }
 0x115   : > { %v740_v54 = vunpack.c.l.bf16 %v9014_v45  ;;  %v9023_v45 = vld [vmem:[#allocation41_spill] sm:$0xff]  ;;  %v892_v46 = vunpack.c.l.bf16 %v9033_v37  ;;  %v908_v55 = vunpack.c.l.bf16 %v9038_v50  ;;  %v916_v51 = vunpack.c.l.bf16 %v9039_v58  ;;  %v9042_v24 = vld [vmem:[#allocation47_spill] sm:$0xff] }
 0x116   : > { %v9024_v56 = vpack.c.bf16 %v9022_v62, %v9023_v45  ;;  %v9032_v62 = vld [vmem:[#allocation75_spill] sm:$0xff]  ;;  %v924_v48 = vunpack.c.l.bf16 %v9040_v5  ;;  %v9043_v7 = vpack.c.bf16 %v9041_v10, %v9042_v24  ;;  %v9045_v36 = vunpack.c.l.bf16 %v5155_v20  ;;  %v9049_v20 = vld [vmem:[#allocation16_spill] sm:$0xff] }
 0x117   : > { %3583 = vmatpush1.bf16.msra.mxu0 %v9018_v53  ;;  %v9037_v53 = vld [vmem:[#allocation77_spill] sm:$0xff]  ;;  %v9046_v50 = vunpack.c.l.bf16 %v8995_v38  ;;  %v9047_v5 = vunpack.c.l.bf16 %v8996_v49  ;;  %v1203_v10 = vadd.f32 %v628_v61, %v620_v28  ;;  %v1208_v45 = vsel %vm959_vm0, %v668_v13, 0.0 }
 0x118   : > { %3585 = vmatprep.subr.bf16.mxu0 %v9024_v56  ;;  %v876_v56 = vunpack.c.l.bf16 %v9032_v62  ;;  %v900_v40 = vunpack.c.l.bf16 %v9037_v53  ;;  %v932_v62 = vunpack.c.l.bf16 %v5400_v14  ;;  %v9048_v14 = vunpack.c.l.bf16 %v5158_v12 }
 0x119   : > { %v986_v58 = vsel %vm959_vm0, %v9046_v50, 0.0  ;;  %v1093_v29 = vadd.f32 %v572_v8, %v9047_v5  ;;  %v1313_v37 = vadd.f32 %v684_v4, %v676_v42  ;;  %v9052_v38 = vunpack.c.l.bf16 %v5193_v57 }
 0x11a   : > { %v1204_v49 = vadd.f32 %v1203_v10, %v636_v17  ;;  %v1423_v8 = vadd.f32 %v740_v54, %v732_v47  ;;  %v9053_v12 = vpack.c.bf16 %v5546_v9, %v5541_v25  ;;  %v9054_v28 = vunpack.c.l.bf16 %v5161_v63 }
 0x11b   : > { %3587 = vmatpush1.bf16.msra.mxu0 %v9036_v2  ;;  %v9044_v2 = vunpack.c.l.bf16 %v5144_v21  ;;  %v1318_v21 = vsel %vm959_vm0, %v724_v32, 0.0  ;;  %v1094_v50 = vadd.f32 %v1093_v29, %v9052_v38  ;;  %v1314_v61 = vadd.f32 %v1313_v37, %v692_v43 }
 0x11c   : > { %3589 = vmatprep.subr.bf16.mxu0 %v9043_v7  ;;  %v1098_v7 = vsel %vm959_vm0, %v612_v22, 0.0  ;;  %v1428_v22 = vsel %vm959_vm0, %v780_v16, 0.0  ;;  %v1533_v32 = vadd.f32 %v796_v6, %v788_v34  ;;  %v1538_v13 = vsel %vm959_vm0, %v836_v30, 0.0 }
 0x11d   : > { %v981_v53 = vadd.f32 %v9045_v36, %v9044_v2  ;;  %v9050_v2 = vld [vmem:[#allocation49_spill] sm:$0xff]  ;;  %v9055_v42 = vunpack.c.l.bf16 %v5196_v18  ;;  %v9056_v57 = vunpack.c.l.bf16 %v5233_v15  ;;  %v1424_v47 = vadd.f32 %v1423_v8, %v748_v52  ;;  %v9061_v52 = vld [vmem:[#allocation55_spill] sm:$0xff] }
 0x11e   : > { %v9051_v36 = vpack.c.bf16 %v9049_v20, %v9050_v2  ;;  %v1643_v54 = vadd.f32 %v852_v59, %v844_v35  ;;  %v9057_v16 = vunpack.c.l.bf16 %v5164_v44  ;;  %v1315_v25 = vadd.f32 %v1314_v61, %v700_v27  ;;  %v9063_v27 = vld [vmem:[#allocation33_spill] sm:$0xff] }
 0x11f   : > { %v982_v24 = vadd.f32 %v981_v53, %v9048_v14  ;;  %v1095_v53 = vadd.f32 %v1094_v50, %v9055_v42  ;;  %v1205_v17 = vadd.f32 %v1204_v49, %v9056_v57  ;;  %v1534_v9 = vadd.f32 %v1533_v32, %v804_v41  ;;  %v9067_v20 = vld [vmem:[#allocation61_spill] sm:$0xff] }
 0x120   : > { %3591 = vmatpush1.bf16.msra.mxu0 %v9051_v36  ;;  %v1648_v63 = vsel %vm959_vm0, %v892_v46, 0.0  ;;  %v9058_v43 = vunpack.c.l.bf16 %v5199_v23  ;;  %v9059_v6 = vunpack.c.l.bf16 %v5236_v11  ;;  %v1425_v18 = vadd.f32 %v1424_v47, %v756_v33  ;;  %v9065_v46 = vld [vmem:[#allocation51_spill] sm:$0xff]  ;;  %v9073_v32 = vld [vmem:[#allocation69_spill] sm:$0xff] }
 0x121   : > { %3593 = vmatprep.subr.bf16.mxu0 %v9053_v12  ;;  %v983_v4 = vadd.f32 %v982_v24, %v9054_v28  ;;  %v1644_v37 = vadd.f32 %v1643_v54, %v860_v39  ;;  %v9060_v15 = vunpack.c.l.bf16 %v5173_v19  ;;  %v9062_v35 = vunpack.c.l.bf16 %v9061_v52  ;;  %v9069_v39 = vld [vmem:[#allocation56_spill] sm:$0xff] }
 0x122   : > { %v1096_v34 = vadd.f32 %v1095_v53, %v9058_v43  ;;  %v1206_v30 = vadd.f32 %v1205_v17, %v9059_v6  ;;  %v1535_v44 = vadd.f32 %v1534_v9, %v812_v60  ;;  %v1753_v10 = vadd.f32 %v908_v55, %v900_v40  ;;  %v9071_v60 = vld [vmem:[#allocation62_spill] sm:$0xff] }
 0x123   : > { %v984_v5 = vadd.f32 %v983_v4, %v9057_v16  ;;  %v1316_v59 = vadd.f32 %v1315_v25, %v9062_v35  ;;  %v9064_v41 = vunpack.c.l.bf16 %v9063_v27  ;;  %v9066_v24 = vunpack.c.l.bf16 %v9065_v46 }
 0x124   : > { %v9068_v2 = vunpack.c.l.bf16 %v9067_v20  ;;  %v1645_v36 = vadd.f32 %v1644_v37, %v868_v3  ;;  %v9070_v38 = vunpack.c.l.bf16 %v9069_v39  ;;  %v1536_v50 = vadd.f32 %v1535_v44, %v820_v31 }
 0x125   : > { %v985_v29 = vadd.f32 %v984_v5, %v9060_v15  ;;  %v1097_v14 = vadd.f32 %v1096_v34, %v9064_v41  ;;  %v1207_v23 = vadd.f32 %v1206_v30, %v9066_v24  ;;  %v1754_v49 = vadd.f32 %v1753_v10, %v916_v51 }
 0x126   : > { %v1426_v11 = vadd.f32 %v1425_v18, %v9068_v2  ;;  %v1317_v19 = vadd.f32 %v1316_v59, %v9070_v38  ;;  %v9072_v40 = vunpack.c.l.bf16 %v9071_v60  ;;  %v1646_v28 = vadd.f32 %v1645_v36, %v876_v56  ;;  %v5722_v36 = vld [vmem:[%s8279_s1 + $0x638] sm:$0xff] }
 0x127   : > { %v987_v33 = vadd.f32 %v986_v58, %v985_v29  ;;  %v1099_v8 = vadd.f32 %v1098_v7, %v1097_v14  ;;  %v1209_v12 = vadd.f32 %v1208_v45, %v1207_v23  ;;  %v9074_v42 = vunpack.c.l.bf16 %v9073_v32  ;;  %v5757_v32 = vld [vmem:[%s8279_s1 + $0x678] sm:$0xff] }
 0x128   : > { %v1427_v55 = vadd.f32 %v1426_v11, %v9072_v40  ;;  %v1319_v61 = vadd.f32 %v1318_v21, %v1317_v19  ;;  %v1755_v57 = vadd.f32 %v1754_v49, %v924_v48  ;;  %v9075_v47 = vunpack.c.l.bf16 %v5371_v26  ;;  %v5717_v11 = vld [vmem:[%s8279_s1 + $0x618] sm:$0xff]  ;;  %v5732_v49 = vld [vmem:[%s8279_s1 + $0x630] sm:$0xff] }
 0x129   : > { %v988_v4 = vrot.slane %v987_v33, 4  ;;  %v1537_v53 = vadd.f32 %v1536_v50, %v9074_v42  ;;  %v1100_v17 = vrot.slane %v1099_v8, 4  ;;  %v1210_v3 = vrot.slane %v1209_v12, 4  ;;  %v5727_v50 = vld [vmem:[%s8279_s1 + $0x650] sm:$0xff] }
 0x12a   : > { %v1429_v58 = vadd.f32 %v1428_v22, %v1427_v55  ;;  %v1647_v54 = vadd.f32 %v1646_v28, %v9075_v47  ;;  %v1320_v51 = vrot.slane %v1319_v61, 4  ;;  %v1756_v45 = vadd.f32 %v1755_v57, %v932_v62  ;;  %v5742_v28 = vld [vmem:[%s8279_s1 + $0x668] sm:$0xff]  ;;  %v5772_v47 = vld [vmem:[%s8279_s1 + $0x690] sm:$0xff] }
 0x12b   : > { %v989_v31 = vadd.f32 %v988_v4, %v987_v33  ;;  %v1539_v7 = vadd.f32 %v1538_v13, %v1537_v53  ;;  %v1101_v16 = vadd.f32 %v1100_v17, %v1099_v8  ;;  %v1211_v5 = vadd.f32 %v1210_v3, %v1209_v12  ;;  %v5737_v8 = vld [vmem:[%s8279_s1 + $0x648] sm:$0xff]  ;;  %v5747_v4 = vld [vmem:[%s8279_s1 + $0x680] sm:$0xff]  ;;  %v5762_v3 = vld [vmem:[%s8279_s1 + $0x698] sm:$0xff] }
 0x12c   : > { %v1430_v25 = vrot.slane %v1429_v58, 4  ;;  %v1649_v56 = vadd.f32 %v1648_v63, %v1647_v54  ;;  %v1321_v21 = vadd.f32 %v1320_v51, %v1319_v61  ;;  %v9076_v34 = vunpack.c.l.bf16 %v5403_v1  ;;  %v5752_v61 = vld [vmem:[%s8279_s1 + $0x660] sm:$0xff]  ;;  %v5777_v54 = vld [vmem:[%s8279_s1 + $0x6a8] sm:$0xff] }
 0x12d   : > { %v990_v9 = vrot.slane %v989_v31, 2  ;;  %v1540_v43 = vrot.slane %v1539_v7, 4  ;;  %v1102_v6 = vrot.slane %v1101_v16, 2  ;;  %v1212_v30 = vrot.slane %v1211_v5, 2 }
 0x12e   : > { %v1757_v48 = vadd.f32 %v1756_v45, %v9076_v34  ;;  %v1431_v22 = vadd.f32 %v1430_v25, %v1429_v58  ;;  %v1650_v18 = vrot.slane %v1649_v56, 4  ;;  %v1322_v37 = vrot.slane %v1321_v21, 2  ;;  %v5767_v58 = vld [vmem:[%s8279_s1 + $0x6b0] sm:$0xff]  ;;  %v5794_v25 = vld [vmem:[%s8279_s1 + $0x6c0] sm:$0xff] }
 0x12f   : > { %v991_v26 = vadd.f32 %v990_v9, %v989_v31  ;;  %v1541_v15 = vadd.f32 %v1540_v43, %v1539_v7  ;;  %v9077_v13 = vunpack.c.l.bf16 %v5406_v0  ;;  %v1103_v29 = vadd.f32 %v1102_v6, %v1101_v16  ;;  %v5712_v0 = vld [vmem:[%s8279_s1 + $0x600] sm:$0xff]  ;;  %v5784_v16 = vld [vmem:[%s8279_s1 + $0x6c8] sm:$0xff]  ;;  %v5804_v9 = vld [vmem:[%s8279_s1 + $0x6f8] sm:$0xff] }
 0x130   : > { %v1213_v52 = vadd.f32 %v1212_v30, %v1211_v5  ;;  %v1432_v63 = vrot.slane %v1431_v22, 2  ;;  %v1651_v35 = vadd.f32 %v1650_v18, %v1649_v56  ;;  %v1323_v44 = vadd.f32 %v1322_v37, %v1321_v21  ;;  %v5789_v5 = vld [vmem:[%s8279_s1 + $0x6e0] sm:$0xff]  ;;  %v5799_v56 = vld [vmem:[%s8279_s1 + $0x6d8] sm:$0xff]  ;;  %v5809_v21 = vld [vmem:[%s8279_s1 + $0x710] sm:$0xff] }
 0x131   : > { %v1758_v62 = vsel %vm959_vm0, %v9077_v13, 0.0  ;;  %v992_v59 = vrot.slane %v991_v26, 1  ;;  %v1542_v10 = vrot.slane %v1541_v15, 2  ;;  %v1104_v27 = vrot.slane %v1103_v29, 1  ;;  %v5817_v30 = vld [vmem:[%s8279_s1 + $0x6f0] sm:$0xff]  ;;  %v5827_v18 = vld [vmem:[%s8279_s1 + $0x728] sm:$0xff] }
 0x132   : > { %v1759_v1 = vadd.f32 %v1758_v62, %v1757_v48  ;;  %v1214_v41 = vrot.slane %v1213_v52, 1  ;;  %v1433_v14 = vadd.f32 %v1432_v63, %v1431_v22  ;;  %v1652_v46 = vrot.slane %v1651_v35, 2  ;;  %9078 = vst [vmem:[#allocation3_spill] sm:$0xff] %v5817_v30  ;;  %v5822_v22 = vld [vmem:[%s8279_s1 + $0x708] sm:$0xff]  ;;  %9080 = vst [vmem:[#allocation5_spill] sm:$0xff] %v5827_v18  ;;  %v5850_v63 = vld [vmem:[%s8279_s1 + $0x758] sm:$0xff] }
 0x133   : > { %v993_v24 = vadd.f32 %v992_v59, %v991_v26  ;;  %v1324_v23 = vrot.slane %v1323_v44, 1  ;;  %v1543_v20 = vadd.f32 %v1542_v10, %v1541_v15  ;;  %v1105_v33 = vadd.f32 %v1104_v27, %v1103_v29  ;;  %9079 = vst [vmem:[#allocation37_spill] sm:$0xff] %v5822_v22  ;;  %v5832_v26 = vld [vmem:[%s8279_s1 + $0x740] sm:$0xff]  ;;  %9084 = vst [vmem:[#allocation4_spill] sm:$0xff] %v5850_v63  ;;  %v5860_v59 = vld [vmem:[%s8279_s1 + $0x750] sm:$0xff] }
 0x134   : > { %v1760_v2 = vrot.slane %v1759_v1, 4  ;;  %v1215_v39 = vadd.f32 %v1214_v41, %v1213_v52  ;;  %v1434_v38 = vrot.slane %v1433_v14, 1  ;;  %v1653_v19 = vadd.f32 %v1652_v46, %v1651_v35  ;;  %9081 = vst [vmem:[#allocation2_spill] sm:$0xff] %v5832_v26  ;;  %v5840_v29 = vld [vmem:[%s8279_s1 + $0x720] sm:$0xff]  ;;  %v5845_v52 = vld [vmem:[%s8279_s1 + $0x738] sm:$0xff]  ;;  %v5855_v35 = vld [vmem:[%s8279_s1 + $0x770] sm:$0xff] }
 0x135   : > { %v1325_v12 = vadd.f32 %v1324_v23, %v1323_v44  ;;  %v1544_v60 = vrot.slane %v1543_v20, 1  ;;  %v1840_v55 = vmul.f32 0.020408163, %v993_v24  ;;  %v1848_v57 = vmul.f32 0.020408163, %v1105_v33  ;;  %9082 = vst [vmem:[#allocation68_spill] sm:$0xff] %v5840_v29 }
 0x136   : > { %v1761_v40 = vadd.f32 %v1760_v2, %v1759_v1  ;;  %v1435_v42 = vadd.f32 %v1434_v38, %v1433_v14  ;;  %v1654_v53 = vrot.slane %v1653_v19, 1  ;;  %v1856_v17 = vmul.f32 0.020408163, %v1215_v39  ;;  %9083 = vst [vmem:[#allocation19_spill] sm:$0xff] %v5845_v52  ;;  %9085 = vst [vmem:[#allocation6_spill] sm:$0xff] %v5855_v35  ;;  %v5865_v44 = vld [vmem:[%s8279_s1 + $0x768] sm:$0xff] }
 0x137   : > { %v1545_v31 = vadd.f32 %v1544_v60, %v1543_v20  ;;  %v1864_v7 = vmul.f32 0.020408163, %v1325_v12  ;;  %v2364_v48 = vsel %vm2343_vm1, %v1848_v57, %v1840_v55  ;;  %9086 = vst [vmem:[#allocation7_spill] sm:$0xff] %v5860_v59  ;;  %9087 = vst [vmem:[#allocation9_spill] sm:$0xff] %v5865_v44  ;;  %v5870_v10 = vld [vmem:[%s8279_s1 + $0x788] sm:$0xff]  ;;  %v5875_v1 = vld [vmem:[%s8279_s1 + $0x7a0] sm:$0xff] }
 0x138   : > { %v1762_v51 = vrot.slane %v1761_v40, 2  ;;  %v1655_v43 = vadd.f32 %v1654_v53, %v1653_v19  ;;  %v1872_v34 = vmul.f32 0.020408163, %v1435_v42  ;;  %v2365_v13 = vsel %vm2345_vm2, %v1856_v17, %v2364_v48  ;;  %9088 = vst [vmem:[#allocation20_spill] sm:$0xff] %v5870_v10  ;;  %9089 = vst [vmem:[#allocation21_spill] sm:$0xff] %v5875_v1  ;;  %v5885_v24 = vld [vmem:[%s8279_s1 + $0x780] sm:$0xff] }
 0x139   : > { %v1880_v15 = vmul.f32 0.020408163, %v1545_v31  ;;  %v2366_v41 = vsel %vm2347_vm3, %v1864_v7, %v2365_v13  ;;  %9090 = vst [vmem:[#allocation8_spill] sm:$0xff] %v5885_v24  ;;  %v5890_v23 = vld [vmem:[%s8279_s1 + $0x798] sm:$0xff]  ;;  %v5900_v2 = vld [vmem:[%s8279_s1 + $0x7d0] sm:$0xff]  ;;  %v5910_v39 = vld [vmem:[%s8279_s1 + $0x7c8] sm:$0xff] }
 0x13a   : > { %v1763_v37 = vadd.f32 %v1762_v51, %v1761_v40  ;;  %v1888_v27 = vmul.f32 0.020408163, %v1655_v43  ;;  %9091 = vst [vmem:[#allocation11_spill] sm:$0xff] %v5890_v23  ;;  %v5895_v20 = vld [vmem:[%s8279_s1 + $0x7b8] sm:$0xff]  ;;  %9093 = vst [vmem:[#allocation23_spill] sm:$0xff] %v5900_v2  ;;  %v5905_v33 = vld [vmem:[%s8279_s1 + $0x7b0] sm:$0xff]  ;;  %v2367_v19 = vsel %vm2349_vm4, %v1872_v34, %v2366_v41 }
 0x13b   : > { %9092 = vst [vmem:[#allocation22_spill] sm:$0xff] %v5895_v20  ;;  %9094 = vst [vmem:[#allocation10_spill] sm:$0xff] %v5905_v33  ;;  %v5920_v40 = vld [vmem:[%s8279_s1 + $0x7e8] sm:$0xff]  ;;  %v5925_v55 = vld [vmem:[%s8279_s1 + $0x800] sm:$0xff]  ;;  %v2368_v7 = vsel %vm2351_vm5, %v1880_v15, %v2367_v19 }
 0x13c   : > { %9095 = vst [vmem:[#allocation12_spill] sm:$0xff] %v5910_v39  ;;  %v1764_v38 = vrot.slane %v1763_v37, 1  ;;  %9096 = vst [vmem:[#allocation13_spill] sm:$0xff] %v5920_v40  ;;  %v5930_v42 = vld [vmem:[%s8279_s1 + $0x7e0] sm:$0xff]  ;;  %v5935_v53 = vld [vmem:[%s8279_s1 + $0x7f8] sm:$0xff]  ;;  %v2369_v60 = vsel %vm2353_vm6, %v1888_v27, %v2368_v7 }
 0x13d   : > { %9097 = vst [vmem:[#allocation25_spill] sm:$0xff] %v5925_v55  ;;  %9098 = vst [vmem:[#allocation24_spill] sm:$0xff] %v5930_v42  ;;  %v5940_v57 = vld [vmem:[%s8279_s1 + $0x818] sm:$0xff]  ;;  %v5945_v17 = vld [vmem:[%s8279_s1 + $0x830] sm:$0xff] }
 0x13e   : > { %9099 = vst [vmem:[#allocation15_spill] sm:$0xff] %v5935_v53  ;;  %9100 = vst [vmem:[#allocation26_spill] sm:$0xff] %v5940_v57  ;;  %v5950_v31 = vld [vmem:[%s8279_s1 + $0x810] sm:$0xff]  ;;  %v5955_v51 = vld [vmem:[%s8279_s1 + $0x828] sm:$0xff]  ;;  %v1765_v43 = vadd.f32 %v1764_v38, %v1763_v37 }
 0x13f   : > { %9101 = vst [vmem:[#allocation27_spill] sm:$0xff] %v5945_v17  ;;  %9102 = vst [vmem:[#allocation14_spill] sm:$0xff] %v5950_v31  ;;  %v5967_v13 = vld [vmem:[%s8279_s1 + $0x848] sm:$0xff]  ;;  %v5972_v41 = vld [vmem:[%s8279_s1 + $0x860] sm:$0xff] }
 0x140   : > { %9103 = vst [vmem:[#allocation29_spill] sm:$0xff] %v5955_v51  ;;  %9104 = vst [vmem:[#allocation28_spill] sm:$0xff] %v5967_v13  ;;  %v5977_v15 = vld [vmem:[%s8279_s1 + $0x840] sm:$0xff]  ;;  %v5982_v19 = vld [vmem:[%s8279_s1 + $0x858] sm:$0xff]  ;;  %v1896_v6 = vmul.f32 0.020408163, %v1765_v43 }
 0x141   : > { %9105 = vst [vmem:[#allocation17_spill] sm:$0xff] %v5972_v41  ;;  %9106 = vst [vmem:[#allocation18_spill] sm:$0xff] %v5977_v15  ;;  %v5987_v48 = vld [vmem:[%s8279_s1 + $0x878] sm:$0xff]  ;;  %v5992_v34 = vld [vmem:[%s8279_s1 + $0x890] sm:$0xff] }
 0x142   : > { %9107 = vst [vmem:[#allocation32_spill] sm:$0xff] %v5982_v19  ;;  %9108 = vst [vmem:[#allocation31_spill] sm:$0xff] %v5987_v48  ;;  %v6002_v14 = vld [vmem:[%s8279_s1 + $0x190] sm:$0xff]  ;;  %v6007_v62 = vld [vmem:[%s8279_s1 + $0x1a8] sm:$0xff]  ;;  %v6126_v39 = vsel %vm2355_vm7, %v1896_v6, %v2369_v60 }
 0x143   : > { %9109 = vst [vmem:[#allocation30_spill] sm:$0xff] %v5992_v34  ;;  %v6012_v37 = vld [vmem:[%s8279_s1 + $0x870] sm:$0xff]  ;;  %v6017_v27 = vld [vmem:[%s8279_s1 + $0x888] sm:$0xff]  ;;  %v6037_v12 = vld [vmem:[%s8279_s1 + $0x8c0] sm:$0xff]  ;;  %2551 = vmatmul.mubr.f32.vlgmr.msra.gmra.mrb[0].mxu0 %v6126_v39  ;;  %v3704_v57 = vpack.c.bf16 %v6007_v62, %v6002_v14  ;;  %v9121_v62 = vpack.c.bf16 %v5717_v11, %v5712_v0 }
 0x144   : > { %9110 = vst [vmem:[#allocation50_spill] sm:$0xff] %v6012_v37  ;;  %9111 = vst [vmem:[#allocation35_spill] sm:$0xff] %v6017_v27  ;;  %v6022_v38 = vld [vmem:[%s8279_s1 + $0x10] sm:$0xff]  ;;  %v6027_v7 = vld [vmem:[%s8279_s1 + $0x28] sm:$0xff] }
 0x145   : > { %v6032_v46 = vld [vmem:[%s8279_s1 + $0x8a8] sm:$0xff]  ;;  %9113 = vst [vmem:[#allocation52_spill] sm:$0xff] %v6037_v12  ;;  %v6050_v30 = vld [vmem:[%s8279_s1 + $0x1c0] sm:$0xff]  ;;  %v6055_v22 = vld [vmem:[%s8279_s1 + $0x1d8] sm:$0xff]  ;;  %v3706_v34 = vpack.c.bf16 %v6027_v7, %v6022_v38  ;;  %3595 = vmatpush1.bf16.msra.mxu0 %v9121_v62  ;;  %3705 = vmatprep.subr.bf16.mxu1 %v3704_v57 }
 0x146   : > { %9112 = vst [vmem:[#allocation34_spill] sm:$0xff] %v6032_v46  ;;  %v6060_v45 = vld [vmem:[%s8279_s1 + $0x8a0] sm:$0xff]  ;;  %v6065_v18 = vld [vmem:[%s8279_s1 + $0x8b8] sm:$0xff]  ;;  %v6091_v43 = vld [vmem:[%s8279_s1 + $0x8f0] sm:$0xff]  ;;  %v3708_v14 = vpack.c.bf16 %v6055_v22, %v6050_v30 }
 0x147   : > { %9114 = vst [vmem:[#allocation53_spill] sm:$0xff] %v6060_v45  ;;  %9115 = vst [vmem:[#allocation38_spill] sm:$0xff] %v6065_v18  ;;  %v6070_v26 = vld [vmem:[%s8279_s1 + $0x40] sm:$0xff]  ;;  %v6081_v44 = vld [vmem:[%s8279_s1 + $0x58] sm:$0xff]  ;;  %3707 = vmatpush3.bf16.msra.mxu1 %v3706_v34 }
 0x148   : > { %v6086_v63 = vld [vmem:[%s8279_s1 + $0x8d8] sm:$0xff]  ;;  %9117 = vst [vmem:[#allocation54_spill] sm:$0xff] %v6091_v43  ;;  %v6094_v10 = vld [vmem:[%s4255_s23 + $0x10] sm:$0xff]  ;;  %v6112_v59 = vld [vmem:[%s8279_s1 + $0x208] sm:$0xff]  ;;  %v3710_v7 = vpack.c.bf16 %v6081_v44, %v6070_v26  ;;  %v9125_v26 = vpack.c.bf16 %v5727_v50, %v5722_v36  ;;  %3709 = vmatprep.subr.bf16.mxu1 %v3708_v14  ;;  %v9136_v14 = vpack.c.bf16 %v5737_v8, %v5732_v49 }
 0x149   : > { %9116 = vst [vmem:[#allocation36_spill] sm:$0xff] %v6086_v63  ;;  %v6107_v20 = vld [vmem:[%s8279_s1 + $0x1f0] sm:$0xff]  ;;  %9119 = vst [vmem:[#allocation58_spill] sm:$0xff] %v6126_v39  ;;  %v6137_v17 = vld [vmem:[%s8279_s1 + $0x8e8] sm:$0xff]  ;;  %v9139_v49 = vpack.c.bf16 %v5747_v4, %v5742_v28 }
 0x14a   : > { %v6117_v1 = vld [vmem:[%s8279_s1 + $0x8d0] sm:$0xff]  ;;  %9120 = vst [vmem:[#allocation59_spill] sm:$0xff] %v6137_v17  ;;  %v6147_v60 = vld [vmem:[%s8279_s1 + $0x88] sm:$0xff]  ;;  %3597 = vmatprep.subr.bf16.mxu0 %v9125_v26  ;;  %v3712_v44 = vpack.c.bf16 %v6112_v59, %v6107_v20 }
 0x14b   : > { %9118 = vst [vmem:[#allocation57_spill] sm:$0xff] %v6117_v1  ;;  %v6120_v42 = vld [vmem:[%s4255_s23 + $0x30] sm:$0xff]  ;;  %3599 = vmatpush1.bf16.msra.mxu0 %v9136_v14  ;;  %3711 = vmatpush3.bf16.msra.mxu1 %v3710_v7 }
 0x14c   : > { %v6123_v33 = vld [vmem:[%s4255_s23 + $0x50] sm:$0xff]  ;;  %3601 = vmatprep.subr.bf16.mxu0 %v9139_v49  ;;  %3713 = vmatprep.subr.bf16.mxu1 %v3712_v44  ;;  %v9149_v44 = vpack.c.bf16 %v5757_v32, %v5752_v61  ;;  %v9153_v61 = vpack.c.bf16 %v5767_v58, %v5762_v3 }
 0x14d   : > { %v6142_v6 = vld [vmem:[%s8279_s1 + $0x70] sm:$0xff] }
 0x14e   : > { %v6150_v31 = vld [vmem:[%s4255_s23 + $0xf0] sm:$0xff]  ;;  %v9157_v3 = vpack.c.bf16 %v6147_v60, %v6142_v6 }
 0x14f   : > { %v6153_v51 = vld [vmem:[%s4255_s23 + $0x110] sm:$0xff]  ;;  %3603 = vmatpush1.bf16.msra.mxu0 %v9149_v44 }
 0x150   : > { %v6165_v19 = vld [vmem:[%s4255_s23 + $0x70] sm:$0xff]  ;;  %3605 = vmatprep.subr.bf16.mxu0 %v9153_v61  ;;  %3715 = vmatpush3.bf16.msra.mxu1 %v9157_v3 }
 0x151   : > { %v6168_v13 = vld [vmem:[%s4255_s23 + $0x90] sm:$0xff] }
 0x152   : > { %v6171_v39 = vld [vmem:[%s4255_s23 + $0x130] sm:$0xff] }
 0x153   : > { %v6174_v41 = vld [vmem:[%s4255_s23 + $0x150] sm:$0xff] }
 0x154   : > { %v6188_v48 = vld [vmem:[%s4255_s23 + $0xb0] sm:$0xff] }
 0x155   : > { %9122 = vst [vmem:[#allocation60_spill] sm:$0xff] %v6188_v48  ;;  %v6191_v0 = vld [vmem:[%s4255_s23 + $0xd0] sm:$0x11] }
 0x156   : > { %v6194_v11 = vld [vmem:[%s4255_s23 + $0x170] sm:$0xff] }
 0x157   : > { %v6197_v30 = vld [vmem:[%s4255_s23 + $0x1d0] sm:$0xff] }
 0x158   : > { %9123 = vst [vmem:[#allocation40_spill] sm:$0xff] %v6197_v30  ;;  %v6200_v22 = vld [vmem:[%s4255_s23 + $0x1f0] sm:$0xff] }
 0x159   : > { %9124 = vst [vmem:[#allocation39_spill] sm:$0xff] %v6200_v22  ;;  %v6203_v62 = vld [vmem:[%s4255_s23 + $0x210] sm:$0xff] }
 0x15a   : > { %v6215_v63 = vld [vmem:[%s4255_s23 + $0x190] sm:$0xff] }
 0x15b   : > { %9126 = vst [vmem:[#allocation63_spill] sm:$0xff] %v6215_v63  ;;  %v6218_v43 = vld [vmem:[%s4255_s23 + $0x1b0] sm:$0x11] }
 0x15c   : > { %9127 = vst [vmem:[#allocation64_spill] sm:$0xff] %v6218_v43  ;;  %v6221_v45 = vld [vmem:[%s4255_s23 + $0x230] sm:$0xff] }
 0x15d   : > { %v6224_v36 = vld [vmem:[%s4255_s23 + $0x250] sm:$0xff] }
 0x15e   : > { %v6227_v50 = vld [vmem:[%s4255_s23 + $0x270] sm:$0xff] }
 0x15f   : > { %9128 = vst [vmem:[#allocation65_spill] sm:$0xff] %v6227_v50  ;;  %v6231_v20 = vld [vmem:[%s4255_s23 + $0x290] sm:$0x11] }
 0x160   : > { %9129 = vst [vmem:[#allocation42_spill] sm:$0xff] %v6231_v20  ;;  %v6234_v57 = vld [vmem:[%s4255_s23 + $0x2b0] sm:$0xff] }
 0x161   : > { %9130 = vst [vmem:[#allocation41_spill] sm:$0xff] %v6234_v57  ;;  %v6237_v26 = vld [vmem:[%s4255_s23 + $0x2d0] sm:$0xff] }
 0x162   : > { %9131 = vst [vmem:[#allocation66_spill] sm:$0xff] %v6237_v26  ;;  %v6240_v15 = vld [vmem:[%s4255_s23 + $0x2f0] sm:$0xff] }
 0x163   : > { %v6243_v38 = vld [vmem:[%s4255_s23 + $0x310] sm:$0xff] }
 0x164   : > { %v6250_v18 = vld [vmem:[%s4255_s23 + $0x330] sm:$0xff] }
 0x165   : > { %9132 = vst [vmem:[#allocation67_spill] sm:$0xff] %v6250_v18  ;;  %v6253_v46 = vld [vmem:[%s4255_s23 + $0x350] sm:$0xff] }
 0x166   : > { %9133 = vst [vmem:[#allocation70_spill] sm:$0xff] %v6253_v46  ;;  %v6256_v12 = vld [vmem:[%s4255_s23 + $0x370] sm:$0x11] }
 0x167   : > { %9134 = vst [vmem:[#allocation71_spill] sm:$0xff] %v6256_v12  ;;  %v6259_v37 = vld [vmem:[%s4255_s23 + $0x390] sm:$0xff]  ;;  %v727_v1 = vunpack.c.h.bf16 %v6256_v12 }
 0x168   : > { %9135 = vst [vmem:[#allocation72_spill] sm:$0xff] %v6259_v37  ;;  %v6269_v27 = vld [vmem:[%s4255_s23 + $0x3b0] sm:$0xff]  ;;  %v735_v17 = vunpack.c.h.bf16 %v6259_v37 }
 0x169   : > { %9137 = vst [vmem:[#allocation73_spill] sm:$0xff] %v6269_v27  ;;  %v6272_v53 = vld [vmem:[%s4255_s23 + $0x3d0] sm:$0xff]  ;;  %v743_v23 = vunpack.c.h.bf16 %v6269_v27  ;;  %v9164_v27 = vpack.c.bf16 %v5789_v5, %v5784_v16  ;;  %v9171_v5 = vunpack.c.h.bf16 %v6218_v43 }
 0x16a   : > { %9138 = vst [vmem:[#allocation74_spill] sm:$0xff] %v6272_v53  ;;  %v6275_v40 = vld [vmem:[%s4255_s23 + $0x3f0] sm:$0xff]  ;;  %v751_v2 = vunpack.c.h.bf16 %v6272_v53 }
 0x16b   : > { %v6285_v8 = vld [vmem:[%s4255_s23 + $0x410] sm:$0xff] }
 0x16c   : > { %9140 = vst [vmem:[#allocation75_spill] sm:$0xff] %v6285_v8  ;;  %v6288_v14 = vld [vmem:[%s4255_s23 + $0x430] sm:$0xff] }
 0x16d   : > { %9141 = vst [vmem:[#allocation76_spill] sm:$0xff] %v6288_v14  ;;  %v6291_v55 = vld [vmem:[%s4255_s23 + $0x450] sm:$0x11] }
 0x16e   : > { %9142 = vst [vmem:[#allocation46_spill] sm:$0xff] %v6291_v55  ;;  %v6298_v28 = vld [vmem:[%s4255_s23 + $0x470] sm:$0xff]  ;;  %v783_v53 = vunpack.c.h.bf16 %v6291_v55  ;;  %v9163_v55 = vpack.c.bf16 %v5777_v54, %v5772_v47 }
 0x16f   : > { %9143 = vst [vmem:[#allocation45_spill] sm:$0xff] %v6298_v28  ;;  %v6301_v4 = vld [vmem:[%s4255_s23 + $0x490] sm:$0xff]  ;;  %v791_v12 = vunpack.c.h.bf16 %v6298_v28 }
 0x170   : > { %9144 = vst [vmem:[#allocation77_spill] sm:$0xff] %v6301_v4  ;;  %v6304_v49 = vld [vmem:[%s4255_s23 + $0x4b0] sm:$0xff]  ;;  %v799_v37 = vunpack.c.h.bf16 %v6301_v4  ;;  %3607 = vmatpush1.bf16.msra.mxu0 %v9163_v55  ;;  %v9166_v55 = vunpack.c.h.bf16 %v6120_v42 }
 0x171   : > { %9145 = vst [vmem:[#allocation78_spill] sm:$0xff] %v6304_v49  ;;  %v6311_v34 = vld [vmem:[%s4255_s23 + $0x4d0] sm:$0xff]  ;;  %v807_v3 = vunpack.c.h.bf16 %v6304_v49  ;;  %3609 = vmatprep.subr.bf16.mxu0 %v9164_v27  ;;  %v9165_v27 = vunpack.c.h.bf16 %v6094_v10 }
 0x172   : > { %9146 = vst [vmem:[#allocation79_spill] sm:$0xff] %v6311_v34  ;;  %v6314_v7 = vld [vmem:[%s4255_s23 + $0x4f0] sm:$0xff]  ;;  %v815_v29 = vunpack.c.h.bf16 %v6311_v34 }
 0x173   : > { %9147 = vst [vmem:[#allocation80_spill] sm:$0xff] %v6314_v7  ;;  %v6317_v24 = vld [vmem:[%s4255_s23 + $0x510] sm:$0xff]  ;;  %v9170_v7 = vunpack.c.h.bf16 %v6153_v51 }
 0x174   : > { %9148 = vst [vmem:[#allocation48_spill] sm:$0xff] %v6317_v24  ;;  %v6327_v59 = vld [vmem:[%s4255_s23 + $0x530] sm:$0x11] }
 0x175   : > { %9150 = vst [vmem:[#allocation47_spill] sm:$0xff] %v6327_v59  ;;  %v6330_v35 = vld [vmem:[%s4255_s23 + $0x550] sm:$0xff]  ;;  %v839_v18 = vunpack.c.h.bf16 %v6327_v59 }
 0x176   : > { %9151 = vst [vmem:[#allocation16_spill] sm:$0xff] %v6330_v35  ;;  %v6333_v50 = vld [vmem:[%s4255_s23 + $0x570] sm:$0xff]  ;;  %v847_v49 = vunpack.c.h.bf16 %v6330_v35 }
 0x177   : > { %9152 = vst [vmem:[#allocation49_spill] sm:$0xff] %v6333_v50  ;;  %v6343_v32 = vld [vmem:[%s4255_s23 + $0x590] sm:$0xff]  ;;  %v855_v34 = vunpack.c.h.bf16 %v6333_v50 }
 0x178   : > { %9154 = vst [vmem:[#allocation55_spill] sm:$0xff] %v6343_v32  ;;  %v6346_v44 = vld [vmem:[%s4255_s23 + $0x5b0] sm:$0xff]  ;;  %v863_v52 = vunpack.c.h.bf16 %v6343_v32 }
 0x179   : > { %9155 = vst [vmem:[#allocation33_spill] sm:$0xff] %v6346_v44  ;;  %v6349_v63 = vld [vmem:[%s4255_s23 + $0x5d0] sm:$0xff]  ;;  %v871_v47 = vunpack.c.h.bf16 %v6346_v44  ;;  %v9172_v44 = vunpack.c.h.bf16 %v6197_v30  ;;  %v1357_v30 = vsel %vm959_vm0, %v727_v1, 0.0  ;;  %v9184_v1 = vld [vmem:[#allocation3_spill] sm:$0xff] }
 0x17a   : > { %9156 = vst [vmem:[#allocation51_spill] sm:$0xff] %v6349_v63  ;;  %v6359_v58 = vld [vmem:[%s4255_s23 + $0x5f0] sm:$0xff]  ;;  %v879_v54 = vunpack.c.h.bf16 %v6349_v63  ;;  %v1020_v63 = vadd.f32 %v9166_v55, %v9165_v27  ;;  %v9173_v55 = vunpack.c.h.bf16 %v6200_v22  ;;  %v1572_v22 = vadd.f32 %v799_v37, %v791_v12 }
 0x17b   : > { %v6362_v61 = vld [vmem:[%s4255_s23 + $0x610] sm:$0x11]  ;;  %v9191_v12 = vunpack.c.h.bf16 %v6168_v13 }
 0x17c   : > { %9158 = vst [vmem:[#allocation61_spill] sm:$0xff] %v6362_v61  ;;  %v6365_v46 = vld [vmem:[%s4255_s23 + $0x630] sm:$0xff]  ;;  %v895_v24 = vunpack.c.h.bf16 %v6362_v61  ;;  %v1137_v61 = vsel %vm959_vm0, %v9171_v5, 0.0  ;;  %v1242_v27 = vadd.f32 %v9173_v55, %v9172_v44  ;;  %v9178_v5 = vunpack.c.h.bf16 %v6237_v26 }
 0x17d   : > { %9159 = vst [vmem:[#allocation56_spill] sm:$0xff] %v6365_v46  ;;  %v6372_v8 = vld [vmem:[%s4255_s23 + $0x650] sm:$0xff]  ;;  %v903_v59 = vunpack.c.h.bf16 %v6365_v46  ;;  %v9167_v46 = vpack.c.bf16 %v5799_v56, %v5794_v25  ;;  %v9174_v25 = vpack.c.bf16 %v5809_v21, %v5804_v9  ;;  %v9175_v56 = vunpack.c.h.bf16 %v6123_v33 }
 0x17e   : > { %9160 = vst [vmem:[#allocation62_spill] sm:$0xff] %v6372_v8  ;;  %v6375_v6 = vld [vmem:[%s4255_s23 + $0x670] sm:$0xff]  ;;  %v911_v35 = vunpack.c.h.bf16 %v6372_v8  ;;  %v9168_v8 = vunpack.c.h.bf16 %v6191_v0  ;;  %v9179_v44 = vunpack.c.h.bf16 %v6171_v39  ;;  %v9180_v9 = vunpack.c.h.bf16 %v6203_v62 }
 0x17f   : > { %9161 = vst [vmem:[#allocation69_spill] sm:$0xff] %v6375_v6  ;;  %v6378_v60 = vld [vmem:[%s4255_s23 + $0x690] sm:$0xff]  ;;  %v919_v50 = vunpack.c.h.bf16 %v6375_v6  ;;  %3611 = vmatpush1.bf16.msra.mxu0 %v9167_v46  ;;  %v1021_v46 = vadd.f32 %v1020_v63, %v9175_v56  ;;  %v1467_v63 = vsel %vm959_vm0, %v783_v53, 0.0  ;;  %v9181_v56 = vunpack.c.h.bf16 %v6165_v19 }
 0x180   : > { %9162 = vst [vmem:[#allocation81_spill] sm:$0xff] %v6378_v60  ;;  %v6388_v28 = vld [vmem:[%s4255_s23 + $0x6b0] sm:$0xff]  ;;  %v927_v32 = vunpack.c.h.bf16 %v6378_v60  ;;  %v1025_v6 = vsel %vm959_vm0, %v9168_v8, 0.0  ;;  %v9169_v60 = vunpack.c.h.bf16 %v6150_v31  ;;  %3613 = vmatprep.subr.bf16.mxu0 %v9174_v25  ;;  %v9176_v8 = vunpack.c.h.bf16 %v6231_v20 }
 0x181   : > { %v6391_v4 = vld [vmem:[%s4255_s23 + $0x6d0] sm:$0xff]  ;;  %v1243_v21 = vadd.f32 %v1242_v27, %v9180_v9  ;;  %v1462_v25 = vadd.f32 %v743_v23, %v735_v17  ;;  %v1022_v20 = vadd.f32 %v1021_v46, %v9181_v56  ;;  %v9187_v23 = vunpack.c.h.bf16 %v6221_v45  ;;  %v9188_v9 = vld [vmem:[#allocation2_spill] sm:$0xff]  ;;  %v9189_v46 = vld [vmem:[#allocation5_spill] sm:$0xff] }
 0x182   : > { %v6394_v14 = vld [vmem:[%s4255_s23 + $0x6f0] sm:$0x11]  ;;  %v1132_v16 = vadd.f32 %v9170_v7, %v9169_v60  ;;  %v1247_v7 = vsel %vm959_vm0, %v9176_v8, 0.0  ;;  %v9177_v60 = vunpack.c.h.bf16 %v6234_v57  ;;  %v9182_v8 = vunpack.c.h.bf16 %v6240_v15 }
 0x183   : > { %v1244_v17 = vadd.f32 %v1243_v21, %v9187_v23  ;;  %v1463_v53 = vadd.f32 %v1462_v25, %v751_v2  ;;  %v1682_v27 = vadd.f32 %v855_v34, %v847_v49  ;;  %v9190_v56 = vpack.c.bf16 %v9188_v9, %v9189_v46 }
 0x184   : > { %v1352_v43 = vadd.f32 %v9178_v5, %v9177_v60  ;;  %v1133_v55 = vadd.f32 %v1132_v16, %v9179_v44  ;;  %v1577_v60 = vsel %vm959_vm0, %v839_v18, 0.0  ;;  %v9183_v5 = vld [vmem:[#allocation37_spill] sm:$0xff]  ;;  %v9186_v16 = vunpack.c.h.bf16 %v6174_v41 }
 0x185   : > { %v9185_v26 = vpack.c.bf16 %v9183_v5, %v9184_v1  ;;  %v1023_v37 = vadd.f32 %v1022_v20, %v9191_v12  ;;  %v9192_v18 = vunpack.c.h.bf16 %v6243_v38  ;;  %v9194_v21 = vunpack.c.h.bf16 %v6224_v36  ;;  %v9197_v20 = vld [vmem:[#allocation67_spill] sm:$0xff] }
 0x186   : > { %v1353_v57 = vadd.f32 %v1352_v43, %v9182_v8  ;;  %v1134_v44 = vadd.f32 %v1133_v55, %v9186_v16  ;;  %v1573_v8 = vadd.f32 %v1572_v22, %v807_v3  ;;  %v9193_v55 = vunpack.c.h.bf16 %v6194_v11  ;;  %v9199_v3 = vld [vmem:[#allocation19_spill] sm:$0xff] }
 0x187   : > { %3615 = vmatpush1.bf16.msra.mxu0 %v9185_v26  ;;  %v1687_v26 = vsel %vm959_vm0, %v895_v24, 0.0  ;;  %v1245_v2 = vadd.f32 %v1244_v17, %v9194_v21  ;;  %v9195_v34 = vunpack.c.h.bf16 %v6275_v40  ;;  %v1683_v25 = vadd.f32 %v1682_v27, %v863_v52  ;;  %v9200_v24 = vld [vmem:[#allocation68_spill] sm:$0xff]  ;;  %v9204_v17 = vld [vmem:[#allocation65_spill] sm:$0xff] }
 0x188   : > { %3617 = vmatprep.subr.bf16.mxu0 %v9190_v56  ;;  %v1354_v43 = vadd.f32 %v1353_v57, %v9192_v18  ;;  %v1135_v5 = vadd.f32 %v1134_v44, %v9193_v55  ;;  %v9196_v1 = vunpack.c.h.bf16 %v6188_v48  ;;  %v9198_v23 = vunpack.c.h.bf16 %v9197_v20  ;;  %v9202_v44 = vld [vmem:[#allocation63_spill] sm:$0xff] }
 0x189   : > { %v1464_v49 = vadd.f32 %v1463_v53, %v9195_v34  ;;  %v1574_v57 = vadd.f32 %v1573_v8, %v815_v29  ;;  %v1792_v22 = vadd.f32 %v911_v35, %v903_v59  ;;  %v9201_v46 = vpack.c.bf16 %v9199_v3, %v9200_v24  ;;  %v9206_v53 = vld [vmem:[#allocation75_spill] sm:$0xff]  ;;  %v9209_v34 = vld [vmem:[#allocation4_spill] sm:$0xff]  ;;  %v9211_v35 = vld [vmem:[#allocation70_spill] sm:$0xff] }
 0x18a   : > { %v1024_v16 = vadd.f32 %v1023_v37, %v9196_v1  ;;  %v1355_v9 = vadd.f32 %v1354_v43, %v9198_v23  ;;  %v9203_v56 = vunpack.c.h.bf16 %v9202_v44  ;;  %v9205_v18 = vunpack.c.h.bf16 %v9204_v17  ;;  %v9208_v37 = vld [vmem:[#allocation6_spill] sm:$0xff]  ;;  %v9213_v8 = vld [vmem:[#allocation80_spill] sm:$0xff]  ;;  %v9297_v17 = vld [vmem:[#allocation69_spill] sm:$0xff] }
 0x18b   : > { %3619 = vmatpush1.bf16.msra.mxu0 %v9201_v46  ;;  %v9207_v52 = vunpack.c.h.bf16 %v9206_v53  ;;  %v1684_v21 = vadd.f32 %v1683_v25, %v871_v47  ;;  %v9210_v1 = vpack.c.bf16 %v9208_v37, %v9209_v34  ;;  %v9212_v59 = vunpack.c.h.bf16 %v9211_v35  ;;  %v9217_v25 = vld [vmem:[#allocation48_spill] sm:$0xff]  ;;  %v9298_v44 = vld [vmem:[#allocation81_spill] sm:$0xff] }
 0x18c   : > { %v1136_v12 = vadd.f32 %v1135_v5, %v9203_v56  ;;  %v1246_v55 = vadd.f32 %v1245_v2, %v9205_v18  ;;  %v1026_v29 = vadd.f32 %v1025_v6, %v1024_v16  ;;  %v9214_v23 = vunpack.c.h.bf16 %v9213_v8  ;;  %v9215_v56 = vld [vmem:[#allocation76_spill] sm:$0xff]  ;;  %v9219_v6 = vld [vmem:[#allocation9_spill] sm:$0xff]  ;;  %v9220_v16 = vld [vmem:[#allocation7_spill] sm:$0xff] }
 0x18d   : > { %v1465_v27 = vadd.f32 %v1464_v49, %v9207_v52  ;;  %3621 = vmatprep.subr.bf16.mxu0 %v9210_v1  ;;  %v1356_v43 = vadd.f32 %v1355_v9, %v9212_v59  ;;  %v1793_v24 = vadd.f32 %v1792_v22, %v919_v50  ;;  %v9216_v2 = vunpack.c.h.bf16 %v9215_v56  ;;  %v9224_v22 = vld [vmem:[#allocation20_spill] sm:$0xff]  ;;  %v9293_v56 = vld [vmem:[#allocation51_spill] sm:$0xff] }
 0x18e   : > { %v1575_v3 = vadd.f32 %v1574_v57, %v9214_v23  ;;  %v1138_v5 = vadd.f32 %v1137_v61, %v1136_v12  ;;  %v1248_v46 = vadd.f32 %v1247_v7, %v1246_v55  ;;  %v1685_v53 = vadd.f32 %v1684_v21, %v879_v54  ;;  %v9223_v7 = vld [vmem:[#allocation21_spill] sm:$0xff] }
 0x18f   : > { %v1466_v18 = vadd.f32 %v1465_v27, %v9216_v2  ;;  %v1027_v49 = vrot.slane %v1026_v29, 4  ;;  %v1358_v47 = vadd.f32 %v1357_v30, %v1356_v43  ;;  %v9218_v52 = vunpack.c.h.bf16 %v9217_v25  ;;  %v9296_v25 = vld [vmem:[#allocation62_spill] sm:$0xff] }
 0x190   : > { %v1794_v34 = vadd.f32 %v1793_v24, %v927_v32  ;;  %v9221_v1 = vpack.c.bf16 %v9219_v6, %v9220_v16  ;;  %v1139_v9 = vrot.slane %v1138_v5, 4  ;;  %v1249_v59 = vrot.slane %v1248_v46, 4  ;;  %v9229_v6 = vld [vmem:[#allocation8_spill] sm:$0xff] }
 0x191   : > { %v1576_v37 = vadd.f32 %v1575_v3, %v9218_v52  ;;  %v1468_v57 = vadd.f32 %v1467_v63, %v1466_v18  ;;  %v9222_v50 = vunpack.c.h.bf16 %v6359_v58  ;;  %v9225_v12 = vpack.c.bf16 %v9223_v7, %v9224_v22  ;;  %v9228_v52 = vld [vmem:[#allocation11_spill] sm:$0xff] }
 0x192   : > { %3623 = vmatpush1.bf16.msra.mxu0 %v9221_v1  ;;  %v1028_v54 = vadd.f32 %v1027_v49, %v1026_v29  ;;  %v1359_v30 = vrot.slane %v1358_v47, 4  ;;  %v9226_v27 = vunpack.c.h.bf16 %v6388_v28  ;;  %v1140_v21 = vadd.f32 %v1139_v9, %v1138_v5  ;;  %v9231_v1 = vld [vmem:[#allocation23_spill] sm:$0xff] }
 0x193   : > { %v1686_v61 = vadd.f32 %v1685_v53, %v9222_v50  ;;  %3625 = vmatprep.subr.bf16.mxu0 %v9225_v12  ;;  %v1578_v55 = vadd.f32 %v1577_v60, %v1576_v37  ;;  %v1250_v43 = vadd.f32 %v1249_v59, %v1248_v46  ;;  %v1469_v23 = vrot.slane %v1468_v57, 4 }
 0x194   : > { %v1795_v32 = vadd.f32 %v1794_v34, %v9226_v27  ;;  %v1029_v24 = vrot.slane %v1028_v54, 2  ;;  %v1360_v2 = vadd.f32 %v1359_v30, %v1358_v47  ;;  %v9227_v18 = vunpack.c.h.bf16 %v6391_v4  ;;  %v9232_v34 = vld [vmem:[#allocation22_spill] sm:$0xff] }
 0x195   : > { %v1688_v3 = vadd.f32 %v1687_v26, %v1686_v61  ;;  %v1579_v63 = vrot.slane %v1578_v55, 4  ;;  %v9230_v16 = vpack.c.bf16 %v9228_v52, %v9229_v6  ;;  %v1141_v29 = vrot.slane %v1140_v21, 2  ;;  %v9239_v6 = vld [vmem:[#allocation13_spill] sm:$0xff] }
 0x196   : > { %v1796_v53 = vadd.f32 %v1795_v32, %v9227_v18  ;;  %v1251_v49 = vrot.slane %v1250_v43, 2  ;;  %v1470_v60 = vadd.f32 %v1469_v23, %v1468_v57  ;;  %v9233_v5 = vpack.c.bf16 %v9231_v1, %v9232_v34  ;;  %v9235_v32 = vld [vmem:[#allocation12_spill] sm:$0xff]  ;;  %v9236_v23 = vld [vmem:[#allocation10_spill] sm:$0xff]  ;;  %v6533_v1 = vld [vmem:[%s8279_s1 + $0x908] sm:$0xff] }
 0x197   : > { %3627 = vmatpush1.bf16.msra.mxu0 %v9230_v16  ;;  %v1689_v37 = vrot.slane %v1688_v3, 4  ;;  %v1030_v46 = vadd.f32 %v1029_v24, %v1028_v54  ;;  %v1361_v26 = vrot.slane %v1360_v2, 2  ;;  %v1580_v9 = vadd.f32 %v1579_v63, %v1578_v55  ;;  %v9238_v63 = vld [vmem:[#allocation25_spill] sm:$0xff] }
 0x198   : > { %3629 = vmatprep.subr.bf16.mxu0 %v9233_v5  ;;  %v9234_v47 = vunpack.c.h.bf16 %v6394_v14  ;;  %v1142_v50 = vadd.f32 %v1141_v29, %v1140_v21  ;;  %v1252_v61 = vadd.f32 %v1251_v49, %v1250_v43  ;;  %v1471_v7 = vrot.slane %v1470_v60, 2 }
 0x199   : > { %v1690_v22 = vadd.f32 %v1689_v37, %v1688_v3  ;;  %v1031_v12 = vrot.slane %v1030_v46, 1  ;;  %v1362_v30 = vadd.f32 %v1361_v26, %v1360_v2  ;;  %v1581_v27 = vrot.slane %v1580_v9, 2 }
 0x19a   : > { %v1797_v59 = vsel %vm959_vm0, %v9234_v47, 0.0  ;;  %v9237_v18 = vpack.c.bf16 %v9235_v32, %v9236_v23  ;;  %v1143_v52 = vrot.slane %v1142_v50, 1  ;;  %v1253_v54 = vrot.slane %v1252_v61, 1  ;;  %v1973_v47 = vld [vmem:[%s8279_s1 + $0x238] sm:$0xff]  ;;  %v9245_v32 = vld [vmem:[#allocation26_spill] sm:$0xff] }
 0x19b   : > { %v1798_v57 = vadd.f32 %v1797_v59, %v1796_v53  ;;  %v1472_v24 = vadd.f32 %v1471_v7, %v1470_v60  ;;  %v1691_v55 = vrot.slane %v1690_v22, 2  ;;  %v9240_v16 = vpack.c.bf16 %v9238_v63, %v9239_v6  ;;  %v6538_v60 = vld [vmem:[%s8279_s1 + $0x920] sm:$0xff]  ;;  %v9241_v59 = vld [vmem:[#allocation15_spill] sm:$0xff] }
 0x19c   : > { %3631 = vmatpush1.bf16.msra.mxu0 %v9237_v18  ;;  %v1032_v21 = vadd.f32 %v1031_v12, %v1030_v46  ;;  %v1363_v43 = vrot.slane %v1362_v30, 1  ;;  %v1582_v29 = vadd.f32 %v1581_v27, %v1580_v9  ;;  %v1144_v49 = vadd.f32 %v1143_v52, %v1142_v50  ;;  %v1970_v9 = vld [vmem:[%s8279_s1 + $0x220] sm:$0xff]  ;;  %v9242_v50 = vld [vmem:[#allocation24_spill] sm:$0xff] }
 0x19d   : > { %3633 = vmatprep.subr.bf16.mxu0 %v9240_v16  ;;  %v1799_v3 = vrot.slane %v1798_v57, 4  ;;  %v1254_v2 = vadd.f32 %v1253_v54, %v1252_v61  ;;  %v1473_v37 = vrot.slane %v1472_v24, 1  ;;  %v1692_v53 = vadd.f32 %v1691_v55, %v1690_v22 }
 0x19e   : > { %v1364_v34 = vadd.f32 %v1363_v43, %v1362_v30  ;;  %v1583_v5 = vrot.slane %v1582_v29, 1  ;;  %v1843_v26 = vmul.f32 0.020408163, %v1032_v21  ;;  %v9243_v61 = vpack.c.bf16 %v9241_v59, %v9242_v50  ;;  %v9244_v30 = vld [vmem:[#allocation27_spill] sm:$0xff]  ;;  %v9279_v50 = vld [vmem:[#allocation77_spill] sm:$0xff] }
 0x19f   : > { %v1800_v46 = vadd.f32 %v1799_v3, %v1798_v57  ;;  %v1474_v7 = vadd.f32 %v1473_v37, %v1472_v24  ;;  %v1693_v22 = vrot.slane %v1692_v53, 1  ;;  %v1851_v12 = vmul.f32 0.020408163, %v1144_v49  ;;  %v9247_v49 = vld [vmem:[#allocation29_spill] sm:$0xff] }
 0x1a0   : > { %3635 = vmatpush1.bf16.msra.mxu0 %v9243_v61  ;;  %v1859_v27 = vmul.f32 0.020408163, %v1254_v2  ;;  %v9246_v57 = vpack.c.bf16 %v9244_v30, %v9245_v32  ;;  %v1584_v23 = vadd.f32 %v1583_v5, %v1582_v29  ;;  %v1867_v52 = vmul.f32 0.020408163, %v1364_v34  ;;  %v9248_v2 = vld [vmem:[#allocation14_spill] sm:$0xff]  ;;  %v9276_v61 = vld [vmem:[#allocation75_spill] sm:$0xff] }
 0x1a1   : > { %v1801_v18 = vrot.slane %v1800_v46, 2  ;;  %v1694_v55 = vadd.f32 %v1693_v22, %v1692_v53  ;;  %v1875_v63 = vmul.f32 0.020408163, %v1474_v7  ;;  %v2385_v6 = vsel %vm2343_vm1, %v1851_v12, %v1843_v26  ;;  %v9250_v26 = vld [vmem:[#allocation17_spill] sm:$0xff]  ;;  %v9282_v5 = vld [vmem:[#allocation38_spill] sm:$0xff] }
 0x1a2   : > { %3637 = vmatprep.subr.bf16.mxu0 %v9246_v57  ;;  %v3716_v16 = vpack.c.bf16 %v1973_v47, %v1970_v9  ;;  %v1883_v24 = vmul.f32 0.020408163, %v1584_v23  ;;  %v2386_v43 = vsel %vm2345_vm2, %v1859_v27, %v2385_v6  ;;  %v9249_v37 = vpack.c.bf16 %v9247_v49, %v9248_v2  ;;  %v9251_v9 = vld [vmem:[#allocation28_spill] sm:$0xff]  ;;  %v9257_v49 = vld [vmem:[#allocation30_spill] sm:$0xff]  ;;  %v9287_v12 = vld [vmem:[#allocation49_spill] sm:$0xff] }
 0x1a3   : > { %v1802_v21 = vadd.f32 %v1801_v18, %v1800_v46  ;;  %v1891_v29 = vmul.f32 0.020408163, %v1694_v55  ;;  %v2387_v34 = vsel %vm2347_vm3, %v1867_v52, %v2386_v43  ;;  %v9252_v46 = vpack.c.bf16 %v9250_v26, %v9251_v9  ;;  %v9253_v18 = vld [vmem:[#allocation32_spill] sm:$0xff]  ;;  %v9254_v52 = vld [vmem:[#allocation18_spill] sm:$0xff] }
 0x1a4   : > { %3639 = vmatpush1.bf16.msra.mxu0 %v9249_v37  ;;  %3717 = vmatprep.subr.bf16.mxu1 %v3716_v16  ;;  %v2388_v59 = vsel %vm2349_vm4, %v1875_v63, %v2387_v34  ;;  %v574_v57 = vunpack.c.l.bf16 %v6153_v51  ;;  %v9255_v55 = vpack.c.bf16 %v9253_v18, %v9254_v52  ;;  %v9260_v51 = vld [vmem:[#allocation40_spill] sm:$0xff]  ;;  %v9261_v34 = vld [vmem:[#allocation39_spill] sm:$0xff]  ;;  %v638_v9 = vunpack.c.l.bf16 %v6203_v62  ;;  %v9278_v63 = vld [vmem:[#allocation45_spill] sm:$0xff] }
 0x1a5   : > { %3641 = vmatprep.subr.bf16.mxu0 %v9252_v46  ;;  %v1803_v47 = vrot.slane %v1802_v21, 1  ;;  %v2389_v7 = vsel %vm2351_vm5, %v1883_v24, %v2388_v59  ;;  %v9256_v24 = vld [vmem:[#allocation64_spill] sm:$0xff]  ;;  %v630_v26 = vunpack.c.l.bf16 %v9261_v34  ;;  %v702_v34 = vunpack.c.l.bf16 %v6243_v38  ;;  %v9277_v46 = vld [vmem:[#allocation46_spill] sm:$0xff] }
 0x1a6   : > { %v2390_v32 = vsel %vm2353_vm6, %v1891_v29, %v2389_v7  ;;  %v614_v43 = vunpack.c.l.bf16 %v9256_v24  ;;  %v622_v29 = vunpack.c.l.bf16 %v9260_v51  ;;  %v9262_v7 = vld [vmem:[#allocation42_spill] sm:$0xff]  ;;  %v9270_v16 = vld [vmem:[#allocation52_spill] sm:$0xff]  ;;  %v766_v38 = vunpack.c.l.bf16 %v9276_v61  ;;  %v9285_v61 = vld [vmem:[#allocation47_spill] sm:$0xff] }
 0x1a7   : > { %v1804_v30 = vadd.f32 %v1803_v47, %v1802_v21  ;;  %v9258_v21 = vld [vmem:[#allocation31_spill] sm:$0xff]  ;;  %v670_v18 = vunpack.c.l.bf16 %v9262_v7  ;;  %v9267_v51 = vld [vmem:[#allocation50_spill] sm:$0xff]  ;;  %v9274_v47 = vld [vmem:[#allocation73_spill] sm:$0xff]  ;;  %v782_v7 = vunpack.c.l.bf16 %v9277_v46  ;;  %v798_v23 = vunpack.c.l.bf16 %v9279_v50 }
 0x1a8   : > { %3643 = vmatpush1.bf16.msra.mxu0 %v9255_v55  ;;  %v9259_v2 = vpack.c.bf16 %v9257_v49, %v9258_v21  ;;  %v9264_v55 = vld [vmem:[#allocation41_spill] sm:$0xff]  ;;  %v694_v21 = vunpack.c.l.bf16 %v6240_v15  ;;  %v742_v6 = vunpack.c.l.bf16 %v9274_v47  ;;  %v822_v47 = vunpack.c.l.bf16 %v9213_v8  ;;  %v9286_v27 = vld [vmem:[#allocation16_spill] sm:$0xff]  ;;  %v9288_v53 = vld [vmem:[#allocation54_spill] sm:$0xff] }
 0x1a9   : > { %v1899_v37 = vmul.f32 0.020408163, %v1804_v30  ;;  %v678_v24 = vunpack.c.l.bf16 %v9264_v55  ;;  %v9265_v30 = vld [vmem:[#allocation66_spill] sm:$0xff]  ;;  %v838_v59 = vunpack.c.l.bf16 %v9285_v61  ;;  %v846_v46 = vunpack.c.l.bf16 %v9286_v27  ;;  %v9289_v50 = vld [vmem:[#allocation36_spill] sm:$0xff] }
 0x1aa   : > { %3645 = vmatprep.subr.bf16.mxu0 %v9259_v2  ;;  %v686_v49 = vunpack.c.l.bf16 %v9265_v30  ;;  %v9266_v2 = vld [vmem:[#allocation35_spill] sm:$0xff]  ;;  %v9271_v55 = vld [vmem:[#allocation34_spill] sm:$0xff]  ;;  %v9273_v30 = vld [vmem:[#allocation72_spill] sm:$0xff]  ;;  %v9290_v3 = vpack.c.bf16 %v9288_v53, %v9289_v50  ;;  %v878_v35 = vunpack.c.l.bf16 %v9293_v56  ;;  %v910_v27 = vunpack.c.l.bf16 %v9296_v25 }
 0x1ab   : > { %v6594_v52 = vsel %vm2355_vm7, %v1899_v37, %v2390_v32  ;;  %v9268_v62 = vpack.c.bf16 %v9266_v2, %v9267_v51  ;;  %v9269_v32 = vld [vmem:[#allocation71_spill] sm:$0xff]  ;;  %v9272_v22 = vpack.c.bf16 %v9270_v16, %v9271_v55  ;;  %v734_v15 = vunpack.c.l.bf16 %v9273_v30  ;;  %v9275_v2 = vld [vmem:[#allocation74_spill] sm:$0xff]  ;;  %v9300_v56 = vld [vmem:[#allocation57_spill] sm:$0xff] }
 0x1ac   : > { %9263 = vst [vmem:[#allocation37_spill] sm:$0xff] %v6594_v52  ;;  %2621 = vmatprep.mubr.f32.mxu0 %v6594_v52  ;;  %v726_v37 = vunpack.c.l.bf16 %v9269_v32  ;;  %v750_v51 = vunpack.c.l.bf16 %v9275_v2  ;;  %v790_v32 = vunpack.c.l.bf16 %v9278_v63  ;;  %v9280_v16 = vld [vmem:[#allocation78_spill] sm:$0xff]  ;;  %v9281_v55 = vld [vmem:[#allocation79_spill] sm:$0xff]  ;;  %v9283_v2 = vld [vmem:[#allocation53_spill] sm:$0xff]  ;;  %v854_v63 = vunpack.c.l.bf16 %v9287_v12 }
 0x1ad   : > { %3647 = vmatpush1.bf16.msra.mxu0 %v9268_v62  ;;  %v758_v62 = vunpack.c.l.bf16 %v6275_v40  ;;  %v814_v30 = vunpack.c.l.bf16 %v9281_v55  ;;  %v9284_v54 = vpack.c.bf16 %v9282_v5, %v9283_v2  ;;  %v9292_v52 = vld [vmem:[#allocation33_spill] sm:$0xff]  ;;  %v9295_v40 = vld [vmem:[#allocation56_spill] sm:$0xff]  ;;  %v918_v12 = vunpack.c.l.bf16 %v9297_v17  ;;  %v9299_v50 = vld [vmem:[#allocation59_spill] sm:$0xff] }
 0x1ae   : > { %3649 = vmatprep.subr.bf16.mxu0 %v9272_v22  ;;  %v806_v22 = vunpack.c.l.bf16 %v9280_v16  ;;  %v9291_v16 = vld [vmem:[#allocation55_spill] sm:$0xff]  ;;  %v870_v8 = vunpack.c.l.bf16 %v9292_v52  ;;  %v9294_v5 = vld [vmem:[#allocation61_spill] sm:$0xff]  ;;  %v902_v61 = vunpack.c.l.bf16 %v9295_v40  ;;  %v926_v48 = vunpack.c.l.bf16 %v9298_v44 }
 0x1af   : > { %v862_v55 = vunpack.c.l.bf16 %v9291_v16  ;;  %v894_v2 = vunpack.c.l.bf16 %v9294_v5  ;;  %v9301_v16 = vpack.c.bf16 %v9299_v50, %v9300_v56  ;;  %v9303_v40 = vunpack.c.l.bf16 %v6120_v42 }
 0x1b0   : > { %v9304_v25 = vunpack.c.l.bf16 %v6191_v0  ;;  %v9305_v44 = vunpack.c.l.bf16 %v6150_v31  ;;  %v1124_v53 = vsel %vm959_vm0, %v614_v43, 0.0  ;;  %v9306_v52 = vpack.c.bf16 %v6538_v60, %v6533_v1 }
 0x1b1   : > { %3651 = vmatpush1.bf16.msra.mxu0 %v9284_v54  ;;  %v886_v54 = vunpack.c.l.bf16 %v6359_v58  ;;  %v9302_v58 = vunpack.c.l.bf16 %v6094_v10  ;;  %v1229_v50 = vadd.f32 %v630_v26, %v622_v29  ;;  %v1234_v56 = vsel %vm959_vm0, %v670_v18, 0.0 }
 0x1b2   : > { %3653 = vmatprep.subr.bf16.mxu0 %v9290_v3  ;;  %v934_v3 = vunpack.c.l.bf16 %v6388_v28  ;;  %v1012_v17 = vsel %vm959_vm0, %v9304_v25, 0.0  ;;  %v1119_v28 = vadd.f32 %v574_v57, %v9305_v44  ;;  %v1339_v10 = vadd.f32 %v686_v49, %v678_v24 }
 0x1b3   : > { %v1007_v5 = vadd.f32 %v9303_v40, %v9302_v58  ;;  %v1344_v42 = vsel %vm959_vm0, %v726_v37, 0.0  ;;  %v9308_v58 = vunpack.c.l.bf16 %v6171_v39  ;;  %v1449_v31 = vadd.f32 %v742_v6, %v734_v15 }
 0x1b4   : > { %v1454_v57 = vsel %vm959_vm0, %v782_v7, 0.0  ;;  %v1230_v43 = vadd.f32 %v1229_v50, %v638_v9  ;;  %v1340_v25 = vadd.f32 %v1339_v10, %v694_v21  ;;  %v1559_v44 = vadd.f32 %v798_v23, %v790_v32 }
 0x1b5   : > { %3655 = vmatpush1.bf16.msra.mxu0 %v9301_v16  ;;  %v9307_v16 = vunpack.c.l.bf16 %v6123_v33  ;;  %v1120_v40 = vadd.f32 %v1119_v28, %v9308_v58  ;;  %v1564_v1 = vsel %vm959_vm0, %v838_v59, 0.0  ;;  %v9309_v60 = vunpack.c.l.bf16 %v6165_v19 }
 0x1b6   : > { %3657 = vmatprep.subr.bf16.mxu0 %v9306_v52  ;;  %v9310_v26 = vunpack.c.l.bf16 %v6174_v41  ;;  %v1450_v24 = vadd.f32 %v1449_v31, %v750_v51  ;;  %v1669_v33 = vadd.f32 %v854_v63, %v846_v46  ;;  %v9311_v49 = vunpack.c.l.bf16 %v6221_v45 }
 0x1b7   : > { %v1008_v0 = vadd.f32 %v1007_v5, %v9307_v16  ;;  %v1341_v37 = vadd.f32 %v1340_v25, %v702_v34  ;;  %v1560_v6 = vadd.f32 %v1559_v44, %v806_v22  ;;  %v1674_v7 = vsel %vm959_vm0, %v894_v2, 0.0  ;;  %v9316_v34 = vld [vmem:[#allocation60_spill] sm:$0xff]  ;;  %v9318_v2 = vld [vmem:[#allocation63_spill] sm:$0xff] }
 0x1b8   : > { %v1121_v18 = vadd.f32 %v1120_v40, %v9310_v26  ;;  %v1231_v39 = vadd.f32 %v1230_v43, %v9311_v49  ;;  %v9312_v9 = vunpack.c.l.bf16 %v6168_v13  ;;  %v9313_v59 = vunpack.c.l.bf16 %v6194_v11  ;;  %v9320_v11 = vld [vmem:[#allocation65_spill] sm:$0xff]  ;;  %v9326_v44 = vld [vmem:[#allocation48_spill] sm:$0xff] }
 0x1b9   : > { %v1009_v29 = vadd.f32 %v1008_v0, %v9309_v60  ;;  %v1451_v19 = vadd.f32 %v1450_v24, %v758_v62  ;;  %v1670_v15 = vadd.f32 %v1669_v33, %v862_v55  ;;  %v9314_v41 = vunpack.c.l.bf16 %v6224_v36  ;;  %v9322_v55 = vld [vmem:[#allocation70_spill] sm:$0xff] }
 0x1ba   : > { %v1122_v21 = vadd.f32 %v1121_v18, %v9313_v59  ;;  %v9315_v51 = vunpack.c.l.bf16 %v9197_v20  ;;  %v1561_v45 = vadd.f32 %v1560_v6, %v814_v30  ;;  %v1779_v63 = vadd.f32 %v910_v27, %v902_v61  ;;  %v9324_v30 = vld [vmem:[#allocation76_spill] sm:$0xff] }
 0x1bb   : > { %v1010_v23 = vadd.f32 %v1009_v29, %v9312_v9  ;;  %v1232_v32 = vadd.f32 %v1231_v39, %v9314_v41  ;;  %v9317_v22 = vunpack.c.l.bf16 %v9316_v34  ;;  %v9319_v5 = vunpack.c.l.bf16 %v9318_v2 }
 0x1bc   : > { %v1342_v46 = vadd.f32 %v1341_v37, %v9315_v51  ;;  %v1452_v28 = vadd.f32 %v1451_v19, %v766_v38  ;;  %v1671_v50 = vadd.f32 %v1670_v15, %v870_v8  ;;  %v9321_v10 = vunpack.c.l.bf16 %v9320_v11 }
 0x1bd   : > { %v1011_v52 = vadd.f32 %v1010_v23, %v9317_v22  ;;  %v1123_v13 = vadd.f32 %v1122_v21, %v9319_v5  ;;  %v9323_v16 = vunpack.c.l.bf16 %v9322_v55  ;;  %v1562_v0 = vadd.f32 %v1561_v45, %v822_v47  ;;  %v6708_v55 = vld [vmem:[%s8279_s1 + $0x918] sm:$0xff] }
 0x1be   : > { %v1233_v62 = vadd.f32 %v1232_v32, %v9321_v10  ;;  %v1780_v58 = vadd.f32 %v1779_v63, %v918_v12  ;;  %v9325_v61 = vunpack.c.l.bf16 %v9324_v30  ;;  %v1672_v31 = vadd.f32 %v1671_v50, %v878_v35  ;;  %v6719_v30 = vld [vmem:[%s8279_s1 + $0x938] sm:$0xff] }
 0x1bf   : > { %v1343_v36 = vadd.f32 %v1342_v46, %v9323_v16  ;;  %v1013_v20 = vadd.f32 %v1012_v17, %v1011_v52  ;;  %v1125_v40 = vadd.f32 %v1124_v53, %v1123_v13  ;;  %v9327_v60 = vunpack.c.l.bf16 %v9326_v44  ;;  %v1922_v16 = vld [vmem:[%s8279_s1 + $0xa0] sm:$0xff] }
 0x1c0   : > { %v1453_v27 = vadd.f32 %v1452_v28, %v9325_v61  ;;  %v1235_v43 = vadd.f32 %v1234_v56, %v1233_v62  ;;  %v1781_v8 = vadd.f32 %v1780_v58, %v926_v48  ;;  %v1673_v24 = vadd.f32 %v1672_v31, %v886_v54  ;;  %v6724_v61 = vld [vmem:[%s8279_s1 + $0x950] sm:$0xff]  ;;  %v6734_v31 = vld [vmem:[%s8279_s1 + $0x268] sm:$0xff] }
 0x1c1   : > { %v1345_v25 = vadd.f32 %v1344_v42, %v1343_v36  ;;  %v1563_v38 = vadd.f32 %v1562_v0, %v9327_v60  ;;  %v1014_v29 = vrot.slane %v1013_v20, 4  ;;  %v1126_v26 = vrot.slane %v1125_v40, 4  ;;  %v1925_v36 = vld [vmem:[%s8279_s1 + $0xb8] sm:$0xff] }
 0x1c2   : > { %v1455_v18 = vadd.f32 %v1454_v57, %v1453_v27  ;;  %v1236_v33 = vrot.slane %v1235_v43, 4  ;;  %v1782_v12 = vadd.f32 %v1781_v8, %v934_v3  ;;  %v1675_v37 = vadd.f32 %v1674_v7, %v1673_v24  ;;  %v6729_v27 = vld [vmem:[%s8279_s1 + $0x250] sm:$0xff]  ;;  %v6744_v8 = vld [vmem:[%s8279_s1 + $0x948] sm:$0xff] }
 0x1c3   : > { %v1346_v49 = vrot.slane %v1345_v25, 4  ;;  %v1565_v47 = vadd.f32 %v1564_v1, %v1563_v38  ;;  %v1015_v17 = vadd.f32 %v1014_v29, %v1013_v20  ;;  %v1127_v53 = vadd.f32 %v1126_v26, %v1125_v40  ;;  %v6739_v38 = vld [vmem:[%s8279_s1 + $0x930] sm:$0xff]  ;;  %v6754_v26 = vld [vmem:[%s8279_s1 + $0xe8] sm:$0xff] }
 0x1c4   : > { %v1456_v39 = vrot.slane %v1455_v18, 4  ;;  %v1237_v6 = vadd.f32 %v1236_v33, %v1235_v43  ;;  %v9328_v42 = vunpack.c.l.bf16 %v6391_v4  ;;  %v1676_v21 = vrot.slane %v1675_v37, 4  ;;  %v6749_v29 = vld [vmem:[%s8279_s1 + $0xd0] sm:$0xff] }
 0x1c5   : > { %v1347_v35 = vadd.f32 %v1346_v49, %v1345_v25  ;;  %v1566_v56 = vrot.slane %v1565_v47, 4  ;;  %v1016_v23 = vrot.slane %v1015_v17, 2  ;;  %v1128_v48 = vrot.slane %v1127_v53, 2 }
 0x1c6   : > { %v1783_v9 = vadd.f32 %v1782_v12, %v9328_v42  ;;  %v1457_v59 = vadd.f32 %v1456_v39, %v1455_v18  ;;  %v1238_v57 = vrot.slane %v1237_v6, 2  ;;  %v9329_v1 = vunpack.c.l.bf16 %v6394_v14  ;;  %v6703_v14 = vld [vmem:[%s8279_s1 + $0x900] sm:$0xff]  ;;  %v7082_v42 = vld [vmem:[%s8279_s1 + $0xab8] sm:$0xff] }
 0x1c7   : > { %v1348_v54 = vrot.slane %v1347_v35, 2  ;;  %v1567_v19 = vadd.f32 %v1566_v56, %v1565_v47  ;;  %v1017_v15 = vadd.f32 %v1016_v23, %v1015_v17  ;;  %v1129_v41 = vadd.f32 %v1128_v48, %v1127_v53  ;;  %v6759_v47 = vld [vmem:[%s8279_s1 + $0x968] sm:$0xff]  ;;  %v6764_v12 = vld [vmem:[%s8279_s1 + $0x980] sm:$0xff]  ;;  %v6774_v53 = vld [vmem:[%s8279_s1 + $0x298] sm:$0xff]  ;;  %9360 = vst [vmem:[#allocation18_spill] sm:$0xff] %v7082_v42 }
 0x1c8   : > { %v1784_v3 = vsel %vm959_vm0, %v9329_v1, 0.0  ;;  %v1458_v7 = vrot.slane %v1457_v59, 2  ;;  %v1677_v32 = vadd.f32 %v1676_v21, %v1675_v37  ;;  %v1239_v51 = vadd.f32 %v1238_v57, %v1237_v6  ;;  %v6769_v17 = vld [vmem:[%s8279_s1 + $0x280] sm:$0xff]  ;;  %v6784_v37 = vld [vmem:[%s8279_s1 + $0x978] sm:$0xff]  ;;  %v6813_v1 = vld [vmem:[%s8279_s1 + $0x2b0] sm:$0xff] }
 0x1c9   : > { %v1349_v46 = vadd.f32 %v1348_v54, %v1347_v35  ;;  %v1568_v45 = vrot.slane %v1567_v19, 2  ;;  %v1785_v4 = vadd.f32 %v1784_v3, %v1783_v9  ;;  %v1018_v63 = vrot.slane %v1017_v15, 1  ;;  %v6779_v39 = vld [vmem:[%s8279_s1 + $0x960] sm:$0xff]  ;;  %v6797_v23 = vld [vmem:[%s8279_s1 + $0x118] sm:$0xff]  ;;  %v6818_v3 = vld [vmem:[%s8279_s1 + $0x2c8] sm:$0xff] }
 0x1ca   : > { %v1130_v34 = vrot.slane %v1129_v41, 1  ;;  %v1459_v22 = vadd.f32 %v1458_v7, %v1457_v59  ;;  %v1678_v52 = vrot.slane %v1677_v32, 2  ;;  %v1240_v2 = vrot.slane %v1239_v51, 1  ;;  %v6792_v9 = vld [vmem:[%s8279_s1 + $0x100] sm:$0xff]  ;;  %v6802_v48 = vld [vmem:[%s8279_s1 + $0x998] sm:$0xff]  ;;  %v6807_v59 = vld [vmem:[%s8279_s1 + $0x9b0] sm:$0xff] }
 0x1cb   : > { %v1350_v5 = vrot.slane %v1349_v46, 1  ;;  %v1569_v13 = vadd.f32 %v1568_v45, %v1567_v19  ;;  %v1786_v28 = vrot.slane %v1785_v4, 4  ;;  %v1019_v50 = vadd.f32 %v1018_v63, %v1017_v15  ;;  %9330 = vst [vmem:[#allocation3_spill] sm:$0xff] %v6802_v48  ;;  %9331 = vst [vmem:[#allocation2_spill] sm:$0xff] %v6807_v59  ;;  %v6823_v15 = vld [vmem:[%s8279_s1 + $0x990] sm:$0xff]  ;;  %v7319_v42 = vld [vmem:[%s4255_s23 + $0x258] sm:$0xff] }
 0x1cc   : > { %v1131_v11 = vadd.f32 %v1130_v34, %v1129_v41  ;;  %v1460_v10 = vrot.slane %v1459_v22, 1  ;;  %v1679_v62 = vadd.f32 %v1678_v52, %v1677_v32  ;;  %v1241_v0 = vadd.f32 %v1240_v2, %v1239_v51  ;;  %9332 = vst [vmem:[#allocation5_spill] sm:$0xff] %v6823_v15  ;;  %v6828_v41 = vld [vmem:[%s8279_s1 + $0x9a8] sm:$0xff]  ;;  %v6833_v7 = vld [vmem:[%s8279_s1 + $0x130] sm:$0xff]  ;;  %v6863_v52 = vld [vmem:[%s8279_s1 + $0x2f8] sm:$0xff] }
 0x1cd   : > { %v1351_v58 = vadd.f32 %v1350_v5, %v1349_v46  ;;  %v1570_v20 = vrot.slane %v1569_v13, 1  ;;  %v1787_v40 = vadd.f32 %v1786_v28, %v1785_v4  ;;  %v1842_v44 = vmul.f32 0.020408163, %v1019_v50  ;;  %9333 = vst [vmem:[#allocation67_spill] sm:$0xff] %v6828_v41  ;;  %v6838_v32 = vld [vmem:[%s8279_s1 + $0x148] sm:$0xff]  ;;  %v6848_v46 = vld [vmem:[%s8279_s1 + $0x9e0] sm:$0xff] }
 0x1ce   : > { %v1461_v43 = vadd.f32 %v1460_v10, %v1459_v22  ;;  %v1680_v25 = vrot.slane %v1679_v62, 1  ;;  %v1850_v60 = vmul.f32 0.020408163, %v1131_v11  ;;  %v1858_v33 = vmul.f32 0.020408163, %v1241_v0  ;;  %v6843_v51 = vld [vmem:[%s8279_s1 + $0x9c8] sm:$0xff] }
 0x1cf   : > { %v1571_v18 = vadd.f32 %v1570_v20, %v1569_v13  ;;  %v1788_v24 = vrot.slane %v1787_v40, 2  ;;  %v1866_v49 = vmul.f32 0.020408163, %v1351_v58  ;;  %v3718_v19 = vpack.c.bf16 %v1925_v36, %v1922_v16  ;;  %9334 = vst [vmem:[#allocation19_spill] sm:$0xff] %v6843_v51  ;;  %9335 = vst [vmem:[#allocation68_spill] sm:$0xff] %v6848_v46  ;;  %v6858_v22 = vld [vmem:[%s8279_s1 + $0x2e0] sm:$0xff] }
 0x1d0   : > { %v1681_v6 = vadd.f32 %v1680_v25, %v1679_v62  ;;  %v1874_v35 = vmul.f32 0.020408163, %v1461_v43  ;;  %v2378_v56 = vsel %vm2343_vm1, %v1850_v60, %v1842_v44  ;;  %v3720_v34 = vpack.c.bf16 %v6734_v31, %v6729_v27  ;;  %v6868_v2 = vld [vmem:[%s8279_s1 + $0x9c0] sm:$0xff]  ;;  %v6873_v5 = vld [vmem:[%s8279_s1 + $0x9d8] sm:$0xff]  ;;  %v6898_v36 = vld [vmem:[%s8279_s1 + $0xa10] sm:$0xff] }
 0x1d1   : > { %v1789_v21 = vadd.f32 %v1788_v24, %v1787_v40  ;;  %v1882_v57 = vmul.f32 0.020408163, %v1571_v18  ;;  %v2379_v54 = vsel %vm2345_vm2, %v1858_v33, %v2378_v56  ;;  %9336 = vst [vmem:[#allocation6_spill] sm:$0xff] %v6868_v2  ;;  %9337 = vst [vmem:[#allocation4_spill] sm:$0xff] %v6873_v5  ;;  %v6878_v13 = vld [vmem:[%s8279_s1 + $0x160] sm:$0xff]  ;;  %v6883_v28 = vld [vmem:[%s8279_s1 + $0x178] sm:$0xff]  ;;  %3719 = vmatpush3.bf16.msra.mxu1 %v3718_v19 }
 0x1d2   : > { %v1890_v45 = vmul.f32 0.020408163, %v1681_v6  ;;  %v2380_v4 = vsel %vm2347_vm3, %v1866_v49, %v2379_v54  ;;  %v3722_v62 = vpack.c.bf16 %v6754_v26, %v6749_v29  ;;  %v6893_v16 = vld [vmem:[%s8279_s1 + $0x9f8] sm:$0xff]  ;;  %9339 = vst [vmem:[#allocation9_spill] sm:$0xff] %v6898_v36  ;;  %v6903_v0 = vld [vmem:[%s8279_s1 + $0x490] sm:$0xff]  ;;  %v6908_v58 = vld [vmem:[%s8279_s1 + $0x4a8] sm:$0xff]  ;;  %3721 = vmatprep.subr.bf16.mxu1 %v3720_v34  ;;  %v3724_v44 = vpack.c.bf16 %v6774_v53, %v6769_v17 }
 0x1d3   : > { %v1790_v50 = vrot.slane %v1789_v21, 1  ;;  %v2381_v11 = vsel %vm2349_vm4, %v1874_v35, %v2380_v4  ;;  %9338 = vst [vmem:[#allocation80_spill] sm:$0xff] %v6893_v16  ;;  %9340 = vst [vmem:[#allocation7_spill] sm:$0xff] %v6903_v0  ;;  %v6913_v20 = vld [vmem:[%s8279_s1 + $0x9f0] sm:$0xff]  ;;  %v6918_v40 = vld [vmem:[%s8279_s1 + $0xa08] sm:$0xff] }
 0x1d4   : > { %9341 = vst [vmem:[#allocation21_spill] sm:$0xff] %v6913_v20  ;;  %9342 = vst [vmem:[#allocation20_spill] sm:$0xff] %v6918_v40  ;;  %v6923_v27 = vld [vmem:[%s8279_s1 + $0x310] sm:$0xff]  ;;  %v6928_v31 = vld [vmem:[%s8279_s1 + $0x328] sm:$0xff]  ;;  %v2382_v43 = vsel %vm2351_vm5, %v1882_v57, %v2381_v11 }
 0x1d5   : > { %9343 = vst [vmem:[#allocation11_spill] sm:$0xff] %v6923_v27  ;;  %9344 = vst [vmem:[#allocation8_spill] sm:$0xff] %v6928_v31  ;;  %v6940_v29 = vld [vmem:[%s8279_s1 + $0xa28] sm:$0xff]  ;;  %v6945_v26 = vld [vmem:[%s8279_s1 + $0xa40] sm:$0xff]  ;;  %v1791_v17 = vadd.f32 %v1790_v50, %v1789_v21  ;;  %v2383_v53 = vsel %vm2353_vm6, %v1890_v45, %v2382_v43  ;;  %3723 = vmatpush3.bf16.msra.mxu1 %v3722_v62 }
 0x1d6   : > { %9345 = vst [vmem:[#allocation23_spill] sm:$0xff] %v6940_v29  ;;  %9346 = vst [vmem:[#allocation22_spill] sm:$0xff] %v6945_v26  ;;  %v6950_v18 = vld [vmem:[%s8279_s1 + $0x4c0] sm:$0xff]  ;;  %v6955_v24 = vld [vmem:[%s8279_s1 + $0x4d8] sm:$0xff]  ;;  %3725 = vmatprep.subr.bf16.mxu1 %v3724_v44  ;;  %v9377_v29 = vpack.c.bf16 %v6708_v55, %v6703_v14 }
 0x1d7   : > { %v6960_v33 = vld [vmem:[%s8279_s1 + $0xa20] sm:$0xff]  ;;  %v6965_v49 = vld [vmem:[%s8279_s1 + $0xa38] sm:$0xff]  ;;  %v6990_v54 = vld [vmem:[%s8279_s1 + $0xa70] sm:$0xff]  ;;  %v1898_v63 = vmul.f32 0.020408163, %v1791_v17 }
 0x1d8   : > { %9347 = vst [vmem:[#allocation12_spill] sm:$0xff] %v6960_v33  ;;  %9348 = vst [vmem:[#allocation10_spill] sm:$0xff] %v6965_v49  ;;  %v6975_v56 = vld [vmem:[%s8279_s1 + $0x340] sm:$0xff]  ;;  %v6980_v57 = vld [vmem:[%s8279_s1 + $0x358] sm:$0xff] }
 0x1d9   : > { %v6985_v21 = vld [vmem:[%s8279_s1 + $0xa58] sm:$0xff]  ;;  %9350 = vst [vmem:[#allocation13_spill] sm:$0xff] %v6990_v54  ;;  %v6995_v19 = vld [vmem:[%s8279_s1 + $0x4f0] sm:$0xff]  ;;  %v7000_v45 = vld [vmem:[%s8279_s1 + $0x508] sm:$0xff]  ;;  %v7141_v16 = vsel %vm2355_vm7, %v1898_v63, %v2383_v53  ;;  %v9382_v54 = vpack.c.bf16 %v6724_v61, %v6719_v30 }
 0x1da   : > { %9349 = vst [vmem:[#allocation25_spill] sm:$0xff] %v6985_v21  ;;  %v7005_v4 = vld [vmem:[%s8279_s1 + $0xa50] sm:$0xff]  ;;  %v7010_v34 = vld [vmem:[%s8279_s1 + $0xa68] sm:$0xff]  ;;  %v7038_v35 = vld [vmem:[%s8279_s1 + $0xaa0] sm:$0xff]  ;;  %2622 = vmatmul.mubr.f32.vlgmr.msra.gmra.mrb[0].mxu0 %v7141_v16 }
 0x1db   : > { %9351 = vst [vmem:[#allocation15_spill] sm:$0xff] %v7005_v4  ;;  %9352 = vst [vmem:[#allocation24_spill] sm:$0xff] %v7010_v34  ;;  %v7023_v60 = vld [vmem:[%s8279_s1 + $0x370] sm:$0xff]  ;;  %v7028_v25 = vld [vmem:[%s8279_s1 + $0x388] sm:$0xff]  ;;  %3659 = vmatpush1.bf16.msra.mxu0 %v9377_v29  ;;  %v9378_v4 = vpack.c.bf16 %v6797_v23, %v6792_v9  ;;  %v9383_v34 = vpack.c.bf16 %v6818_v3, %v6813_v1 }
 0x1dc   : > { %v7033_v11 = vld [vmem:[%s8279_s1 + $0xa88] sm:$0xff]  ;;  %9354 = vst [vmem:[#allocation26_spill] sm:$0xff] %v7038_v35  ;;  %v7043_v43 = vld [vmem:[%s8279_s1 + $0x520] sm:$0xff]  ;;  %v7048_v10 = vld [vmem:[%s8279_s1 + $0x538] sm:$0xff]  ;;  %3661 = vmatprep.subr.bf16.mxu0 %v9382_v54 }
 0x1dd   : > { %9353 = vst [vmem:[#allocation27_spill] sm:$0xff] %v7033_v11  ;;  %v7051_v50 = vld [vmem:[%s4255_s23 + $0x18] sm:$0xff]  ;;  %v7062_v46 = vld [vmem:[%s8279_s1 + $0xa80] sm:$0xff]  ;;  %v7087_v51 = vld [vmem:[%s8279_s1 + $0xad0] sm:$0xff]  ;;  %3727 = vmatpush3.bf16.msra.mxu1 %v9378_v4 }
 0x1de   : > { %9355 = vst [vmem:[#allocation29_spill] sm:$0xff] %v7051_v50  ;;  %9356 = vst [vmem:[#allocation14_spill] sm:$0xff] %v7062_v46  ;;  %v7067_v15 = vld [vmem:[%s8279_s1 + $0xa98] sm:$0xff]  ;;  %v7072_v62 = vld [vmem:[%s8279_s1 + $0x3a0] sm:$0xff]  ;;  %3729 = vmatprep.subr.bf16.mxu1 %v9383_v34  ;;  %v9396_v46 = vpack.c.bf16 %v6838_v32, %v6833_v7 }
 0x1df   : > { %9357 = vst [vmem:[#allocation17_spill] sm:$0xff] %v7067_v15  ;;  %9358 = vst [vmem:[#allocation28_spill] sm:$0xff] %v7072_v62  ;;  %v7077_v17 = vld [vmem:[%s8279_s1 + $0x3b8] sm:$0xff]  ;;  %v7103_v59 = vld [vmem:[%s8279_s1 + $0x550] sm:$0xff] }
 0x1e0   : > { %9359 = vst [vmem:[#allocation32_spill] sm:$0xff] %v7077_v17  ;;  %9361 = vst [vmem:[#allocation64_spill] sm:$0xff] %v7087_v51  ;;  %v7090_v6 = vld [vmem:[%s4255_s23 + $0x38] sm:$0xff]  ;;  %v7108_v44 = vld [vmem:[%s8279_s1 + $0x568] sm:$0xff]  ;;  %v9395_v51 = vpack.c.bf16 %v6744_v8, %v6739_v38 }
 0x1e1   : > { %v7113_v2 = vld [vmem:[%s8279_s1 + $0xab0] sm:$0xff]  ;;  %v7118_v41 = vld [vmem:[%s8279_s1 + $0xac8] sm:$0xff]  ;;  %v7138_v40 = vld [vmem:[%s8279_s1 + $0xb00] sm:$0xff]  ;;  %9368 = vst [vmem:[#allocation66_spill] sm:$0xff] %v7141_v16  ;;  %3731 = vmatpush3.bf16.msra.mxu1 %v9396_v46  ;;  %v9402_v46 = vpack.c.bf16 %v6863_v52, %v6858_v22 }
 0x1e2   : > { %9362 = vst [vmem:[#allocation30_spill] sm:$0xff] %v7113_v2  ;;  %9363 = vst [vmem:[#allocation31_spill] sm:$0xff] %v7118_v41  ;;  %v7123_v48 = vld [vmem:[%s8279_s1 + $0x3d0] sm:$0xff]  ;;  %v7128_v5 = vld [vmem:[%s8279_s1 + $0x3e8] sm:$0xff]  ;;  %3663 = vmatpush1.bf16.msra.mxu0 %v9395_v51  ;;  %v9401_v51 = vpack.c.bf16 %v6764_v12, %v6759_v47  ;;  %v9410_v12 = vpack.c.bf16 %v6784_v37, %v6779_v39  ;;  %v9411_v47 = vpack.c.bf16 %v6883_v28, %v6878_v13 }
 0x1e3   : > { %9364 = vst [vmem:[#allocation40_spill] sm:$0xff] %v7123_v48  ;;  %9365 = vst [vmem:[#allocation39_spill] sm:$0xff] %v7128_v5  ;;  %v7133_v20 = vld [vmem:[%s8279_s1 + $0xae8] sm:$0xff]  ;;  %v7152_v0 = vld [vmem:[%s8279_s1 + $0x580] sm:$0xff]  ;;  %3733 = vmatprep.subr.bf16.mxu1 %v9402_v46 }
 0x1e4   : > { %9366 = vst [vmem:[#allocation42_spill] sm:$0xff] %v7133_v20  ;;  %9367 = vst [vmem:[#allocation41_spill] sm:$0xff] %v7138_v40  ;;  %v7157_v63 = vld [vmem:[%s8279_s1 + $0x598] sm:$0xff]  ;;  %v7162_v53 = vld [vmem:[%s8279_s1 + $0xae0] sm:$0xff]  ;;  %3665 = vmatprep.subr.bf16.mxu0 %v9401_v51 }
 0x1e5   : > { %9369 = vst [vmem:[#allocation35_spill] sm:$0xff] %v7152_v0  ;;  %9370 = vst [vmem:[#allocation50_spill] sm:$0xff] %v7157_v63  ;;  %v7167_v36 = vld [vmem:[%s8279_s1 + $0xaf8] sm:$0xff]  ;;  %v7172_v31 = vld [vmem:[%s8279_s1 + $0x400] sm:$0xff]  ;;  %3735 = vmatpush3.bf16.msra.mxu1 %v9411_v47 }
 0x1e6   : > { %9371 = vst [vmem:[#allocation71_spill] sm:$0xff] %v7162_v53  ;;  %9372 = vst [vmem:[#allocation52_spill] sm:$0xff] %v7167_v36  ;;  %v7186_v16 = vld [vmem:[%s8279_s1 + $0x418] sm:$0xff]  ;;  %v7196_v33 = vld [vmem:[%s8279_s1 + $0xb30] sm:$0xff]  ;;  %3667 = vmatpush1.bf16.msra.mxu0 %v9410_v12 }
 0x1e7   : > { %9373 = vst [vmem:[#allocation34_spill] sm:$0xff] %v7172_v31  ;;  %9374 = vst [vmem:[#allocation72_spill] sm:$0xff] %v7186_v16  ;;  %v7191_v27 = vld [vmem:[%s8279_s1 + $0xb18] sm:$0xff]  ;;  %v7216_v26 = vld [vmem:[%s8279_s1 + $0x5b0] sm:$0xff] }
 0x1e8   : > { %9375 = vst [vmem:[#allocation73_spill] sm:$0xff] %v7191_v27  ;;  %9376 = vst [vmem:[#allocation74_spill] sm:$0xff] %v7196_v33  ;;  %v7199_v49 = vld [vmem:[%s4255_s23 + $0x58] sm:$0xff]  ;;  %v7221_v14 = vld [vmem:[%s8279_s1 + $0x5c8] sm:$0xff] }
 0x1e9   : > { %9379 = vst [vmem:[#allocation75_spill] sm:$0xff] %v7216_v26  ;;  %9380 = vst [vmem:[#allocation46_spill] sm:$0xff] %v7221_v14  ;;  %v7226_v55 = vld [vmem:[%s8279_s1 + $0xb10] sm:$0xff]  ;;  %v7229_v9 = vld [vmem:[%s4255_s23 + $0x78] sm:$0xff] }
 0x1ea   : > { %9381 = vst [vmem:[#allocation45_spill] sm:$0xff] %v7226_v55  ;;  %v7232_v23 = vld [vmem:[%s4255_s23 + $0x98] sm:$0xff]  ;;  %v7256_v30 = vld [vmem:[%s8279_s1 + $0xb28] sm:$0xff]  ;;  %v7261_v61 = vld [vmem:[%s8279_s1 + $0x430] sm:$0xff] }
 0x1eb   : > { %v7235_v29 = vld [vmem:[%s4255_s23 + $0xb8] sm:$0xff]  ;;  %9384 = vst [vmem:[#allocation77_spill] sm:$0xff] %v7256_v30  ;;  %9385 = vst [vmem:[#allocation78_spill] sm:$0xff] %v7261_v61  ;;  %v7266_v1 = vld [vmem:[%s8279_s1 + $0x448] sm:$0xff] }
 0x1ec   : > { %v7238_v4 = vld [vmem:[%s4255_s23 + $0xd8] sm:$0x11]  ;;  %9386 = vst [vmem:[#allocation79_spill] sm:$0xff] %v7266_v1  ;;  %v9415_v12 = vld [vmem:[#allocation2_spill] sm:$0xff]  ;;  %v9416_v13 = vld [vmem:[#allocation3_spill] sm:$0xff]  ;;  %v9455_v39 = vunpack.c.h.bf16 %v7235_v29 }
 0x1ed   : > { %v7269_v3 = vld [vmem:[%s4255_s23 + $0xf8] sm:$0xff]  ;;  %v9417_v28 = vpack.c.bf16 %v9415_v12, %v9416_v13  ;;  %v9418_v47 = vld [vmem:[#allocation7_spill] sm:$0xff]  ;;  %v9423_v12 = vld [vmem:[#allocation44_spill] sm:$0xff] }
 0x1ee   : > { %v7272_v54 = vld [vmem:[%s4255_s23 + $0x118] sm:$0xff]  ;;  %v9419_v31 = vpack.c.bf16 %v6908_v58, %v9418_v47  ;;  %2764 = vmatmul.mubr.f32.vlgmr.msra.gmra.mrb[0].mxu1 %v9423_v12  ;;  %v9425_v37 = vld [vmem:[#allocation67_spill] sm:$0xff] }
 0x1ef   : > { %v7275_v34 = vld [vmem:[%s4255_s23 + $0x138] sm:$0xff]  ;;  %3669 = vmatprep.subr.bf16.mxu0 %v9417_v28 }
 0x1f0   : > { %9387 = vst [vmem:[#allocation38_spill] sm:$0xff] %v7275_v34  ;;  %v7278_v21 = vld [vmem:[%s4255_s23 + $0x158] sm:$0xff]  ;;  %3737 = vmatprep.subr.bf16.mxu1 %v9419_v31 }
 0x1f1   : > { %9388 = vst [vmem:[#allocation53_spill] sm:$0xff] %v7278_v21  ;;  %v7290_v15 = vld [vmem:[%s4255_s23 + $0x178] sm:$0xff] }
 0x1f2   : > { %9389 = vst [vmem:[#allocation47_spill] sm:$0xff] %v7290_v15  ;;  %v7293_v62 = vld [vmem:[%s4255_s23 + $0x198] sm:$0xff] }
 0x1f3   : > { %9390 = vst [vmem:[#allocation16_spill] sm:$0xff] %v7293_v62  ;;  %v7296_v17 = vld [vmem:[%s4255_s23 + $0x1b8] sm:$0x11] }
 0x1f4   : > { %9391 = vst [vmem:[#allocation49_spill] sm:$0xff] %v7296_v17  ;;  %v7299_v11 = vld [vmem:[%s4255_s23 + $0x1d8] sm:$0xff] }
 0x1f5   : > { %9392 = vst [vmem:[#allocation54_spill] sm:$0xff] %v7299_v11  ;;  %v7310_v20 = vld [vmem:[%s4255_s23 + $0x1f8] sm:$0xff] }
 0x1f6   : > { %9393 = vst [vmem:[#allocation36_spill] sm:$0xff] %v7310_v20  ;;  %v7313_v40 = vld [vmem:[%s4255_s23 + $0x218] sm:$0xff] }
 0x1f7   : > { %9394 = vst [vmem:[#allocation55_spill] sm:$0xff] %v7313_v40  ;;  %v7316_v2 = vld [vmem:[%s4255_s23 + $0x238] sm:$0xff] }
 0x1f8   : > { %v7334_v53 = vld [vmem:[%s4255_s23 + $0x278] sm:$0xff] }
 0x1f9   : > { %9397 = vst [vmem:[#allocation33_spill] sm:$0xff] %v7334_v53  ;;  %v7337_v38 = vld [vmem:[%s4255_s23 + $0x298] sm:$0x11] }
 0x1fa   : > { %9398 = vst [vmem:[#allocation51_spill] sm:$0xff] %v7337_v38  ;;  %v7340_v8 = vld [vmem:[%s4255_s23 + $0x2b8] sm:$0xff] }
 0x1fb   : > { %9399 = vst [vmem:[#allocation61_spill] sm:$0xff] %v7340_v8  ;;  %v7343_v7 = vld [vmem:[%s4255_s23 + $0x2d8] sm:$0xff] }
 0x1fc   : > { %9400 = vst [vmem:[#allocation56_spill] sm:$0xff] %v7343_v7  ;;  %v7353_v27 = vld [vmem:[%s4255_s23 + $0x2f8] sm:$0xff] }
 0x1fd   : > { %9403 = vst [vmem:[#allocation62_spill] sm:$0xff] %v7353_v27  ;;  %v7356_v33 = vld [vmem:[%s4255_s23 + $0x318] sm:$0xff] }
 0x1fe   : > { %9404 = vst [vmem:[#allocation69_spill] sm:$0xff] %v7356_v33  ;;  %v7359_v35 = vld [vmem:[%s4255_s23 + $0x338] sm:$0xff]  ;;  %v9429_v33 = vld [vmem:[#allocation11_spill] sm:$0xff] }
 0x1ff   : > { %9405 = vst [vmem:[#allocation81_spill] sm:$0xff] %v7359_v35  ;;  %v7362_v55 = vld [vmem:[%s4255_s23 + $0x358] sm:$0xff]  ;;  %v9428_v35 = vld [vmem:[#allocation8_spill] sm:$0xff] }
 0x200   : > { %9406 = vst [vmem:[#allocation59_spill] sm:$0xff] %v7362_v55  ;;  %v7369_v52 = vld [vmem:[%s4255_s23 + $0x378] sm:$0x11]  ;;  %v9430_v27 = vpack.c.bf16 %v9428_v35, %v9429_v33  ;;  %v9432_v33 = vld [vmem:[#allocation19_spill] sm:$0xff]  ;;  %v9434_v35 = vpack.c.bf16 %v6955_v24, %v6950_v18  ;;  %v9439_v24 = vld [vmem:[#allocation6_spill] sm:$0xff] }
 0x201   : > { %v7372_v51 = vld [vmem:[%s4255_s23 + $0x398] sm:$0xff] }
 0x202   : > { %v7375_v46 = vld [vmem:[%s4255_s23 + $0x3b8] sm:$0xff]  ;;  %3739 = vmatpush3.bf16.msra.mxu1 %v9430_v27 }
 0x203   : > { %9407 = vst [vmem:[#allocation57_spill] sm:$0xff] %v7375_v46  ;;  %v7378_v30 = vld [vmem:[%s4255_s23 + $0x3d8] sm:$0xff]  ;;  %3741 = vmatprep.subr.bf16.mxu1 %v9434_v35 }
 0x204   : > { %9408 = vst [vmem:[#allocation60_spill] sm:$0xff] %v7378_v30  ;;  %v7385_v22 = vld [vmem:[%s4255_s23 + $0x3f8] sm:$0xff] }
 0x205   : > { %v7388_v61 = vld [vmem:[%s4255_s23 + $0x418] sm:$0xff] }
 0x206   : > { %v7391_v1 = vld [vmem:[%s4255_s23 + $0x438] sm:$0xff] }
 0x207   : > { %9409 = vst [vmem:[#allocation63_spill] sm:$0xff] %v7391_v1  ;;  %v7404_v14 = vld [vmem:[%s4255_s23 + $0x458] sm:$0x11] }
 0x208   : > { %9412 = vst [vmem:[#allocation65_spill] sm:$0xff] %v7404_v14  ;;  %v7407_v41 = vld [vmem:[%s4255_s23 + $0x478] sm:$0xff]  ;;  %v9441_v14 = vpack.c.bf16 %v6980_v57, %v6975_v56  ;;  %v9450_v57 = vld [vmem:[#allocation20_spill] sm:$0xff] }
 0x209   : > { %9413 = vst [vmem:[#allocation70_spill] sm:$0xff] %v7407_v41  ;;  %v7410_v26 = vld [vmem:[%s4255_s23 + $0x498] sm:$0xff]  ;;  %v9436_v41 = vld [vmem:[#allocation43_spill] sm:$0xff] }
 0x20a   : > { %9414 = vst [vmem:[#allocation76_spill] sm:$0xff] %v7410_v26  ;;  %v7423_v16 = vld [vmem:[%s4255_s23 + $0x4b8] sm:$0xff]  ;;  %2833 = vmatprep.mubr.f32.mxu1 %v9436_v41  ;;  %v9438_v26 = vld [vmem:[#allocation4_spill] sm:$0xff]  ;;  %3743 = vmatpush3.bf16.msra.mxu1 %v9441_v14  ;;  %v9449_v14 = vunpack.c.h.bf16 %v7229_v9  ;;  %v9456_v41 = vunpack.c.h.bf16 %v7238_v4 }
 0x20b   : > { %9420 = vst [vmem:[#allocation48_spill] sm:$0xff] %v7423_v16  ;;  %v7426_v0 = vld [vmem:[%s4255_s23 + $0x4d8] sm:$0xff]  ;;  %v9457_v16 = vld [vmem:[#allocation22_spill] sm:$0xff] }
 0x20c   : > { %9421 = vst [vmem:[#allocation2_spill] sm:$0xff] %v7426_v0  ;;  %v7429_v32 = vld [vmem:[%s4255_s23 + $0x4f8] sm:$0xff]  ;;  %v9443_v0 = vld [vmem:[#allocation80_spill] sm:$0xff] }
 0x20d   : > { %9422 = vst [vmem:[#allocation3_spill] sm:$0xff] %v7429_v32  ;;  %v7436_v28 = vld [vmem:[%s4255_s23 + $0x518] sm:$0xff]  ;;  %v9440_v32 = vpack.c.bf16 %v9438_v26, %v9439_v24  ;;  %v9445_v26 = vpack.c.bf16 %v7000_v45, %v6995_v19  ;;  %v9447_v19 = vunpack.c.h.bf16 %v7090_v6  ;;  %v1052_v24 = vsel %vm1046_vm8, %v9449_v14, 0.0 }
 0x20e   : > { %v7439_v58 = vld [vmem:[%s4255_s23 + $0x538] sm:$0x11]  ;;  %v1059_v14 = vsel %vm1058_vm9, %v9456_v41, 0.0 }
 0x20f   : > { %v7442_v31 = vld [vmem:[%s4255_s23 + $0x558] sm:$0xff]  ;;  %3745 = vmatprep.subr.bf16.mxu1 %v9445_v26  ;;  %v1048_v45 = vsel %vm1046_vm8, %v9447_v19, 0.0 }
 0x210   : > { %v7450_v13 = vld [vmem:[%s4255_s23 + $0x578] sm:$0xff] }
 0x211   : > { %v7453_v63 = vld [vmem:[%s4255_s23 + $0x598] sm:$0xff] }
 0x212   : > { %v7456_v48 = vld [vmem:[%s4255_s23 + $0x5b8] sm:$0xff] }
 0x213   : > { %9424 = vst [vmem:[#allocation7_spill] sm:$0xff] %v7456_v48  ;;  %v9426_v55 = vld [vmem:[#allocation5_spill] sm:$0xff] }
 0x214   : > { %v9427_v12 = vpack.c.bf16 %v9425_v37, %v9426_v55  ;;  %v7469_v7 = vld [vmem:[%s4255_s23 + $0x5d8] sm:$0xff]  ;;  %v9453_v37 = vpack.c.bf16 %v7028_v25, %v7023_v60  ;;  %v9460_v25 = vpack.c.bf16 %v7048_v10, %v7043_v43  ;;  %v9461_v60 = vunpack.c.h.bf16 %v7269_v3 }
 0x215   : > { %v7472_v5 = vld [vmem:[%s4255_s23 + $0x5f8] sm:$0xff]  ;;  %v9465_v10 = vunpack.c.h.bf16 %v7290_v15 }
 0x216   : > { %3671 = vmatpush1.bf16.msra.mxu0 %v9427_v12  ;;  %v7475_v47 = vld [vmem:[%s4255_s23 + $0x618] sm:$0x11]  ;;  %v9431_v12 = vld [vmem:[#allocation68_spill] sm:$0xff]  ;;  %3747 = vmatpush3.bf16.msra.mxu1 %v9453_v37  ;;  %v1158_v37 = vsel %vm1046_vm8, %v9461_v60, 0.0  ;;  %v9467_v60 = vunpack.c.h.bf16 %v7296_v17 }
 0x217   : > { %v9433_v27 = vpack.c.bf16 %v9431_v12, %v9432_v33  ;;  %v7488_v30 = vld [vmem:[%s4255_s23 + $0x638] sm:$0xff]  ;;  %v9454_v12 = vunpack.c.h.bf16 %v7232_v23  ;;  %3749 = vmatprep.subr.bf16.mxu1 %v9460_v25  ;;  %v1165_v43 = vsel %vm1046_vm8, %v9465_v10, 0.0  ;;  %v9472_v10 = vld [vmem:[#allocation12_spill] sm:$0xff] }
 0x218   : > { %v7491_v46 = vld [vmem:[%s4255_s23 + $0x658] sm:$0xff]  ;;  %v9475_v17 = vld [vmem:[#allocation28_spill] sm:$0xff] }
 0x219   : > { %3673 = vmatprep.subr.bf16.mxu0 %v9433_v27  ;;  %v7494_v36 = vld [vmem:[%s4255_s23 + $0x678] sm:$0xff]  ;;  %v1054_v19 = vsel %vm1046_vm8, %v9454_v12, 0.0  ;;  %v9462_v12 = vunpack.c.h.bf16 %v7272_v54 }
 0x21a   : > { %v7501_v33 = vld [vmem:[%s4255_s23 + $0x698] sm:$0xff]  ;;  %3675 = vmatpush1.bf16.msra.mxu0 %v9440_v32 }
 0x21b   : > { %v7504_v27 = vld [vmem:[%s4255_s23 + $0x6b8] sm:$0xff] }
 0x21c   : > { %v7507_v18 = vld [vmem:[%s4255_s23 + $0x6d8] sm:$0xff] }
 0x21d   : > { %9435 = vst [vmem:[#allocation44_spill] sm:$0xff] %v7507_v18  ;;  %v7515_v55 = vld [vmem:[%s4255_s23 + $0x6f8] sm:$0x11] }
 0x21e   : > { %9437 = vst [vmem:[#allocation67_spill] sm:$0xff] %v7515_v55  ;;  %v9442_v35 = vld [vmem:[#allocation9_spill] sm:$0xff] }
 0x21f   : > { %v9444_v48 = vpack.c.bf16 %v9442_v35, %v9443_v0  ;;  %v9448_v35 = vunpack.c.h.bf16 %v7199_v49  ;;  %v9451_v56 = vld [vmem:[#allocation21_spill] sm:$0xff] }
 0x220   : > { %v9452_v32 = vpack.c.bf16 %v9450_v57, %v9451_v56  ;;  %v9458_v56 = vld [vmem:[#allocation23_spill] sm:$0xff]  ;;  %v9463_v57 = vunpack.c.h.bf16 %v7275_v34  ;;  %v9479_v34 = vld [vmem:[#allocation25_spill] sm:$0xff] }
 0x221   : > { %3677 = vmatprep.subr.bf16.mxu0 %v9444_v48  ;;  %v9446_v48 = vunpack.c.h.bf16 %v7051_v50  ;;  %v1050_v26 = vsel %vm1046_vm8, %v9448_v35, 0.0  ;;  %v1056_v35 = vsel %vm1046_vm8, %v9455_v39, 0.0  ;;  %v1159_v39 = vsel %vm1046_vm8, %v9462_v12, 0.0 }
 0x222   : > { %3679 = vmatpush1.bf16.msra.mxu0 %v9452_v32  ;;  %v9459_v32 = vpack.c.bf16 %v9457_v16, %v9458_v56  ;;  %v1161_v41 = vsel %vm1046_vm8, %v9463_v57, 0.0  ;;  %v1160_v56 = vadd.f32 %v1159_v39, %v1158_v37  ;;  %v1169_v12 = vsel %vm1058_vm9, %v9467_v60, 0.0  ;;  %v9471_v39 = vld [vmem:[#allocation10_spill] sm:$0xff] }
 0x223   : > { %v1047_v0 = vsel %vm1046_vm8, %v9446_v48, 0.0  ;;  %v9468_v57 = vunpack.c.h.bf16 %v7299_v11 }
 0x224   : > { %v1049_v48 = vadd.f32 %v1048_v45, %v1047_v0  ;;  %3681 = vmatprep.subr.bf16.mxu0 %v9459_v32  ;;  %v9464_v0 = vunpack.c.h.bf16 %v7278_v21  ;;  %v9466_v32 = vunpack.c.h.bf16 %v7293_v62  ;;  %v9473_v62 = vpack.c.bf16 %v9471_v39, %v9472_v10 }
 0x225   : > { %v1268_v50 = vsel %vm1046_vm8, %v9468_v57, 0.0  ;;  %v1162_v11 = vadd.f32 %v1161_v41, %v1160_v56  ;;  %v9477_v57 = vunpack.c.h.bf16 %v7316_v2 }
 0x226   : > { %v1163_v16 = vsel %vm1046_vm8, %v9464_v0, 0.0  ;;  %v1051_v45 = vadd.f32 %v1050_v26, %v1049_v48  ;;  %v1167_v25 = vsel %vm1046_vm8, %v9466_v32, 0.0  ;;  %v9469_v0 = vunpack.c.h.bf16 %v7310_v20  ;;  %3683 = vmatpush1.bf16.msra.mxu0 %v9473_v62  ;;  %v9474_v32 = vld [vmem:[#allocation32_spill] sm:$0xff] }
 0x227   : > { %v9470_v48 = vunpack.c.h.bf16 %v7313_v40  ;;  %v9476_v15 = vpack.c.bf16 %v9474_v32, %v9475_v17  ;;  %v1273_v20 = vsel %vm1046_vm8, %v9477_v57, 0.0  ;;  %v9482_v62 = vunpack.c.h.bf16 %v7319_v42  ;;  %v9488_v32 = vld [vmem:[#allocation62_spill] sm:$0xff] }
 0x228   : > { %v1269_v26 = vsel %vm1046_vm8, %v9469_v0, 0.0  ;;  %v1053_v60 = vadd.f32 %v1052_v24, %v1051_v45  ;;  %v9478_v0 = vld [vmem:[#allocation13_spill] sm:$0xff]  ;;  %v9484_v24 = vunpack.c.h.bf16 %v7337_v38  ;;  %v9485_v45 = vunpack.c.h.bf16 %v7340_v8  ;;  %v9506_v38 = vld [vmem:[#allocation35_spill] sm:$0xff] }
 0x229   : > { %v1271_v37 = vsel %vm1046_vm8, %v9470_v48, 0.0  ;;  %3751 = vmatpush3.bf16.msra.mxu1 %v9476_v15  ;;  %v1270_v21 = vadd.f32 %v1269_v26, %v1268_v50  ;;  %v9480_v40 = vpack.c.bf16 %v9478_v0, %v9479_v34  ;;  %v9481_v48 = vpack.c.bf16 %v7108_v44, %v7103_v59  ;;  %v9486_v44 = vld [vmem:[#allocation56_spill] sm:$0xff] }
 0x22a   : > { %v1275_v17 = vsel %vm1046_vm8, %v9482_v62, 0.0  ;;  %v9483_v15 = vunpack.c.h.bf16 %v7334_v53  ;;  %v1279_v41 = vsel %vm1058_vm9, %v9484_v24, 0.0  ;;  %v1055_v34 = vadd.f32 %v1054_v19, %v1053_v60  ;;  %v9492_v24 = vld [vmem:[#allocation81_spill] sm:$0xff]  ;;  %v9494_v19 = vld [vmem:[#allocation24_spill] sm:$0xff] }
 0x22b   : > { %3685 = vmatprep.subr.bf16.mxu0 %v9480_v40  ;;  %3753 = vmatprep.subr.bf16.mxu1 %v9481_v48  ;;  %v1378_v40 = vsel %vm1046_vm8, %v9485_v45, 0.0  ;;  %v1164_v56 = vadd.f32 %v1163_v16, %v1162_v11  ;;  %v1272_v59 = vadd.f32 %v1271_v37, %v1270_v21  ;;  %v9487_v26 = vunpack.c.h.bf16 %v9486_v44  ;;  %v9490_v48 = vld [vmem:[#allocation69_spill] sm:$0xff]  ;;  %v9495_v11 = vld [vmem:[#allocation15_spill] sm:$0xff]  ;;  %v9498_v37 = vld [vmem:[#allocation40_spill] sm:$0xff] }
 0x22c   : > { %v1277_v50 = vsel %vm1046_vm8, %v9483_v15, 0.0  ;;  %v9489_v57 = vunpack.c.h.bf16 %v9488_v32  ;;  %v9491_v62 = vunpack.c.h.bf16 %v9490_v48  ;;  %v9493_v8 = vunpack.c.h.bf16 %v9492_v24  ;;  %v9497_v16 = vld [vmem:[#allocation39_spill] sm:$0xff] }
 0x22d   : > { %v1379_v39 = vsel %vm1046_vm8, %v9487_v26, 0.0  ;;  %v9496_v21 = vpack.c.bf16 %v9494_v19, %v9495_v11  ;;  %v9499_v60 = vpack.c.bf16 %v9497_v16, %v9498_v37  ;;  %v1166_v26 = vadd.f32 %v1165_v43, %v1164_v56  ;;  %v9503_v44 = vld [vmem:[#allocation27_spill] sm:$0xff]  ;;  %v9510_v43 = vld [vmem:[#allocation57_spill] sm:$0xff] }
 0x22e   : > { %v1380_v10 = vadd.f32 %v1379_v39, %v1378_v40  ;;  %v1381_v0 = vsel %vm1046_vm8, %v9489_v57, 0.0  ;;  %v1383_v15 = vsel %vm1046_vm8, %v9491_v62, 0.0  ;;  %v1385_v45 = vsel %vm1046_vm8, %v9493_v8, 0.0  ;;  %v9500_v57 = vld [vmem:[#allocation59_spill] sm:$0xff]  ;;  %v9502_v62 = vld [vmem:[#allocation26_spill] sm:$0xff] }
 0x22f   : > { %3687 = vmatpush1.bf16.msra.mxu0 %v9496_v21  ;;  %3755 = vmatpush3.bf16.msra.mxu1 %v9499_v60  ;;  %v1057_v40 = vadd.f32 %v1056_v35, %v1055_v34  ;;  %v1274_v39 = vadd.f32 %v1273_v20, %v1272_v59  ;;  %v9501_v32 = vunpack.c.h.bf16 %v9500_v57  ;;  %v9504_v24 = vpack.c.bf16 %v9502_v62, %v9503_v44  ;;  %v9505_v8 = vld [vmem:[#allocation50_spill] sm:$0xff] }
 0x230   : > { %v9507_v53 = vpack.c.bf16 %v9505_v8, %v9506_v38  ;;  %v1382_v19 = vadd.f32 %v1381_v0, %v1380_v10  ;;  %v9508_v11 = vunpack.c.h.bf16 %v7369_v52  ;;  %v9509_v35 = vunpack.c.h.bf16 %v7372_v51  ;;  %v9512_v38 = vld [vmem:[#allocation60_spill] sm:$0xff]  ;;  %v9516_v8 = vld [vmem:[#allocation17_spill] sm:$0xff] }
 0x231   : > { %v1387_v48 = vsel %vm1046_vm8, %v9501_v32, 0.0  ;;  %3689 = vmatprep.subr.bf16.mxu0 %v9504_v24  ;;  %v9511_v34 = vunpack.c.h.bf16 %v9510_v43  ;;  %v1060_v59 = vadd.f32 %v1059_v14, %v1057_v40  ;;  %v1168_v44 = vadd.f32 %v1167_v25, %v1166_v26  ;;  %v9519_v14 = vld [vmem:[#allocation72_spill] sm:$0xff]  ;;  %v9520_v25 = vld [vmem:[#allocation34_spill] sm:$0xff] }
 0x232   : > { %3757 = vmatprep.subr.bf16.mxu1 %v9507_v53  ;;  %v1389_v21 = vsel %vm1058_vm9, %v9508_v11, 0.0  ;;  %v1488_v20 = vsel %vm1046_vm8, %v9509_v35, 0.0  ;;  %v1276_v32 = vadd.f32 %v1275_v17, %v1274_v39  ;;  %v1384_v16 = vadd.f32 %v1383_v15, %v1382_v19  ;;  %v9517_v11 = vld [vmem:[#allocation14_spill] sm:$0xff]  ;;  %v9522_v19 = vld [vmem:[#allocation64_spill] sm:$0xff] }
 0x233   : > { %v1489_v56 = vsel %vm1046_vm8, %v9511_v34, 0.0  ;;  %v9513_v53 = vunpack.c.h.bf16 %v9512_v38  ;;  %v9514_v0 = vunpack.c.h.bf16 %v7385_v22  ;;  %v9515_v60 = vunpack.c.h.bf16 %v7388_v61 }
 0x234   : > { %v1490_v24 = vadd.f32 %v1489_v56, %v1488_v20  ;;  %v9518_v35 = vpack.c.bf16 %v9516_v8, %v9517_v11  ;;  %v9521_v17 = vpack.c.bf16 %v9519_v14, %v9520_v25  ;;  %v1061_v15 = vrot.slane %v1060_v59, 4  ;;  %v9523_v20 = vld [vmem:[#allocation18_spill] sm:$0xff] }
 0x235   : > { %v1491_v10 = vsel %vm1046_vm8, %v9513_v53, 0.0  ;;  %v1493_v37 = vsel %vm1046_vm8, %v9514_v0, 0.0  ;;  %v1495_v62 = vsel %vm1046_vm8, %v9515_v60, 0.0  ;;  %v1170_v40 = vadd.f32 %v1169_v12, %v1168_v44  ;;  %v9525_v56 = vld [vmem:[#allocation46_spill] sm:$0xff]  ;;  %v9526_v53 = vld [vmem:[#allocation75_spill] sm:$0xff] }
 0x236   : > { %3691 = vmatpush1.bf16.msra.mxu0 %v9518_v35  ;;  %3759 = vmatpush3.bf16.msra.mxu1 %v9521_v17  ;;  %v1278_v26 = vadd.f32 %v1277_v50, %v1276_v32  ;;  %v1492_v39 = vadd.f32 %v1491_v10, %v1490_v24  ;;  %v9524_v34 = vpack.c.bf16 %v9522_v19, %v9523_v20  ;;  %v9528_v8 = vunpack.c.h.bf16 %v7391_v1  ;;  %v9529_v35 = vld [vmem:[#allocation65_spill] sm:$0xff]  ;;  %v9531_v12 = vld [vmem:[#allocation70_spill] sm:$0xff]  ;;  %v9533_v20 = vld [vmem:[#allocation76_spill] sm:$0xff] }
 0x237   : > { %v9527_v0 = vpack.c.bf16 %v9525_v56, %v9526_v53  ;;  %v1386_v60 = vadd.f32 %v1385_v45, %v1384_v16  ;;  %v9530_v14 = vunpack.c.h.bf16 %v9529_v35  ;;  %v9532_v50 = vunpack.c.h.bf16 %v9531_v12  ;;  %v9535_v16 = vld [vmem:[#allocation48_spill] sm:$0xff]  ;;  %v9539_v12 = vld [vmem:[#allocation31_spill] sm:$0xff]  ;;  %v9540_v35 = vld [vmem:[#allocation30_spill] sm:$0xff] }
 0x238   : > { %3693 = vmatprep.subr.bf16.mxu0 %v9524_v34  ;;  %v1497_v11 = vsel %vm1046_vm8, %v9528_v8, 0.0  ;;  %v1062_v32 = vadd.f32 %v1061_v15, %v1060_v59  ;;  %v1171_v24 = vrot.slane %v1170_v40, 4  ;;  %v1280_v10 = vadd.f32 %v1279_v41, %v1278_v26  ;;  %v9542_v59 = vld [vmem:[#allocation79_spill] sm:$0xff]  ;;  %v9543_v41 = vld [vmem:[#allocation78_spill] sm:$0xff] }
 0x239   : > { %3761 = vmatprep.subr.bf16.mxu1 %v9527_v0  ;;  %v1499_v25 = vsel %vm1058_vm9, %v9530_v14, 0.0  ;;  %v1598_v44 = vsel %vm1046_vm8, %v9532_v50, 0.0  ;;  %v1494_v17 = vadd.f32 %v1493_v37, %v1492_v39  ;;  %v1388_v19 = vadd.f32 %v1387_v48, %v1386_v60  ;;  %v9537_v0 = vld [vmem:[#allocation2_spill] sm:$0xff]  ;;  %v9545_v60 = vld [vmem:[#allocation41_spill] sm:$0xff] }
 0x23a   : > { %v9534_v34 = vunpack.c.h.bf16 %v9533_v20  ;;  %v9536_v56 = vunpack.c.h.bf16 %v9535_v16  ;;  %v9538_v8 = vunpack.c.h.bf16 %v9537_v0  ;;  %v9541_v50 = vpack.c.bf16 %v9539_v12, %v9540_v35  ;;  %v9548_v20 = vld [vmem:[#allocation3_spill] sm:$0xff] }
 0x23b   : > { %v9544_v37 = vpack.c.bf16 %v9542_v59, %v9543_v41  ;;  %v1063_v48 = vrot.slane %v1062_v32, 2  ;;  %v1172_v15 = vadd.f32 %v1171_v24, %v1170_v40  ;;  %v1281_v26 = vrot.slane %v1280_v10, 4 }
 0x23c   : > { %v1599_v45 = vsel %vm1046_vm8, %v9534_v34, 0.0  ;;  %v1601_v53 = vsel %vm1046_vm8, %v9536_v56, 0.0  ;;  %v1603_v14 = vsel %vm1046_vm8, %v9538_v8, 0.0  ;;  %3695 = vmatpush1.bf16.msra.mxu0 %v9541_v50  ;;  %v1496_v39 = vadd.f32 %v1495_v62, %v1494_v17  ;;  %v9546_v34 = vld [vmem:[#allocation42_spill] sm:$0xff] }
 0x23d   : > { %3763 = vmatpush3.bf16.msra.mxu1 %v9544_v37  ;;  %v9547_v16 = vpack.c.bf16 %v9545_v60, %v9546_v34  ;;  %v1390_v56 = vadd.f32 %v1389_v21, %v1388_v19  ;;  %v1600_v0 = vadd.f32 %v1599_v45, %v1598_v44  ;;  %v9549_v8 = vunpack.c.h.bf16 %v9548_v20  ;;  %v9553_v19 = vld [vmem:[#allocation52_spill] sm:$0xff]  ;;  %v9554_v45 = vld [vmem:[#allocation71_spill] sm:$0xff] }
 0x23e   : > { %v9550_v35 = vunpack.c.h.bf16 %v7436_v28  ;;  %v1064_v50 = vadd.f32 %v1063_v48, %v1062_v32  ;;  %v1173_v59 = vrot.slane %v1172_v15, 2  ;;  %v1282_v41 = vadd.f32 %v1281_v26, %v1280_v10  ;;  %v9556_v10 = vld [vmem:[#allocation74_spill] sm:$0xff] }
 0x23f   : > { %3697 = vmatprep.subr.bf16.mxu0 %v9547_v16  ;;  %v1605_v1 = vsel %vm1046_vm8, %v9549_v8, 0.0  ;;  %v1498_v40 = vadd.f32 %v1497_v11, %v1496_v39  ;;  %v1391_v24 = vrot.slane %v1390_v56, 4  ;;  %v1602_v62 = vadd.f32 %v1601_v53, %v1600_v0  ;;  %v9557_v11 = vld [vmem:[#allocation73_spill] sm:$0xff] }
 0x240   : > { %v1607_v12 = vsel %vm1046_vm8, %v9550_v35, 0.0  ;;  %v9551_v17 = vunpack.c.h.bf16 %v7439_v58  ;;  %v9552_v21 = vunpack.c.h.bf16 %v7442_v31  ;;  %v9555_v37 = vpack.c.bf16 %v9553_v19, %v9554_v45 }
 0x241   : > { %v1065_v60 = vrot.slane %v1064_v50, 1  ;;  %v1174_v34 = vadd.f32 %v1173_v59, %v1172_v15  ;;  %v1283_v32 = vrot.slane %v1282_v41, 2  ;;  %v1500_v48 = vadd.f32 %v1499_v25, %v1498_v40 }
 0x242   : > { %v1609_v16 = vsel %vm1058_vm9, %v9551_v17, 0.0  ;;  %v1708_v44 = vsel %vm1046_vm8, %v9552_v21, 0.0  ;;  %3699 = vmatpush1.bf16.msra.mxu0 %v9555_v37  ;;  %v9558_v26 = vpack.c.bf16 %v9556_v10, %v9557_v11  ;;  %v1392_v53 = vadd.f32 %v1391_v24, %v1390_v56  ;;  %v9561_v37 = vld [vmem:[#allocation7_spill] sm:$0xff]  ;;  %v9564_v24 = vld [vmem:[#allocation45_spill] sm:$0xff] }
 0x243   : > { %v1604_v0 = vadd.f32 %v1603_v14, %v1602_v62  ;;  %v9559_v39 = vunpack.c.h.bf16 %v7450_v13  ;;  %v9560_v35 = vunpack.c.h.bf16 %v7453_v63  ;;  %v1066_v21 = vadd.f32 %v1065_v60, %v1064_v50  ;;  %v9563_v14 = vld [vmem:[#allocation77_spill] sm:$0xff] }
 0x244   : > { %3701 = vmatprep.subr.bf16.mxu0 %v9558_v26  ;;  %v1175_v19 = vrot.slane %v1174_v34, 1  ;;  %v1284_v45 = vadd.f32 %v1283_v32, %v1282_v41  ;;  %v1501_v15 = vrot.slane %v1500_v48, 4  ;;  %v1393_v59 = vrot.slane %v1392_v53, 2 }
 0x245   : > { %v1709_v8 = vsel %vm1046_vm8, %v9559_v39, 0.0  ;;  %v1711_v17 = vsel %vm1046_vm8, %v9560_v35, 0.0  ;;  %v1606_v25 = vadd.f32 %v1605_v1, %v1604_v0  ;;  %v9562_v10 = vunpack.c.h.bf16 %v9561_v37 }
 0x246   : > { %v1710_v40 = vadd.f32 %v1709_v8, %v1708_v44  ;;  %v9565_v62 = vpack.c.bf16 %v9563_v14, %v9564_v24  ;;  %v1176_v11 = vadd.f32 %v1175_v19, %v1174_v34  ;;  %v1285_v26 = vrot.slane %v1284_v45, 1 }
 0x247   : > { %v1713_v56 = vsel %vm1046_vm8, %v9562_v10, 0.0  ;;  %v1502_v39 = vadd.f32 %v1501_v15, %v1500_v48  ;;  %v9566_v35 = vunpack.c.h.bf16 %v7469_v7  ;;  %v1394_v41 = vadd.f32 %v1393_v59, %v1392_v53 }
 0x248   : > { %3703 = vmatpush1.bf16.msra.mxu0 %v9565_v62  ;;  %v1608_v60 = vadd.f32 %v1607_v12, %v1606_v25  ;;  %v1712_v32 = vadd.f32 %v1711_v17, %v1710_v40  ;;  %v9567_v1 = vunpack.c.h.bf16 %v7472_v5  ;;  %v1286_v0 = vadd.f32 %v1285_v26, %v1284_v45 }
 0x249   : > { %v1715_v50 = vsel %vm1046_vm8, %v9566_v35, 0.0  ;;  %v1503_v8 = vrot.slane %v1502_v39, 2  ;;  %v9568_v10 = vunpack.c.h.bf16 %v7475_v47  ;;  %v9569_v34 = vunpack.c.h.bf16 %v7488_v30 }
 0x24a   : > { %v1717_v44 = vsel %vm1046_vm8, %v9567_v1, 0.0  ;;  %v1395_v19 = vrot.slane %v1394_v41, 1  ;;  %v1610_v15 = vadd.f32 %v1609_v16, %v1608_v60  ;;  %v1714_v24 = vadd.f32 %v1713_v56, %v1712_v32 }
 0x24b   : > { %v1719_v14 = vsel %vm1058_vm9, %v9568_v10, 0.0  ;;  %v1818_v48 = vsel %vm1046_vm8, %v9569_v34, 0.0  ;;  %v9570_v12 = vunpack.c.h.bf16 %v7491_v46  ;;  %v1504_v17 = vadd.f32 %v1503_v8, %v1502_v39 }
 0x24c   : > { %v9571_v45 = vunpack.c.h.bf16 %v7494_v36  ;;  %v9572_v40 = vunpack.c.h.bf16 %v7501_v33  ;;  %v1396_v26 = vadd.f32 %v1395_v19, %v1394_v41  ;;  %v1611_v35 = vrot.slane %v1610_v15, 4 }
 0x24d   : > { %v1819_v53 = vsel %vm1046_vm8, %v9570_v12, 0.0  ;;  %v1716_v1 = vadd.f32 %v1715_v50, %v1714_v24  ;;  %v9573_v16 = vunpack.c.h.bf16 %v7504_v27  ;;  %v1505_v60 = vrot.slane %v1504_v17, 1 }
 0x24e   : > { %v1820_v59 = vadd.f32 %v1819_v53, %v1818_v48  ;;  %v1821_v25 = vsel %vm1046_vm8, %v9571_v45, 0.0  ;;  %v1823_v62 = vsel %vm1046_vm8, %v9572_v40, 0.0  ;;  %v9574_v39 = vunpack.c.h.bf16 %v7507_v18 }
 0x24f   : > { %v1825_v56 = vsel %vm1046_vm8, %v9573_v16, 0.0  ;;  %v9575_v10 = vunpack.c.h.bf16 %v7515_v55  ;;  %v1612_v48 = vadd.f32 %v1611_v35, %v1610_v15  ;;  %v1718_v12 = vadd.f32 %v1717_v44, %v1716_v1 }
 0x250   : > { %v1822_v32 = vadd.f32 %v1821_v25, %v1820_v59  ;;  %v1827_v8 = vsel %vm1046_vm8, %v9574_v39, 0.0  ;;  %v1845_v53 = vmul.f32 0.020408163, %v1066_v21  ;;  %v1853_v41 = vmul.f32 0.020408163, %v1176_v11  ;;  %v9590_v11 = vld [vmem:[#allocation81_spill] sm:$0xff] }
 0x251   : > { %v1829_v34 = vsel %vm1058_vm9, %v9575_v10, 0.0  ;;  %v1506_v19 = vadd.f32 %v1505_v60, %v1504_v17  ;;  %v1861_v24 = vmul.f32 0.020408163, %v1286_v0  ;;  %v1869_v45 = vmul.f32 0.020408163, %v1396_v26 }
 0x252   : > { %v1824_v50 = vadd.f32 %v1823_v62, %v1822_v32  ;;  %v1613_v40 = vrot.slane %v1612_v48, 2  ;;  %v1720_v16 = vadd.f32 %v1719_v14, %v1718_v12  ;;  %v2399_v59 = vsel %vm2343_vm1, %v1853_v41, %v1845_v53  ;;  %v9577_v12 = vld [vmem:[#allocation53_spill] sm:$0xff]  ;;  %v9578_v41 = vld [vmem:[#allocation47_spill] sm:$0xff] }
 0x253   : > { %v1877_v39 = vmul.f32 0.020408163, %v1506_v19  ;;  %v2400_v55 = vsel %vm2345_vm2, %v1861_v24, %v2399_v59  ;;  %v9581_v59 = vld [vmem:[#allocation54_spill] sm:$0xff]  ;;  %v9583_v62 = vld [vmem:[#allocation55_spill] sm:$0xff]  ;;  %v9586_v32 = vld [vmem:[#allocation61_spill] sm:$0xff]  ;;  %v728_v19 = vunpack.c.l.bf16 %v7369_v52  ;;  %v856_v1 = vunpack.c.l.bf16 %v7450_v13 }
 0x254   : > { %v1826_v18 = vadd.f32 %v1825_v56, %v1824_v50  ;;  %v1614_v15 = vadd.f32 %v1613_v40, %v1612_v48  ;;  %v1721_v44 = vrot.slane %v1720_v16, 4  ;;  %v2401_v21 = vsel %vm2347_vm3, %v1869_v45, %v2400_v55  ;;  %v9576_v48 = vld [vmem:[#allocation38_spill] sm:$0xff]  ;;  %v9580_v40 = vld [vmem:[#allocation49_spill] sm:$0xff]  ;;  %v9585_v55 = vld [vmem:[#allocation51_spill] sm:$0xff] }
 0x255   : > { %v2402_v17 = vsel %vm2349_vm4, %v1877_v39, %v2401_v21  ;;  %v624_v39 = vunpack.c.l.bf16 %v9581_v59  ;;  %v672_v24 = vunpack.c.l.bf16 %v9585_v55  ;;  %v680_v59 = vunpack.c.l.bf16 %v9586_v32  ;;  %v9587_v56 = vld [vmem:[#allocation56_spill] sm:$0xff]  ;;  %v9589_v14 = vld [vmem:[#allocation69_spill] sm:$0xff] }
 0x256   : > { %v1828_v0 = vadd.f32 %v1827_v8, %v1826_v18  ;;  %v1615_v26 = vrot.slane %v1614_v15, 1  ;;  %v1722_v35 = vadd.f32 %v1721_v44, %v1720_v16  ;;  %v616_v16 = vunpack.c.l.bf16 %v9580_v40  ;;  %v9582_v44 = vld [vmem:[#allocation36_spill] sm:$0xff] }
 0x257   : > { %v632_v21 = vunpack.c.l.bf16 %v9582_v44  ;;  %v688_v44 = vunpack.c.l.bf16 %v9587_v56  ;;  %v736_v55 = vunpack.c.l.bf16 %v7372_v51  ;;  %v752_v32 = vunpack.c.l.bf16 %v9512_v38  ;;  %v9594_v52 = vld [vmem:[#allocation76_spill] sm:$0xff] }
 0x258   : > { %v1830_v60 = vadd.f32 %v1829_v34, %v1828_v0  ;;  %v1616_v18 = vadd.f32 %v1615_v26, %v1614_v15  ;;  %v1723_v8 = vrot.slane %v1722_v35, 2  ;;  %v760_v56 = vunpack.c.l.bf16 %v7385_v22  ;;  %v9593_v15 = vld [vmem:[#allocation70_spill] sm:$0xff]  ;;  %v9595_v51 = vld [vmem:[#allocation48_spill] sm:$0xff] }
 0x259   : > { %v792_v57 = vunpack.c.l.bf16 %v9593_v15  ;;  %v800_v50 = vunpack.c.l.bf16 %v9594_v52  ;;  %v824_v22 = vunpack.c.l.bf16 %v9548_v20  ;;  %v840_v26 = vunpack.c.l.bf16 %v7439_v58 }
 0x25a   : > { %v1831_v45 = vrot.slane %v1830_v60, 4  ;;  %v1724_v34 = vadd.f32 %v1723_v8, %v1722_v35  ;;  %v1885_v0 = vmul.f32 0.020408163, %v1616_v18  ;;  %v9588_v18 = vld [vmem:[#allocation62_spill] sm:$0xff]  ;;  %v864_v15 = vunpack.c.l.bf16 %v7453_v63  ;;  %v9597_v63 = vld [vmem:[#allocation44_spill] sm:$0xff] }
 0x25b   : > { %v696_v8 = vunpack.c.l.bf16 %v9588_v18  ;;  %v768_v18 = vunpack.c.l.bf16 %v7388_v61  ;;  %v872_v52 = vunpack.c.l.bf16 %v9561_v37  ;;  %v896_v20 = vunpack.c.l.bf16 %v7475_v47 }
 0x25c   : > { %v1832_v53 = vadd.f32 %v1831_v45, %v1830_v60  ;;  %v1725_v10 = vrot.slane %v1724_v34, 1  ;;  %v2403_v40 = vsel %vm2351_vm5, %v1885_v0, %v2402_v17  ;;  %v744_v17 = vunpack.c.l.bf16 %v9510_v43  ;;  %v9592_v60 = vld [vmem:[#allocation65_spill] sm:$0xff] }
 0x25d   : > { %v920_v58 = vunpack.c.l.bf16 %v7494_v36  ;;  %v936_v13 = vunpack.c.l.bf16 %v7504_v27  ;;  %v9602_v47 = vunpack.c.l.bf16 %v7090_v6  ;;  %v9605_v27 = vunpack.c.l.bf16 %v7272_v54 }
 0x25e   : > { %v1833_v35 = vrot.slane %v1832_v53, 2  ;;  %v1726_v45 = vadd.f32 %v1725_v10, %v1724_v34  ;;  %v784_v10 = vunpack.c.l.bf16 %v9592_v60  ;;  %v848_v60 = vunpack.c.l.bf16 %v7442_v31 }
 0x25f   : > { %v928_v31 = vunpack.c.l.bf16 %v7501_v33  ;;  %v9604_v33 = vunpack.c.l.bf16 %v7269_v3  ;;  %v9606_v6 = vunpack.c.l.bf16 %v7199_v49  ;;  %v9608_v3 = vunpack.c.l.bf16 %v9583_v62 }
 0x260   : > { %v1834_v25 = vadd.f32 %v1833_v35, %v1832_v53  ;;  %v1893_v0 = vmul.f32 0.020408163, %v1726_v45  ;;  %v808_v53 = vunpack.c.l.bf16 %v9595_v51  ;;  %v9596_v35 = vld [vmem:[#allocation2_spill] sm:$0xff]  ;;  %v880_v51 = vunpack.c.l.bf16 %v7469_v7 }
 0x261   : > { %v816_v38 = vunpack.c.l.bf16 %v9596_v35  ;;  %v904_v35 = vunpack.c.l.bf16 %v7488_v30  ;;  %v1480_v54 = vsel %vm959_vm0, %v784_v10, 0.0  ;;  %v1590_v49 = vsel %vm959_vm0, %v840_v26, 0.0 }
 0x262   : > { %v1835_v34 = vrot.slane %v1834_v25, 1  ;;  %v2404_v43 = vsel %vm2353_vm6, %v1893_v0, %v2403_v40  ;;  %v1255_v40 = vadd.f32 %v632_v21, %v624_v39  ;;  %v9612_v62 = vunpack.c.l.bf16 %v7232_v23 }
 0x263   : > { %v9617_v23 = vunpack.c.l.bf16 %v9590_v11 }
 0x264   : > { %v1836_v61 = vadd.f32 %v1835_v34, %v1834_v25  ;;  %v912_v25 = vunpack.c.l.bf16 %v7491_v46  ;;  %v9603_v46 = vunpack.c.l.bf16 %v7238_v4  ;;  %v1370_v4 = vsel %vm959_vm0, %v728_v19, 0.0 }
 0x265   : > { %v9607_v34 = vunpack.c.l.bf16 %v9576_v48  ;;  %v1256_v7 = vadd.f32 %v1255_v40, %v9608_v3 }
 0x266   : > { %v1901_v0 = vmul.f32 0.020408163, %v1836_v61  ;;  %v9600_v61 = vld [vmem:[#allocation29_spill] sm:$0xff]  ;;  %v1038_v36 = vsel %vm959_vm0, %v9603_v46, 0.0  ;;  %v1475_v46 = vadd.f32 %v744_v17, %v736_v55  ;;  %v1695_v17 = vadd.f32 %v856_v1, %v848_v60 }
 0x267   : > { %v9601_v45 = vunpack.c.l.bf16 %v9600_v61  ;;  %v1260_v61 = vsel %vm959_vm0, %v672_v24, 0.0 }
 0x268   : > { %v7838_v37 = vsel %vm2355_vm7, %v1901_v0, %v2404_v43  ;;  %v1145_v43 = vadd.f32 %v9605_v27, %v9604_v33  ;;  %v1150_v0 = vsel %vm959_vm0, %v616_v16, 0.0  ;;  %v1585_v33 = vadd.f32 %v800_v50, %v792_v57 }
 0x269   : > { %9598 = vst [vmem:[#allocation5_spill] sm:$0xff] %v7838_v37  ;;  %v1033_v30 = vadd.f32 %v9602_v47, %v9601_v45  ;;  %3265 = vmatprep.mubr.msk.f32.mxu0 %vm1046_vm8, %v7838_v37  ;;  %v1365_v47 = vadd.f32 %v688_v44, %v680_v59  ;;  %v9609_v16 = vunpack.c.l.bf16 %v7229_v9  ;;  %v1476_v21 = vadd.f32 %v1475_v46, %v752_v32 }
 0x26a   : > { %v1146_v37 = vadd.f32 %v1145_v43, %v9607_v34  ;;  %v9610_v59 = vunpack.c.l.bf16 %v9577_v12  ;;  %v9611_v44 = vunpack.c.l.bf16 %v7316_v2  ;;  %v1586_v55 = vadd.f32 %v1585_v33, %v808_v53 }
 0x26b   : > { %v1034_v45 = vadd.f32 %v1033_v30, %v9606_v6  ;;  %v1366_v24 = vadd.f32 %v1365_v47, %v696_v8  ;;  %v9613_v57 = vunpack.c.l.bf16 %v9589_v14  ;;  %v1477_v9 = vadd.f32 %v1476_v21, %v760_v56  ;;  %v9624_v47 = vld [vmem:[#allocation63_spill] sm:$0xff] }
 0x26c   : > { %v1147_v19 = vadd.f32 %v1146_v37, %v9610_v59  ;;  %v1257_v48 = vadd.f32 %v1256_v7, %v9611_v44  ;;  %v1700_v8 = vsel %vm959_vm0, %v896_v20, 0.0  ;;  %v9614_v32 = vunpack.c.l.bf16 %v9578_v41  ;;  %v9618_v7 = vld [vmem:[#allocation16_spill] sm:$0xff]  ;;  %v9620_v20 = vld [vmem:[#allocation33_spill] sm:$0xff] }
 0x26d   : > { %v1035_v39 = vadd.f32 %v1034_v45, %v9609_v16  ;;  %v1367_v50 = vadd.f32 %v1366_v24, %v9613_v57  ;;  %v9615_v12 = vunpack.c.l.bf16 %v7319_v42  ;;  %v1587_v34 = vadd.f32 %v1586_v55, %v816_v38  ;;  %v9622_v45 = vld [vmem:[#allocation59_spill] sm:$0xff] }
 0x26e   : > { %v1148_v26 = vadd.f32 %v1147_v19, %v9614_v32  ;;  %v1696_v2 = vadd.f32 %v1695_v17, %v864_v15  ;;  %v9616_v53 = vunpack.c.l.bf16 %v7235_v29  ;;  %v1478_v37 = vadd.f32 %v1477_v9, %v768_v18 }
 0x26f   : > { %v1036_v40 = vadd.f32 %v1035_v39, %v9612_v62  ;;  %v1258_v10 = vadd.f32 %v1257_v48, %v9615_v12  ;;  %v1368_v60 = vadd.f32 %v1367_v50, %v9617_v23  ;;  %v1805_v14 = vadd.f32 %v912_v25, %v904_v35 }
 0x270   : > { %v9619_v56 = vunpack.c.l.bf16 %v9618_v7  ;;  %v9621_v27 = vunpack.c.l.bf16 %v9620_v20  ;;  %v1588_v43 = vadd.f32 %v1587_v34, %v824_v22  ;;  %v1697_v6 = vadd.f32 %v1696_v2, %v872_v52 }
 0x271   : > { %v1037_v1 = vadd.f32 %v1036_v40, %v9616_v53  ;;  %v9623_v38 = vunpack.c.l.bf16 %v9622_v45  ;;  %v9625_v29 = vunpack.c.l.bf16 %v9624_v47  ;;  %v1806_v3 = vadd.f32 %v1805_v14, %v920_v58  ;;  %v2090_v45 = vld [vmem:[%s8279_s1 + $0x5e0] sm:$0xff] }
 0x272   : > { %v1149_v30 = vadd.f32 %v1148_v26, %v9619_v56  ;;  %v1259_v41 = vadd.f32 %v1258_v10, %v9621_v27  ;;  %v9626_v18 = vunpack.c.l.bf16 %v7436_v28  ;;  %v1698_v25 = vadd.f32 %v1697_v6, %v880_v51  ;;  %v9629_v26 = vld [vmem:[#allocation67_spill] sm:$0xff] }
 0x273   : > { %v1039_v42 = vadd.f32 %v1038_v36, %v1037_v1  ;;  %v1369_v15 = vadd.f32 %v1368_v60, %v9623_v38  ;;  %v1479_v46 = vadd.f32 %v1478_v37, %v9625_v29  ;;  %v1807_v21 = vadd.f32 %v1806_v3, %v928_v31  ;;  %v2093_v38 = vld [vmem:[%s8279_s1 + $0x5f8] sm:$0xff] }
 0x274   : > { %v1151_v11 = vadd.f32 %v1150_v0, %v1149_v30  ;;  %v1261_v33 = vadd.f32 %v1260_v61, %v1259_v41  ;;  %v1589_v35 = vadd.f32 %v1588_v43, %v9626_v18  ;;  %v9627_v59 = vunpack.c.l.bf16 %v7472_v5  ;;  %v2147_v18 = vld [vmem:[%s8279_s1 + $0x7a8] sm:$0xff] }
 0x275   : > { %v1040_v16 = vrot.slane %v1039_v42, 4  ;;  %v1371_v39 = vadd.f32 %v1370_v4, %v1369_v15  ;;  %v1481_v24 = vadd.f32 %v1480_v54, %v1479_v46  ;;  %v1808_v58 = vadd.f32 %v1807_v21, %v936_v13  ;;  %v2042_v15 = vld [vmem:[%s8279_s1 + $0x460] sm:$0xff] }
 0x276   : > { %v1152_v22 = vrot.slane %v1151_v11, 4  ;;  %v1262_v52 = vrot.slane %v1261_v33, 4  ;;  %v1591_v36 = vadd.f32 %v1590_v49, %v1589_v35  ;;  %v1699_v19 = vadd.f32 %v1698_v25, %v9627_v59  ;;  %v2099_v59 = vld [vmem:[%s8279_s1 + $0x628] sm:$0xff] }
 0x277   : > { %v1041_v44 = vadd.f32 %v1040_v16, %v1039_v42  ;;  %v1372_v48 = vrot.slane %v1371_v39, 4  ;;  %v1482_v55 = vrot.slane %v1481_v24, 4  ;;  %v9628_v4 = vunpack.c.l.bf16 %v9597_v63 }
 0x278   : > { %v1153_v0 = vadd.f32 %v1152_v22, %v1151_v11  ;;  %v1263_v61 = vadd.f32 %v1262_v52, %v1261_v33  ;;  %v1592_v17 = vrot.slane %v1591_v36, 4  ;;  %v1701_v28 = vadd.f32 %v1700_v8, %v1699_v19  ;;  %v2045_v11 = vld [vmem:[%s8279_s1 + $0x478] sm:$0xff]  ;;  %v2144_v33 = vld [vmem:[%s8279_s1 + $0x790] sm:$0xff] }
 0x279   : > { %v1042_v62 = vrot.slane %v1041_v44, 2  ;;  %v1373_v51 = vadd.f32 %v1372_v48, %v1371_v39  ;;  %v1483_v40 = vadd.f32 %v1482_v55, %v1481_v24  ;;  %v1809_v31 = vadd.f32 %v1808_v58, %v9628_v4  ;;  %v2096_v24 = vld [vmem:[%s8279_s1 + $0x610] sm:$0xff]  ;;  %v2150_v58 = vld [vmem:[%s8279_s1 + $0x7c0] sm:$0xff] }
 0x27a   : > { %v1154_v54 = vrot.slane %v1153_v0, 2  ;;  %v1264_v57 = vrot.slane %v1263_v61, 2  ;;  %v1593_v49 = vadd.f32 %v1592_v17, %v1591_v36  ;;  %v1702_v50 = vrot.slane %v1701_v28, 4 }
 0x27b   : > { %v1043_v5 = vadd.f32 %v1042_v62, %v1041_v44  ;;  %v1374_v9 = vrot.slane %v1373_v51, 2  ;;  %v1484_v32 = vrot.slane %v1483_v40, 2  ;;  %v9630_v12 = vunpack.c.l.bf16 %v9629_v26  ;;  %v9631_v26 = vld [vmem:[#allocation58_spill] sm:$0xff] }
 0x27c   : > { %v1155_v10 = vadd.f32 %v1154_v54, %v1153_v0  ;;  %v1265_v34 = vadd.f32 %v1264_v57, %v1263_v61  ;;  %v1594_v8 = vrot.slane %v1593_v49, 2  ;;  %v1703_v2 = vadd.f32 %v1702_v50, %v1701_v28  ;;  %v2153_v0 = vld [vmem:[%s8279_s1 + $0x7d8] sm:$0xff]  ;;  %v2102_v57 = vld [vmem:[%s8279_s1 + $0x640] sm:$0xff] }
 0x27d   : > { %v1810_v13 = vsel %vm959_vm0, %v9630_v12, 0.0  ;;  %v1044_v53 = vrot.slane %v1043_v5, 1  ;;  %v1375_v1 = vadd.f32 %v1374_v9, %v1373_v51  ;;  %v1485_v23 = vadd.f32 %v1484_v32, %v1483_v40  ;;  %v2159_v9 = vld [vmem:[%s8279_s1 + $0x808] sm:$0xff] }
 0x27e   : > { %v1811_v63 = vadd.f32 %v1810_v13, %v1809_v31  ;;  %v1156_v60 = vrot.slane %v1155_v10, 1  ;;  %v1266_v37 = vrot.slane %v1265_v34, 1  ;;  %v1595_v14 = vadd.f32 %v1594_v8, %v1593_v49  ;;  %v2105_v49 = vld [vmem:[%s8279_s1 + $0x658] sm:$0xff]  ;;  %v2108_v8 = vld [vmem:[%s8279_s1 + $0x670] sm:$0xff] }
 0x27f   : > { %v1704_v7 = vrot.slane %v1703_v2, 2  ;;  %v1045_v56 = vadd.f32 %v1044_v53, %v1043_v5  ;;  %v1376_v30 = vrot.slane %v1375_v1, 1  ;;  %v1486_v20 = vrot.slane %v1485_v23, 1  ;;  %v2156_v5 = vld [vmem:[%s8279_s1 + $0x7f0] sm:$0xff]  ;;  %v9632_v53 = vld [vmem:[#allocation37_spill] sm:$0xff] }
 0x280   : > { %v1812_v27 = vrot.slane %v1811_v63, 4  ;;  %v1157_v41 = vadd.f32 %v1156_v60, %v1155_v10  ;;  %v1267_v43 = vadd.f32 %v1266_v37, %v1265_v34  ;;  %v1596_v6 = vrot.slane %v1595_v14, 1 }
 0x281   : > { %v1705_v42 = vadd.f32 %v1704_v7, %v1703_v2  ;;  %v1377_v47 = vadd.f32 %v1376_v30, %v1375_v1  ;;  %v1487_v29 = vadd.f32 %v1486_v20, %v1485_v23  ;;  %v1844_v3 = vmul.f32 0.020408163, %v1045_v56  ;;  %v2111_v2 = vld [vmem:[%s8279_s1 + $0x688] sm:$0xff]  ;;  %v2162_v1 = vld [vmem:[%s8279_s1 + $0x820] sm:$0xff]  ;;  %v2165_v23 = vld [vmem:[%s8279_s1 + $0x838] sm:$0xff] }
 0x282   : > { %v1813_v46 = vadd.f32 %v1812_v27, %v1811_v63  ;;  %v1597_v35 = vadd.f32 %v1596_v6, %v1595_v14  ;;  %v1852_v16 = vmul.f32 0.020408163, %v1157_v41  ;;  %v1860_v39 = vmul.f32 0.020408163, %v1267_v43  ;;  %v2114_v14 = vld [vmem:[%s8279_s1 + $0x6a0] sm:$0xff]  ;;  %v2117_v7 = vld [vmem:[%s8279_s1 + $0x6b8] sm:$0xff] }
 0x283   : > { %v1706_v25 = vrot.slane %v1705_v42, 1  ;;  %v1868_v22 = vmul.f32 0.020408163, %v1377_v47  ;;  %v1876_v52 = vmul.f32 0.020408163, %v1487_v29  ;;  %v3764_v36 = vpack.c.bf16 %v2093_v38, %v2090_v45  ;;  %v2168_v56 = vld [vmem:[%s8279_s1 + $0x850] sm:$0xff] }
 0x284   : > { %v1814_v21 = vrot.slane %v1813_v46, 2  ;;  %v1884_v44 = vmul.f32 0.020408163, %v1597_v35  ;;  %v2392_v48 = vsel %vm2343_vm1, %v1852_v16, %v1844_v3  ;;  %v3766_v55 = vpack.c.bf16 %v2045_v11, %v2042_v15  ;;  %v2171_v30 = vld [vmem:[%s8279_s1 + $0x868] sm:$0xff]  ;;  %v2120_v41 = vld [vmem:[%s8279_s1 + $0x6d0] sm:$0xff]  ;;  %v2174_v6 = vld [vmem:[%s8279_s1 + $0x880] sm:$0xff] }
 0x285   : > { %v1707_v19 = vadd.f32 %v1706_v25, %v1705_v42  ;;  %v2393_v17 = vsel %vm2345_vm2, %v1860_v39, %v2392_v48  ;;  %3765 = vmatprep.subr.bf16.mxu1 %v3764_v36  ;;  %v3768_v28 = vpack.c.bf16 %v2147_v18, %v2144_v33  ;;  %v3770_v40 = vpack.c.bf16 %v2099_v59, %v2096_v24  ;;  %v2123_v43 = vld [vmem:[%s8279_s1 + $0x6e8] sm:$0xff]  ;;  %v2177_v42 = vld [vmem:[%s8279_s1 + $0x898] sm:$0xff]  ;;  %v2126_v15 = vld [vmem:[%s8279_s1 + $0x700] sm:$0xff] }
 0x286   : > { %v1815_v61 = vadd.f32 %v1814_v21, %v1813_v46  ;;  %v2394_v51 = vsel %vm2347_vm3, %v1868_v22, %v2393_v17  ;;  %3767 = vmatpush3.bf16.msra.mxu1 %v3766_v55  ;;  %v3772_v54 = vpack.c.bf16 %v2153_v0, %v2150_v58  ;;  %v3774_v13 = vpack.c.bf16 %v2105_v49, %v2102_v57  ;;  %v2129_v47 = vld [vmem:[%s8279_s1 + $0x718] sm:$0xff]  ;;  %v2180_v29 = vld [vmem:[%s8279_s1 + $0x8b0] sm:$0xff]  ;;  %v2183_v46 = vld [vmem:[%s8279_s1 + $0x8c8] sm:$0xff] }
 0x287   : > { %v1892_v62 = vmul.f32 0.020408163, %v1707_v19  ;;  %v2395_v31 = vsel %vm2349_vm4, %v1876_v52, %v2394_v51  ;;  %3769 = vmatprep.subr.bf16.mxu1 %v3768_v28  ;;  %v3776_v34 = vpack.c.bf16 %v2159_v9, %v2156_v5  ;;  %v3778_v60 = vpack.c.bf16 %v2111_v2, %v2108_v8  ;;  %v2132_v33 = vld [vmem:[%s8279_s1 + $0x730] sm:$0xff]  ;;  %v2135_v18 = vld [vmem:[%s8279_s1 + $0x748] sm:$0xff]  ;;  %v2186_v35 = vld [vmem:[%s8279_s1 + $0x8e0] sm:$0xff] }
 0x288   : > { %v1816_v4 = vrot.slane %v1815_v61, 1  ;;  %v2396_v50 = vsel %vm2351_vm5, %v1884_v44, %v2395_v31  ;;  %v3780_v37 = vpack.c.bf16 %v2165_v23, %v2162_v1  ;;  %v3782_v20 = vpack.c.bf16 %v2117_v7, %v2114_v14  ;;  %v2189_v25 = vld [vmem:[%s8279_s1 + $0x8f8] sm:$0xff]  ;;  %v2138_v24 = vld [vmem:[%s8279_s1 + $0x760] sm:$0xff]  ;;  %v2192_v52 = vld [vmem:[%s8279_s1 + $0x910] sm:$0xff] }
 0x289   : > { %2834 = vmatmul.mubr.f32.vlgmr.msra.gmra.mrb[2].mxu1 %v9631_v26  ;;  %v2397_v12 = vsel %vm2353_vm6, %v1892_v62, %v2396_v50  ;;  %v3784_v27 = vpack.c.bf16 %v2171_v30, %v2168_v56  ;;  %v3786_v45 = vpack.c.bf16 %v2123_v43, %v2120_v41  ;;  %v3788_v38 = vpack.c.bf16 %v2177_v42, %v2174_v6  ;;  %v2141_v21 = vld [vmem:[%s8279_s1 + $0x778] sm:$0xff]  ;;  %v2195_v36 = vld [vmem:[%s8279_s1 + $0x928] sm:$0xff]  ;;  %v2198_v44 = vld [vmem:[%s8279_s1 + $0x940] sm:$0xff] }
 0x28a   : > { %v1817_v32 = vadd.f32 %v1816_v4, %v1815_v61  ;;  %3771 = vmatpush3.bf16.msra.mxu1 %v3770_v40  ;;  %2903 = vmatprep.mubr.f32.mxu1 %v9632_v53  ;;  %v3790_v3 = vpack.c.bf16 %v2129_v47, %v2126_v15  ;;  %v3792_v11 = vpack.c.bf16 %v2183_v46, %v2180_v29  ;;  %v3925_v19 = vmov 0.0|0.0   ;;  %v2201_v48 = vld [vmem:[%s8279_s1 + $0x958] sm:$0xff]  ;;  %v9633_v55 = vld [vmem:[#allocation66_spill] sm:$0xff]  ;;  %v2204_v61 = vld [vmem:[%s8279_s1 + $0x970] sm:$0xff] }
 0x28b   : > { %3773 = vmatprep.subr.bf16.mxu1 %v3772_v54  ;;  %v3794_v16 = vpack.c.bf16 %v2135_v18, %v2132_v33  ;;  %v3796_v39 = vpack.c.bf16 %v2189_v25, %v2186_v35  ;;  %v3798_v22 = vpack.c.bf16 %v2141_v21, %v2138_v24  ;;  %v3801_v59 = vpack.c.bf16 %v2195_v36, %v2192_v52  ;;  %v9634_v0 = vld [vmem:[#allocation5_spill] sm:$0xff]  ;;  %v2207_v17 = vld [vmem:[%s8279_s1 + $0x988] sm:$0xff]  ;;  %v2210_v62 = vld [vmem:[%s8279_s1 + $0x9a0] sm:$0xff] }
 0x28c   : > { %v1900_v10 = vmul.f32 0.020408163, %v1817_v32  ;;  %v3804_v58 = vpack.c.bf16 %v2201_v48, %v2198_v44  ;;  %v3807_v28 = vpack.c.bf16 %v2207_v17, %v2204_v61  ;;  %v2213_v51 = vld [vmem:[%s8279_s1 + $0x9b8] sm:$0xff]  ;;  %v2216_v4 = vld [vmem:[%s8279_s1 + $0x9d0] sm:$0xff]  ;;  %v2219_v31 = vld [vmem:[%s8279_s1 + $0x9e8] sm:$0xff] }
 0x28d   : > { %v3810_v40 = vpack.c.bf16 %v2213_v51, %v2210_v62  ;;  %v3813_v54 = vpack.c.bf16 %v2219_v31, %v2216_v4  ;;  %v2222_v57 = vld [vmem:[%s8279_s1 + $0xa00] sm:$0xff]  ;;  %v2225_v49 = vld [vmem:[%s8279_s1 + $0xa18] sm:$0xff]  ;;  %v2228_v5 = vld [vmem:[%s8279_s1 + $0xa30] sm:$0xff] }
 0x28e   : > { %v7964_v63 = vsel %vm2355_vm7, %v1900_v10, %v2397_v12  ;;  %3775 = vmatpush3.bf16.msra.mxu1 %v3774_v13  ;;  %v3816_v50 = vpack.c.bf16 %v2225_v49, %v2222_v57  ;;  %v2231_v9 = vld [vmem:[%s8279_s1 + $0xa48] sm:$0xff]  ;;  %v2234_v26 = vld [vmem:[%s8279_s1 + $0xa60] sm:$0xff]  ;;  %v2237_v12 = vld [vmem:[%s8279_s1 + $0xa78] sm:$0xff] }
 0x28f   : > { %2693 = vmatmul.mubr.f32.vlgmr.msra.gmra.mrb[0].mxu0 %v7964_v63  ;;  %3777 = vmatprep.subr.bf16.mxu1 %v3776_v34  ;;  %v3819_v32 = vpack.c.bf16 %v2231_v9, %v2228_v5  ;;  %v3822_v13 = vpack.c.bf16 %v2237_v12, %v2234_v26  ;;  %v2240_v10 = vld [vmem:[%s8279_s1 + $0xa90] sm:$0xff]  ;;  %v2243_v34 = vld [vmem:[%s8279_s1 + $0xaa8] sm:$0xff]  ;;  %v2246_v2 = vld [vmem:[%s8279_s1 + $0xac0] sm:$0xff] }
 0x290   : > { %v3825_v8 = vpack.c.bf16 %v2243_v34, %v2240_v10  ;;  %v2249_v53 = vld [vmem:[%s8279_s1 + $0xad8] sm:$0xff]  ;;  %v2252_v23 = vld [vmem:[%s8279_s1 + $0xaf0] sm:$0xff]  ;;  %v2258_v14 = vld [vmem:[%s8279_s1 + $0xb20] sm:$0xff]  ;;  %v2264_v10 = vlaneseq }
 0x291   : > { %v3828_v1 = vpack.c.bf16 %v2249_v53, %v2246_v2  ;;  %v2261_v7 = vld [vmem:[%s8279_s1 + $0xb38] sm:$0xff]  ;;  %v3001_v56 = vld [vmem:[%s8281_s3 + $0x80] sm:$0xff]  ;;  %v3002_v30 = vld [vmem:[%s8281_s3 + $0x88] sm:$0xff] }
 0x292   : > { %3779 = vmatpush3.bf16.msra.mxu1 %v3778_v60  ;;  %v2255_v60 = vld [vmem:[%s8279_s1 + $0xb08] sm:$0xff]  ;;  %v2985_v41 = vld [vmem:[%s8281_s3] sm:$0xff]  ;;  %v3003_v6 = vld [vmem:[%s8281_s3 + $0x90] sm:$0xff]  ;;  %v2265_v34 = vshrl.u32 %v2264_v10, 7 }
 0x293   : > { %3781 = vmatprep.subr.bf16.mxu1 %v3780_v37  ;;  %v3831_v37 = vpack.c.bf16 %v2255_v60, %v2252_v23  ;;  %v2986_v43 = vld [vmem:[%s8281_s3 + $0x8] sm:$0xff]  ;;  %v3004_v42 = vld [vmem:[%s8281_s3 + $0x98] sm:$0xff]  ;;  %v2987_v15 = vld [vmem:[%s8281_s3 + $0x10] sm:$0xff] }
 0x294   : > { %v2988_v47 = vld [vmem:[%s8281_s3 + $0x18] sm:$0xff]  ;;  %v3005_v29 = vld [vmem:[%s8281_s3 + $0xa0] sm:$0xff]  ;;  %v3006_v46 = vld [vmem:[%s8281_s3 + $0xa8] sm:$0xff]  ;;  %v2270_v23 = vsub.s32 1, %v2265_v34 }
 0x295   : > { %v2989_v33 = vld [vmem:[%s8281_s3 + $0x20] sm:$0xff]  ;;  %v2990_v18 = vld [vmem:[%s8281_s3 + $0x28] sm:$0xff]  ;;  %v3007_v35 = vld [vmem:[%s8281_s3 + $0xb0] sm:$0xff] }
 0x296   : > { %3783 = vmatpush3.bf16.msra.mxu1 %v3782_v20  ;;  %v3834_v20 = vpack.c.bf16 %v2261_v7, %v2258_v14  ;;  %v3846_v25 = vpack.c.bf16 %v2990_v18, %v2989_v33  ;;  %v2992_v24 = vld [vmem:[%s8281_s3 + $0x38] sm:$0xff]  ;;  %v3009_v21 = vld [vmem:[%s8281_s3 + $0xc0] sm:$0xff]  ;;  %v2994_v44 = vld [vmem:[%s8281_s3 + $0x48] sm:$0xff] }
 0x297   : > { %3785 = vmatprep.subr.bf16.mxu1 %v3784_v27  ;;  %v3836_v27 = vpack.c.bf16 %v3002_v30, %v3001_v56  ;;  %v3011_v48 = vld [vmem:[%s8281_s3 + $0xd0] sm:$0xff]  ;;  %v2996_v17 = vld [vmem:[%s8281_s3 + $0x58] sm:$0xff]  ;;  %v3014_v62 = vld [vmem:[%s8281_s3 + $0xe8] sm:$0xff] }
 0x298   : > { %v2995_v61 = vld [vmem:[%s8281_s3 + $0x50] sm:$0xff]  ;;  %v2997_v4 = vld [vmem:[%s8281_s3 + $0x60] sm:$0xff]  ;;  %v2998_v31 = vld [vmem:[%s8281_s3 + $0x68] sm:$0xff] }
 0x299   : > { %v3858_v51 = vpack.c.bf16 %v2996_v17, %v2995_v61  ;;  %v3016_v57 = vld [vmem:[%s8281_s3 + $0xf8] sm:$0xff]  ;;  %v3862_v49 = vpack.c.bf16 %v2998_v31, %v2997_v4  ;;  %v2999_v5 = vld [vmem:[%s8281_s3 + $0x70] sm:$0xff]  ;;  %v2262_v2 = vld [vmem:[%s8280_s2] sm:$0x7] }
 0x29a   : > { %3787 = vmatpush3.bf16.msra.mxu1 %v3786_v45  ;;  %v3838_v45 = vpack.c.bf16 %v2986_v43, %v2985_v41  ;;  %v3000_v9 = vld [vmem:[%s8281_s3 + $0x78] sm:$0xff]  ;;  %v2271_v30 = vrot.slane %v2262_v2, %v2270_v23  ;;  %v3101_v18 = vld [vmem:[%s8283_s5 + $0x20] sm:$0xff] }
 0x29b   : > { %3789 = vmatprep.subr.bf16.mxu1 %v3788_v38  ;;  %v3840_v38 = vpack.c.bf16 %v3004_v42, %v3003_v6  ;;  %v3097_v42 = vld [vmem:[%s8283_s5] sm:$0xff]  ;;  %v3112_v4 = vld [vmem:[%s8283_s5 + $0x78] sm:$0xff] }
 0x29e   : > { %3791 = vmatpush3.bf16.msra.mxu1 %v3790_v3  ;;  %v3842_v3 = vpack.c.bf16 %v2988_v47, %v2987_v15 }
 0x29f   : > { %3793 = vmatprep.subr.bf16.mxu1 %v3792_v11  ;;  %v3844_v11 = vpack.c.bf16 %v3006_v46, %v3005_v29  ;;  %v3099_v46 = vld [vmem:[%s8283_s5 + $0x10] sm:$0xff] }
 0x2a2   : > { %3795 = vmatpush3.bf16.msra.mxu1 %v3794_v16 }
 0x2a3   : > { %3797 = vmatprep.subr.bf16.mxu1 %v3796_v39  ;;  %v2991_v39 = vld [vmem:[%s8281_s3 + $0x30] sm:$0xff] }
 0x2a4   : > { %v3850_v52 = vpack.c.bf16 %v2992_v24, %v2991_v39  ;;  %v3105_v24 = vld [vmem:[%s8283_s5 + $0x40] sm:$0xff] }
 0x2a6   : > { %3799 = vmatpush3.bf16.msra.mxu1 %v3798_v22  ;;  %v3010_v22 = vld [vmem:[%s8281_s3 + $0xc8] sm:$0xff] }
 0x2a7   : > { %3800 = vmatprep.subr.bf16.mxu1 %v3925_v19  ;;  %v3852_v36 = vpack.c.bf16 %v3010_v22, %v3009_v21  ;;  %v3106_v21 = vld [vmem:[%s8283_s5 + $0x48] sm:$0xff] }
 0x2a8   : > { %v3881_v22 = vpack.c.bf16 %v3106_v21, %v3105_v24 }
 0x2a9   : > { %2904 = vmatmul.mubr.f32.vlgmr.msra.gmra.mrb[4].mxu1 %v9633_v55  ;;  %v3012_v55 = vld [vmem:[%s8281_s3 + $0xd8] sm:$0xff] }
 0x2aa   : > { %3802 = vmatpush1.bf16.msra.mxu1 %v3801_v59  ;;  %3266 = vmatprep.mubr.msk.f32.mxu1 %vm1046_vm8, %v9634_v0  ;;  %v2993_v59 = vld [vmem:[%s8281_s3 + $0x40] sm:$0xff]  ;;  %v3856_v0 = vpack.c.bf16 %v3012_v55, %v3011_v48 }
 0x2ab   : > { %3803 = vmatprep.subr.bf16.mxu1 %v3925_v19 }
 0x2ae   : > { %3805 = vmatpush1.bf16.msra.mxu1 %v3804_v58  ;;  %v3854_v58 = vpack.c.bf16 %v2994_v44, %v2993_v59 }
 0x2af   : > { %3806 = vmatprep.subr.bf16.mxu1 %v3925_v19 }
 0x2b2   : > { %3808 = vmatpush1.bf16.msra.mxu1 %v3807_v28  ;;  %v3013_v28 = vld [vmem:[%s8281_s3 + $0xe0] sm:$0xff] }
 0x2b3   : > { %3809 = vmatprep.subr.bf16.mxu1 %v3925_v19 }
 0x2b6   : > { %3811 = vmatpush1.bf16.msra.mxu1 %v3810_v40  ;;  %v3860_v40 = vpack.c.bf16 %v3014_v62, %v3013_v28  ;;  %v3109_v28 = vld [vmem:[%s8283_s5 + $0x60] sm:$0xff]  ;;  %v3110_v62 = vld [vmem:[%s8283_s5 + $0x68] sm:$0xff] }
 0x2b7   : > { %3812 = vmatprep.subr.bf16.mxu1 %v3925_v19 }
 0x2ba   : > { %3814 = vmatpush1.bf16.msra.mxu1 %v3813_v54  ;;  %v3015_v54 = vld [vmem:[%s8281_s3 + $0xf0] sm:$0xff] }
 0x2bb   : > { %3815 = vmatprep.subr.bf16.mxu1 %v3925_v19 }
 0x2be   : > { %3817 = vmatpush1.bf16.msra.mxu1 %v3816_v50  ;;  %v3864_v50 = vpack.c.bf16 %v3016_v57, %v3015_v54  ;;  %v3927_v54 = vmov 0.0  }
 0x2bf   : > { %3818 = vmatprep.subr.bf16.mxu1 %v3925_v19 }
 0x2c1   : > { %v3304_v26 = vpop.f32.mrb[0].mxu1 }
 0x2c2   : > { %3820 = vmatpush1.bf16.msra.mxu1 %v3819_v32  ;;  %v3866_v32 = vpack.c.bf16 %v3000_v9, %v2999_v5  ;;  %v3305_v12 = vpop.f32.mrb[1].mxu1 }
 0x2c3   : > { %3821 = vmatprep.subr.bf16.mxu1 %v3925_v19 }
 0x2c6   : > { %3823 = vmatpush1.bf16.msra.mxu1 %v3822_v13  ;;  %v3306_v13 = vadd.f32 %v3305_v12, %v3304_v26  ;;  %v3268_v26 = vld [vmem:[%s8284_s6] ss:$0 sm:$0xff] }
 0x2c7   : > { %3824 = vmatprep.subr.bf16.mxu1 %v3925_v19 }
 0x2ca   : > { %3826 = vmatpush1.bf16.msra.mxu1 %v3825_v8  ;;  %v2274_v8 = vsub.s32 2, %v2265_v34 }
 0x2cb   : > { %3827 = vmatprep.subr.bf16.mxu1 %v3925_v19 }
 0x2cc   : > { %v2275_v53 = vrot.slane %v2262_v2, %v2274_v8 }
 0x2ce   : > { %3829 = vmatpush1.bf16.msra.mxu1 %v3828_v1  ;;  %v2266_v1 = vsub.s32 0, %v2265_v34  ;;  %v2766_v60 = vadd.f32 %v3306_v13, %v2275_v53 }
 0x2cf   : > { %3830 = vmatprep.subr.bf16.mxu1 %v3925_v19 }
 0x2d0   : > { %v2267_v7 = vrot.slane %v2262_v2, %v2266_v1 }
 0x2d2   : > { %3832 = vmatpush1.bf16.msra.mxu1 %v3831_v37 }
 0x2d3   : > { %3833 = vmatprep.subr.bf16.mxu1 %v3925_v19 }
 0x2d6   : > { %3835 = vmatpush1.bf16.msra.mxu1 %v3834_v20 }
 0x2d7   : > { %3837 = vmatprep.subr.bf16.mxu1 %v3836_v27 }
 0x2d9   : > { %2974 = vmatmul.mubr.f32.vlgmr.msra.gmra.mrb[6].mxu1 %v7964_v63  ;;  %v3008_v63 = vld [vmem:[%s8281_s3 + $0xb8] sm:$0xff] }
 0x2da   : > { %3839 = vmatpush3.bf16.msra.mxu1 %v3838_v45  ;;  %v3848_v16 = vpack.c.bf16 %v3008_v63, %v3007_v35  ;;  %v3098_v45 = vld [vmem:[%s8283_s5 + $0x8] sm:$0xff] }
 0x2db   : > { %3841 = vmatprep.subr.bf16.mxu1 %v3840_v38  ;;  %v3869_v47 = vpack.c.bf16 %v3098_v45, %v3097_v42  ;;  %v3102_v35 = vld [vmem:[%s8283_s5 + $0x28] sm:$0xff] }
 0x2dc   : > { %v3875_v63 = vpack.c.bf16 %v3102_v35, %v3101_v18 }
 0x2de   : > { %3843 = vmatpush3.bf16.msra.mxu1 %v3842_v3  ;;  %v3100_v3 = vld [vmem:[%s8283_s5 + $0x18] sm:$0xff] }
 0x2df   : > { %3845 = vmatprep.subr.bf16.mxu1 %v3844_v11  ;;  %v3872_v33 = vpack.c.bf16 %v3100_v3, %v3099_v46 }
 0x2e2   : > { %3847 = vmatpush3.bf16.msra.mxu1 %v3846_v25  ;;  %v3103_v25 = vld [vmem:[%s8283_s5 + $0x30] sm:$0xff] }
 0x2e3   : > { %3849 = vmatprep.subr.bf16.mxu1 %v3848_v16  ;;  %v3104_v16 = vld [vmem:[%s8283_s5 + $0x38] sm:$0xff] }
 0x2e4   : > { %v3878_v39 = vpack.c.bf16 %v3104_v16, %v3103_v25 }
 0x2e6   : > { %3851 = vmatpush3.bf16.msra.mxu1 %v3850_v52  ;;  %v3107_v52 = vld [vmem:[%s8283_s5 + $0x50] sm:$0xff] }
 0x2e7   : > { %3853 = vmatprep.subr.bf16.mxu1 %v3852_v36  ;;  %v3108_v36 = vld [vmem:[%s8283_s5 + $0x58] sm:$0xff] }
 0x2e8   : > { %v3884_v59 = vpack.c.bf16 %v3108_v36, %v3107_v52 }
 0x2ea   : > { %3855 = vmatpush3.bf16.msra.mxu1 %v3854_v58 }
 0x2eb   : > { %3857 = vmatprep.subr.bf16.mxu1 %v3856_v0 }
 0x2ee   : > { %3859 = vmatpush3.bf16.msra.mxu1 %v3858_v51  ;;  %v3887_v51 = vpack.c.bf16 %v3110_v62, %v3109_v28 }
 0x2ef   : > { %3861 = vmatprep.subr.bf16.mxu1 %v3860_v40  ;;  %v3111_v40 = vld [vmem:[%s8283_s5 + $0x70] sm:$0xff] }
 0x2f0   : > { %v3890_v31 = vpack.c.bf16 %v3112_v4, %v3111_v40 }
 0x2f2   : > { %3863 = vmatpush3.bf16.msra.mxu1 %v3862_v49  ;;  %v3267_v49 = vld [vmem:[%s8282_s4] ss:$0 sm:$0xff] }
 0x2f3   : > { %3865 = vmatprep.subr.bf16.mxu1 %v3864_v50 }
 0x2f6   : > { %3867 = vmatpush3.bf16.msra.mxu1 %v3866_v32 }
 0x2f7   : > { %3868 = vmatprep.subr.bf16.mxu1 %v3925_v19 }
 0x35c   : > { %v3339_v37 = vpop.f32.mrb[2].mxu1 }
 0x35d   : > { %v3340_v14 = vpop.f32.mrb[3].mxu1 }
 0x35e   : > { %v3341_v56 = vadd.f32 %v3340_v14, %v3339_v37 }
 0x360   : > { %v2836_v20 = vadd.f32 %v3341_v56, %v2766_v60 }
 0x362   : > { %v2694_v27 = vpop.f32.mrb[0].mxu0 }
 0x363   : > { %v3892_v41 = vadd.f32 %v2694_v27, %v2267_v7  ;;  %v2696_v43 = vpop.f32.mrb[1].mxu0 }
 0x364   : > { %v3893_v6 = vadd.f32 %v2696_v43, %v2271_v30 }
 0x365   : > { %v2981_v38 = vmul.f32 0.01, %v3892_v41  ;;  %vm2979_vm10 = vcmp.gt.f32.partialorder %v3892_v41, 0.0 }
 0x366   : > { %v2982_v15 = vmul.f32 0.01, %v3893_v6  ;;  %vm2980_vm11 = vcmp.gt.f32.partialorder %v3893_v6, 0.0 }
 0x367   : > { %v2983_v11 = vsel %vm2979_vm10, %v3892_v41, %v2981_v38 }
 0x368   : > { %v2984_v29 = vsel %vm2980_vm11, %v3893_v6, %v2982_v15 }
 0x369   : > { %3088 = vmatprep.mubr.f32.mxu1 %v2984_v29 }
 0x36a   : > { %3089 = vmatmul.mubr.f32.vlgmr.msra.gmra.mrb[8].mxu1 %v2983_v11 }
 0x36b   : > { %3870 = vmatpush3.bf16.msra.mxu1 %v3869_v47  ;;  %3461 = vmatprep.mubr.msk.f32.mxu1 %vm3926_vm12, %v3927_v54 }
 0x36c   : > { %3871 = vmatprep.subr.bf16.mxu1 %v3925_v19 }
 0x36f   : > { %3873 = vmatpush3.bf16.msra.mxu1 %v3872_v33 }
 0x370   : > { %3874 = vmatprep.subr.bf16.mxu1 %v3925_v19 }
 0x373   : > { %3876 = vmatpush3.bf16.msra.mxu1 %v3875_v63 }
 0x374   : > { %3877 = vmatprep.subr.bf16.mxu1 %v3925_v19 }
 0x377   : > { %3879 = vmatpush3.bf16.msra.mxu1 %v3878_v39 }
 0x378   : > { %3880 = vmatprep.subr.bf16.mxu1 %v3925_v19 }
 0x37b   : > { %3882 = vmatpush3.bf16.msra.mxu1 %v3881_v22 }
 0x37c   : > { %3883 = vmatprep.subr.bf16.mxu1 %v3925_v19  ;;  %v3374_v44 = vpop.f32.mrb[4].mxu1 }
 0x37d   : > { %v3375_v48 = vpop.f32.mrb[5].mxu1 }
 0x37e   : > { %v3376_v55 = vadd.f32 %v3375_v48, %v3374_v44 }
 0x37f   : > { %3885 = vmatpush3.bf16.msra.mxu1 %v3884_v59 }
 0x380   : > { %3886 = vmatprep.subr.bf16.mxu1 %v3925_v19  ;;  %v2906_v58 = vadd.f32 %v3376_v55, %v2836_v20 }
 0x383   : > { %3888 = vmatpush3.bf16.msra.mxu1 %v3887_v51 }
 0x384   : > { %3889 = vmatprep.subr.bf16.mxu1 %v3925_v19 }
 0x387   : > { %3891 = vmatpush3.bf16.msra.mxu1 %v3890_v31 }
 0x3ac   : > { %v2975_v0 = vpop.f32.mrb[6].mxu1 }
 0x3ad   : > { %v2976_v61 = vadd.f32 %v2975_v0, %v2906_v58  ;;  %v2977_v17 = vpop.f32.mrb[7].mxu1 }
 0x43d   : > { %v3409_v57 = vpop.f32.mrb[8].mxu1 }
 0x43e   : > { %v3410_v50 = vpop.f32.mrb[9].mxu1 }
 0x43f   : > { %v3411_v19 = vadd.f32 %v3410_v50, %v3409_v57 }
 0x441   : > { %v3091_v5 = vadd.f32 %v3411_v19, %v3267_v49 }
 0x443   : > { %v3095_v9 = vmul.f32 0.01, %v3091_v5  ;;  %vm3094_vm13 = vcmp.gt.f32.partialorder %v3091_v5, 0.0 }
 0x445   : > { %v3096_v32 = vsel %vm3094_vm13, %v3091_v5, %v3095_v9 }
 0x446   : > { %3462 = vmatmul.mubr.f32.vlgmr.msra.gmra.mrb[10].mxu1 %v3096_v32 }
 0x519   : > { %v3186_v12 = vpop.f32.mrb[10].mxu1 }
 0x51a   : > { %v3187_v13 = vadd.f32 %v3268_v26, %v3186_v12  ;;  %v3463_v10 = vpop.f32.mrb[11].mxu1 }
 0x51c   : > { %v3269_v34 = vmul.f32 -1.442695, %v3187_v13 }
 0x51e   : > { %3913 = vpow2.f32 %v3269_v34 }
 0x528   : > { %v3914_v8 = vpop.eup %3913 }
 0x529   : > { %v3193_v2 = vadd.f32 1.0, %v3914_v8 }
 0x52b   : > { %3915 = vrcp.f32 %v3193_v2 }
 0x535   : > { %v3916_v53 = vpop.eup %3915 }
 0x536   : > { %3197 = vrot.lane.b32.xlu0 %v3916_v53, %s3928_s17 }
 0x5a8   : > { %v3198_v1 = vpop.permute.xlu0 %3197 }
 0x5a9   : > { %v3201_v23 = vsel %vm3200_vm14, %v2976_v61, %v3198_v1 }
 0x5aa   : > { %3203 = vst.msk [vmem:[%s281_s21] sm:$0xff] %vm3202_vm15, %v3201_v23 }
 0x5ab PF: > { %s17_s24 = sadd.s32 1, %s3923_s24  }
 0x5ac   : > { %p14_p5 = scmp.ge.s32.totalorder %s17_s24, 4  }
 0x5ae   :  { %16 = sbr.rel (!%p14_p5) target bundleno = 1 (0x1), region = 78 }

</bundles_post_ra>
